<compile_context>
chip_gen: v6e
topology: v6e:2x2x1
jax: 0.10.0
libtpu: 0.0.40
codegen_flags: <defaults>
</compile_context>

<pallas_src>
import functools
import math
from typing import NamedTuple

import jax
import jax.numpy as jnp
from jax import lax
from jax.experimental import pallas as pl
from jax.experimental.pallas import tpu as pltpu

_LANE = 128
_SUBLANE = 8


def _round_up(x, m):
    return (x + m - 1) // m * m


def _vmem_capacity_bytes():
    """Physical VMEM of the local TPU, with a conservative fallback."""
    try:
        info = pltpu.get_tpu_info()
        for name in ("vmem_capacity_bytes", "vmem_size_bytes", "vmem_bytes"):
            cap = getattr(info, name, None)
            if cap:
                return int(cap)
    except Exception:
        pass
    return 64 * 1024 * 1024  # v7x per-core budget (smallest of the family)


class _Plan(NamedTuple):
    Hp: int
    Bp: int
    Tc: int
    nchunks: int
    Tp: int
    unroll: object          # bool or int, for lax.fori_loop
    vmem_limit_bytes: int


def _plan(T, B, H, compute_dtype, out_dtype, time_chunk=None,
          vmem_limit_bytes=None):
    """Pick padded sizes, time-chunking and VMEM limits for this generation."""
    cbytes = jnp.dtype(compute_dtype).itemsize
    obytes = jnp.dtype(out_dtype).itemsize
    Hp = _round_up(H, _LANE)                       # lane-align each gate block
    sub = _SUBLANE * max(1, 4 // cbytes)           # 8 rows (f32) / 16 rows (bf16)
    Bp = _round_up(B, sub)

    cap = _vmem_capacity_bytes()
    if vmem_limit_bytes is None:
        vmem_limit_bytes = int(cap * 0.9)

    if time_chunk is None:
        budget = int(cap * 0.6)
        # resident weight scratch + f32 state scratch + small final-state blocks
        fixed = Hp * 4 * Hp * cbytes + 2 * Bp * Hp * 4 + 4 * Bp * Hp * 4
        # double-buffered x-gate slab + double-buffered output slab, per step
        per_step = 2 * Bp * 4 * Hp * cbytes + 2 * Bp * Hp * obytes
        tc = max(1, min(T, (budget - fixed) // per_step, 512))
        # Prefer a divisor of T (removes the tail-timestep mask) if it costs
        # less than 2x the number of grid steps.
        best = int(tc)
        for cand in range(int(tc), max(0, int(tc) // 2), -1):
            if T % cand == 0:
                best = cand
                break
        Tc = best
    else:
        Tc = max(1, min(int(time_chunk), T))

    nchunks = -(-T // Tc)
    Tp = nchunks * Tc

    # Unroll heuristic: full unroll only while the live f32 gate tiles stay
    # comfortably inside the 64-vreg file; otherwise partial unroll.
    step_vregs = (Bp // 8) * ((4 * Hp) // 128)
    if step_vregs * Tc <= 64:
        unroll = True
    elif step_vregs <= 16:
        unroll = 4
    else:
        unroll = 2

    return _Plan(Hp, Bp, Tc, nchunks, Tp, unroll, int(vmem_limit_bytes))


# ----------------------------------------------------------------------------
# Pallas kernel: recurrent part of one LSTM layer, both directions fused.
# grid = (num_directions, num_time_chunks); hidden/cell state and the resident
# symmetrized W_hh^T live in VMEM scratch and persist across time chunks.
# ----------------------------------------------------------------------------
def _lstm_rec_kernel(rev_ref, xw_ref, whh_hbm, h0_hbm, c0_hbm,
                     out_ref, hN_ref, cN_ref,
                     whh_sc, h_sc, c_sc, dma_sem,
                     *, Tc, T, nchunks, need_mask, unroll):
    d = pl.program_id(0)            # direction index ('parallel' axis)
    t = pl.program_id(1)            # time-chunk index ('arbitrary' axis)
    Hp = h_sc.shape[-1]             # lane-padded hidden size
    rev = rev_ref[d]                # 1 => this direction runs back-to-front
    # array-order chunk index (the index_map already reverses the DMA order)
    c_arr = t + rev * (nchunks - 1 - 2 * t)

    @pl.when(t == 0)
    def _init():
        # Single-buffered residents: DMA the per-direction W_hh^T and the
        # initial state straight into persistent VMEM scratch.
        cw = pltpu.make_async_copy(whh_hbm.at[d], whh_sc, dma_sem.at[0])
        ch = pltpu.make_async_copy(h0_hbm.at[d], h_sc, dma_sem.at[1])
        cc = pltpu.make_async_copy(c0_hbm.at[d], c_sc, dma_sem.at[2])
        cw.start()
        ch.start()
        cc.start()
        cw.wait()
        ch.wait()
        cc.wait()

    def step(s, carry):
        h, c = carry
        idx = s + rev * (Tc - 1 - 2 * s)            # buffer row for this step
        xg = xw_ref[idx].astype(jnp.float32)        # (Bp, 4Hp) precomputed x-gates
        h_op = h.astype(whh_sc.dtype)
        # Per-gate MXU dots issued i, f, g, o so the EUP nonlinearity of early
        # gates overlaps MXU work of later gates (shorter serial path).
        acts = (jax.nn.sigmoid, jax.nn.sigmoid, jnp.tanh, jax.nn.sigmoid)
        gates = []
        for k, act in enumerate(acts):
            pre = xg[:, k * Hp:(k + 1) * Hp] + jnp.dot(
                h_op, whh_sc[:, k * Hp:(k + 1) * Hp],
                preferred_element_type=jnp.float32)
            gates.append(act(pre))
        ingate, forgetgate, cellgate, outgate = gates
        c_new = forgetgate * c + ingate * cellgate
        h_new = outgate * jnp.tanh(c_new)
        if need_mask:
            # Only needed when T is not a multiple of Tc: padded time steps do
            # not advance the state (and emit the carried h, which is inert).
            valid = (c_arr * Tc + idx) < T
            c_new = jnp.where(valid, c_new, c)
            h_new = jnp.where(valid, h_new, h)
        out_ref[idx] = h_new.astype(out_ref.dtype)
        return h_new, c_new

    h, c = lax.fori_loop(0, Tc, step, (h_sc[...], c_sc[...]), unroll=unroll)
    h_sc[...] = h
    c_sc[...] = c

    # Final-state blocks have a constant index along the time axis; they are
    # written back to HBM only after the last chunk of each direction.
    @pl.when(t == nchunks - 1)
    def _finalize():
        hN_ref[...] = h.astype(hN_ref.dtype)
        cN_ref[...] = c.astype(cN_ref.dtype)


# ----------------------------------------------------------------------------
# Reparameterization + padding helpers (wrapper side).
# ----------------------------------------------------------------------------
def _symm_wwt_hh(w_hh):
    """'wwt' symmetrization of each (H,H) gate block of w_hh:(4H,H)."""
    H = w_hh.shape[1]
    nblocks = w_hh.shape[0] // H
    blocks = [w_hh[k * H:(k + 1) * H] for k in range(nblocks)]
    return jnp.concatenate([(b + b.T) * 0.5 for b in blocks], axis=0)


def _prep_whhT(w_hh, Hp, compute_dtype):
    """Symmetrize, transpose and gate-block pad W_hh -> (Hp, 4*Hp)."""
    H = w_hh.shape[1]
    w = _symm_wwt_hh(w_hh)                          # (4H, H)
    wT = w.T.reshape(H, 4, H)
    wT = jnp.pad(wT, ((0, Hp - H), (0, 0), (0, Hp - H)))
    return wT.reshape(Hp, 4 * Hp).astype(compute_dtype)


def _pad_state(s, Bp, Hp):
    D, B, H = s.shape
    return jnp.pad(s.astype(jnp.float32), ((0, 0), (0, Bp - B), (0, Hp - H)))


def _project_from_input(x, w_ih_all, bias_all, plan, cd):
    """Layer-0 hoisted projection: (T,B,I) -> (D, Tp, Bp, 4*Hp) gate slab."""
    T, B, _ = x.shape
    D, G, _ = w_ih_all.shape
    H = G // 4
    xw = jnp.einsum('tbi,dgi->dtbg', x.astype(cd), w_ih_all.astype(cd),
                    preferred_element_type=jnp.float32)
    xw = xw + bias_all.astype(jnp.float32)[:, None, None, :]
    xw = xw.reshape(D, T, B, 4, H)
    xw = jnp.pad(xw, ((0, 0), (0, plan.Tp - T), (0, plan.Bp - B), (0, 0),
                      (0, plan.Hp - H)))
    return xw.reshape(D, plan.Tp, plan.Bp, 4 * plan.Hp).astype(cd)


def _project_from_padded(prev_pad, w_ih_all, bias_all, H, plan, cd):
    """Layer>0 projection directly from the previous layer's padded output.

    prev_pad: (Dprev, Tp, Bp, Hp).  Its padded hidden lanes are exactly zero,
    so zero-padding the matching weight columns is a mathematical no-op.
    """
    D, G, _ = w_ih_all.shape
    Dp = prev_pad.shape[0]
    w = w_ih_all.reshape(D, G, Dp, H)
    w = jnp.pad(w, ((0, 0), (0, 0), (0, 0), (0, plan.Hp - H)))
    xw = jnp.einsum('ptbh,dgph->dtbg', prev_pad.astype(cd), w.astype(cd),
                    preferred_element_type=jnp.float32)
    xw = xw + bias_all.astype(jnp.float32)[:, None, None, :]
    xw = xw.reshape(D, plan.Tp, plan.Bp, 4, H)
    xw = jnp.pad(xw, ((0, 0), (0, 0), (0, 0), (0, 0), (0, plan.Hp - H)))
    return xw.reshape(D, plan.Tp, plan.Bp, 4 * plan.Hp).astype(cd)


# ----------------------------------------------------------------------------
# pallas_call wrapper: the recurrence over one layer (all directions fused).
# ----------------------------------------------------------------------------
def _lstm_recurrence(xw, whh_all, h0, c0, rev_flags, plan, *, T, out_dtype):
    D, Tp, Bp, G = xw.shape
    Hp = G // 4
    Tc, nchunks = plan.Tc, plan.nchunks
    need_mask = Tp != T

    kernel = functools.partial(_lstm_rec_kernel, Tc=Tc, T=T, nchunks=nchunks,
                               need_mask=need_mask, unroll=plan.unroll)

    def seq_map(d, t, rev):
        # forward direction: array chunk = t; reverse: nchunks-1-t.
        return (d, t + rev[d] * (nchunks - 1 - 2 * t), 0, 0)

    def state_map(d, t, rev):
        return (d, 0, 0)

    out, hN, cN = pl.pallas_call(
        kernel,
        out_shape=(jax.ShapeDtypeStruct((D, Tp, Bp, Hp), out_dtype),
                   jax.ShapeDtypeStruct((D, Bp, Hp), jnp.float32),
                   jax.ShapeDtypeStruct((D, Bp, Hp), jnp.float32)),
        grid_spec=pltpu.PrefetchScalarGridSpec(
            num_scalar_prefetch=1,                    # per-direction reverse flags
            grid=(D, nchunks),
            in_specs=[
                # precomputed x-gates: pipelined (Tc, Bp, 4Hp) slabs
                pl.BlockSpec((None, Tc, Bp, 4 * Hp), seq_map),
                # residents: raw HBM refs, manually DMA'd once (single buffer)
                pl.BlockSpec(memory_space=pl.ANY),    # W_hh_symm^T (D, Hp, 4Hp)
                pl.BlockSpec(memory_space=pl.ANY),    # h0 (D, Bp, Hp) f32
                pl.BlockSpec(memory_space=pl.ANY),    # c0 (D, Bp, Hp) f32
            ],
            out_specs=[
                pl.BlockSpec((None, Tc, Bp, Hp), seq_map),   # lane-dense output slab
                pl.BlockSpec((None, Bp, Hp), state_map),     # final h
                pl.BlockSpec((None, Bp, Hp), state_map),     # final c
            ],
            scratch_shapes=[
                pltpu.VMEM((Hp, 4 * Hp), whh_all.dtype),     # resident weight
                pltpu.VMEM((Bp, Hp), jnp.float32),           # h state (f32)
                pltpu.VMEM((Bp, Hp), jnp.float32),           # c state (f32)
                pltpu.SemaphoreType.DMA((3,)),
            ]),
        compiler_params=pltpu.CompilerParams(
            # directions are independent (both TensorCores on v7x); time is a
            # sequential recurrence.
            dimension_semantics=("parallel", "arbitrary"),
            vmem_limit_bytes=plan.vmem_limit_bytes),
    )(rev_flags, xw, whh_all, h0, c0)
    return out, hN, cN


# ----------------------------------------------------------------------------
# Pure-JAX reference (mirrors the PyTorch AutogradRNN / LSTMCell math).
# ----------------------------------------------------------------------------
def lstm_layer_ref(x, w_ih, w_hh, b_ih, b_hh, h0, c0, *, reverse=False):
    w_hh_symm = _symm_wwt_hh(w_hh)
    if reverse:
        x = x[::-1]

    def step(carry, x_t):
        h, c = carry
        gates = x_t @ w_ih.T + b_ih + h @ w_hh_symm.T + b_hh
        i, f, g, o = jnp.split(gates, 4, axis=1)
        i = jax.nn.sigmoid(i)
        f = jax.nn.sigmoid(f)
        g = jnp.tanh(g)
        o = jax.nn.sigmoid(o)
        c = f * c + i * g
        h = o * jnp.tanh(c)
        return (h, c), h

    (h_n, c_n), out = lax.scan(step, (h0, c0), x)
    if reverse:
        out = out[::-1]
    return out, h_n, c_n


# ----------------------------------------------------------------------------
# RNNBase-equivalent module (LSTM mode): parameter init + stacked/bidir glue.
# ----------------------------------------------------------------------------
class SymmLSTM:
    def __init__(self, input_size, hidden_size, num_layers=1, bias=True,
                 batch_first=False, dropout=0.0, bidirectional=False, key=None,
                 dtype=jnp.float32, compute_dtype=jnp.bfloat16,
                 time_chunk=None, vmem_limit_bytes=None):
        assert bias, "bias=True is the module default and is what we implement"
        # TODO(synk): inter-layer dropout (dropout>0) is not implemented.
        assert dropout == 0.0, "dropout is not implemented"
        self.input_size = input_size
        self.hidden_size = hidden_size
        self.num_layers = num_layers
        self.batch_first = batch_first
        self.bidirectional = bidirectional
        self.num_directions = 2 if bidirectional else 1
        self.compute_dtype = compute_dtype      # bf16 MXU path by default
        self.time_chunk = time_chunk            # None => auto-size from VMEM
        self.vmem_limit_bytes = vmem_limit_bytes
        gate_size = 4 * hidden_size
        stdv = 1.0 / math.sqrt(hidden_size)
        if key is None:
            key = jax.random.PRNGKey(0)

        self.params = []  # (w_ih, w_hh, b_ih, b_hh) per (layer, direction)
        for layer in range(num_layers):
            for _direction in range(self.num_directions):
                layer_input = (input_size if layer == 0
                               else hidden_size * self.num_directions)
                key, k1, k2, k3, k4 = jax.random.split(key, 5)
                w_ih = jax.random.uniform(k1, (gate_size, layer_input),
                                          dtype, -stdv, stdv)
                w_hh = jax.random.uniform(k2, (gate_size, hidden_size),
                                          dtype, -stdv, stdv)
                b_ih = jax.random.uniform(k3, (gate_size,), dtype, -stdv, stdv)
                b_hh = jax.random.uniform(k4, (gate_size,), dtype, -stdv, stdv)
                self.params.append((w_ih, w_hh, b_ih, b_hh))

    # -- forward ---------------------------------------------------------
    def __call__(self, x, hx=None, *, use_pallas=True):
        """x: (T,B,I) if batch_first=False else (B,T,I).
        Returns (output, (h_n, c_n)) exactly like torch's RNNBase.forward."""
        # TODO(synk): PackedSequence / variable per-step batch sizes not implemented.
        if self.batch_first:
            x = jnp.swapaxes(x, 0, 1)
        T, B, _ = x.shape
        H = self.hidden_size
        total = self.num_layers * self.num_directions
        if hx is None:
            h0 = jnp.zeros((total, B, H), x.dtype)
            c0 = jnp.zeros((total, B, H), x.dtype)
        else:
            h0, c0 = hx

        if use_pallas:
            output, h_n, c_n = self._forward_pallas(x, h0, c0)
        else:
            output, h_n, c_n = self._forward_ref(x, h0, c0)

        if self.batch_first:
            output = jnp.swapaxes(output, 0, 1)
        return output, (h_n, c_n)

    def _forward_pallas(self, x, h0, c0):
        T, B, _ = x.shape
        H, D = self.hidden_size, self.num_directions
        cd = self.compute_dtype
        plan = _plan(T, B, H, cd, x.dtype,
                     time_chunk=self.time_chunk,
                     vmem_limit_bytes=self.vmem_limit_bytes)
        rev_flags = jnp.arange(D, dtype=jnp.int32)   # direction 1 runs reversed

        prev_pad = None
        next_h, next_c = [], []
        for layer in range(self.num_layers):
            params = self.params[layer * D:(layer + 1) * D]
            w_ih_all = jnp.stack([p[0] for p in params])          # (D, 4H, in)
            bias_all = jnp.stack([p[2] + p[3] for p in params])   # (D, 4H)
            whh_all = jnp.stack([_prep_whhT(p[1], plan.Hp, cd) for p in params])

            if layer == 0:
                xw = _project_from_input(x, w_ih_all, bias_all, plan, cd)
            else:
                xw = _project_from_padded(prev_pad, w_ih_all, bias_all, H,
                                          plan, cd)

            h0_l = _pad_state(h0[layer * D:(layer + 1) * D], plan.Bp, plan.Hp)
            c0_l = _pad_state(c0[layer * D:(layer + 1) * D], plan.Bp, plan.Hp)

            out_pad, hN, cN = _lstm_recurrence(xw, whh_all, h0_l, c0_l,
                                               rev_flags, plan, T=T,
                                               out_dtype=x.dtype)
            prev_pad = out_pad
            next_h.append(hN[:, :B, :H])
            next_c.append(cN[:, :B, :H])

        # Unpad / concatenate directions only once, at the very end.
        outs = [prev_pad[d, :T, :B, :H] for d in range(D)]
        output = outs[0] if D == 1 else jnp.concatenate(outs, axis=-1)
        h_n = jnp.concatenate(next_h, axis=0).astype(x.dtype)
        c_n = jnp.concatenate(next_c, axis=0).astype(x.dtype)
        return output, h_n, c_n

    def _forward_ref(self, x, h0, c0):
        D = self.num_directions
        inp = x
        next_h, next_c = [], []
        for layer in range(self.num_layers):
            outs = []
            for direction in range(D):
                l = layer * D + direction
                w_ih, w_hh, b_ih, b_hh = self.params[l]
                out, h_n, c_n = lstm_layer_ref(inp, w_ih, w_hh, b_ih, b_hh,
                                               h0[l], c0[l],
                                               reverse=(direction == 1))
                outs.append(out)
                next_h.append(h_n)
                next_c.append(c_n)
            inp = outs[0] if D == 1 else jnp.concatenate(outs, axis=-1)
        return inp, jnp.stack(next_h, 0), jnp.stack(next_c, 0)


# ----------------------------------------------------------------------------
if __name__ == "__main__":
    key = jax.random.PRNGKey(0)
    k_x, k_p1, k_p2, k_p3 = jax.random.split(key, 4)

    T, B, I, H = 8, 8, 16, 32
    x = jax.random.normal(k_x, (T, B, I), jnp.float32)

    # Config 1: default RNNBase('LSTM', 16, 32) — 1 layer, unidirectional.
    # Strict f32 compute path for a tight numerical check against the reference.
    model = SymmLSTM(I, H, num_layers=1, bidirectional=False, key=k_p1,
                     compute_dtype=jnp.float32)
    out, (h_n, c_n) = model(x, use_pallas=True)
    out = jax.block_until_ready(out)
    out_ref, (h_ref, c_ref) = model(x, use_pallas=False)
    assert out.shape == (T, B, H) and h_n.shape == (1, B, H)
    assert jnp.allclose(out, out_ref, atol=1e-4, rtol=1e-4)
    assert jnp.allclose(h_n, h_ref, atol=1e-4, rtol=1e-4)
    assert jnp.allclose(c_n, c_ref, atol=1e-4, rtol=1e-4)

    # Config 2: stacked + bidirectional; explicit time_chunk=3 exercises
    # multi-chunk state carry, the tail-timestep mask, the fused-direction
    # grid and the in-kernel reverse traversal.  Strict f32 path.
    model2 = SymmLSTM(I, H, num_layers=2, bidirectional=True, key=k_p2,
                      compute_dtype=jnp.float32, time_chunk=3)
    out2, (h2, c2) = model2(x, use_pallas=True)
    out2 = jax.block_until_ready(out2)
    out2_ref, (h2_ref, c2_ref) = model2(x, use_pallas=False)
    assert out2.shape == (T, B, 2 * H) and h2.shape == (4, B, H)
    assert jnp.allclose(out2, out2_ref, atol=1e-4, rtol=1e-4)
    assert jnp.allclose(h2, h2_ref, atol=1e-4, rtol=1e-4)
    assert jnp.allclose(c2, c2_ref, atol=1e-4, rtol=1e-4)

    # Config 3: default bf16 compute path (bf16 MXU operands + bf16 gate slab,
    # f32 accumulation and f32 cell/hidden state) — loose check vs f32 ref.
    model3 = SymmLSTM(I, H, num_layers=1, bidirectional=True, key=k_p3)
    out3, (h3, c3) = model3(x, use_pallas=True)
    out3 = jax.block_until_ready(out3)
    out3_ref, (h3_ref, c3_ref) = model3(x, use_pallas=False)
    assert jnp.allclose(out3, out3_ref, atol=5e-2, rtol=5e-2)
    assert jnp.allclose(h3, h3_ref, atol=5e-2, rtol=5e-2)
    assert jnp.allclose(c3, c3_ref, atol=5e-2, rtol=5e-2)

    print("KERNEL_OK")
</pallas_src>

<mosaic_0001>
module attributes {stable_mosaic.version = 11 : i64} {
  func.func @_lstm_rec_kernel(%arg0: i32, %arg1: i32, %arg2: memref<1xi32, #tpu.memory_space<smem>>, %arg3: memref<1x8x8x512xf32, #tpu.memory_space<vmem>>, %arg4: memref<1x128x512xf32, #tpu.memory_space<any>>, %arg5: memref<1x8x128xf32, #tpu.memory_space<any>>, %arg6: memref<1x8x128xf32, #tpu.memory_space<any>>, %arg7: memref<1x8x8x128xf32, #tpu.memory_space<vmem>>, %arg8: memref<1x8x128xf32, #tpu.memory_space<vmem>>, %arg9: memref<1x8x128xf32, #tpu.memory_space<vmem>>, %arg10: memref<128x512xf32, #tpu.memory_space<vmem>>, %arg11: memref<8x128xf32, #tpu.memory_space<vmem>>, %arg12: memref<8x128xf32, #tpu.memory_space<vmem>>, %arg13: memref<3x!tpu.dma_semaphore, #tpu.memory_space<semaphore_mem>>) attributes {dimension_semantics = [#tpu.dimension_semantics<parallel>, #tpu.dimension_semantics<arbitrary>], iteration_bounds = array<i64: 1, 1>, scalar_prefetch = 1 : i64, scratch_operands = 4 : i64, tpu.core_type = #tpu.core_type<tc>, window_params = [{transform_indices = @transform_0, window_bounds = array<i64: 1, 8, 8, 512>}, {}, {}, {}, {transform_indices = @transform_4, window_bounds = array<i64: 1, 8, 8, 128>}, {transform_indices = @transform_5, window_bounds = array<i64: 1, 8, 128>}, {transform_indices = @transform_6, window_bounds = array<i64: 1, 8, 128>}]} {
    %0 = arith.index_cast %arg0 : i32 to index
    %1 = memref.load %arg2[%0] : memref<1xi32, #tpu.memory_space<smem>>
    %c0_i32 = arith.constant 0 : i32
    %2 = arith.cmpi eq, %arg1, %c0_i32 : i32
    %3 = arith.extui %2 : i1 to i32
    %c0_i32_0 = arith.constant 0 : i32
    %4 = arith.cmpi ne, %3, %c0_i32_0 : i32
    scf.if %4 {
      %c0_i32_191 = arith.constant 0 : i32
      %c0_i32_192 = arith.constant 0 : i32
      %c0_i32_193 = arith.constant 0 : i32
      %396 = tpu.memref_slice %arg4[%arg0, %c0_i32_192, %c0_i32_193] : memref<1x128x512xf32, #tpu.memory_space<any>> -> memref<1x128x512xf32, #tpu.memory_space<any>>
      %397 = tpu.memref_squeeze %396 : memref<1x128x512xf32, #tpu.memory_space<any>> -> memref<128x512xf32, #tpu.memory_space<any>>
      %398 = tpu.memref_slice %arg13[%c0_i32_191] : memref<3x!tpu.dma_semaphore, #tpu.memory_space<semaphore_mem>> -> memref<1x!tpu.dma_semaphore, #tpu.memory_space<semaphore_mem>>
      %399 = tpu.memref_squeeze %398 : memref<1x!tpu.dma_semaphore, #tpu.memory_space<semaphore_mem>> -> memref<!tpu.dma_semaphore, #tpu.memory_space<semaphore_mem>>
      tpu.enqueue_dma source(%397 : memref<128x512xf32, #tpu.memory_space<any>>) target(%arg10 : memref<128x512xf32, #tpu.memory_space<vmem>>) target_semaphore(%399 : memref<!tpu.dma_semaphore, #tpu.memory_space<semaphore_mem>>)
      %c1_i32_194 = arith.constant 1 : i32
      %c0_i32_195 = arith.constant 0 : i32
      %c0_i32_196 = arith.constant 0 : i32
      %400 = tpu.memref_slice %arg5[%arg0, %c0_i32_195, %c0_i32_196] : memref<1x8x128xf32, #tpu.memory_space<any>> -> memref<1x8x128xf32, #tpu.memory_space<any>>
      %401 = tpu.memref_squeeze %400 : memref<1x8x128xf32, #tpu.memory_space<any>> -> memref<8x128xf32, #tpu.memory_space<any>>
      %402 = tpu.memref_slice %arg13[%c1_i32_194] : memref<3x!tpu.dma_semaphore, #tpu.memory_space<semaphore_mem>> -> memref<1x!tpu.dma_semaphore, #tpu.memory_space<semaphore_mem>>
      %403 = tpu.memref_squeeze %402 : memref<1x!tpu.dma_semaphore, #tpu.memory_space<semaphore_mem>> -> memref<!tpu.dma_semaphore, #tpu.memory_space<semaphore_mem>>
      tpu.enqueue_dma source(%401 : memref<8x128xf32, #tpu.memory_space<any>>) target(%arg11 : memref<8x128xf32, #tpu.memory_space<vmem>>) target_semaphore(%403 : memref<!tpu.dma_semaphore, #tpu.memory_space<semaphore_mem>>)
      %c2_i32_197 = arith.constant 2 : i32
      %c0_i32_198 = arith.constant 0 : i32
      %c0_i32_199 = arith.constant 0 : i32
      %404 = tpu.memref_slice %arg6[%arg0, %c0_i32_198, %c0_i32_199] : memref<1x8x128xf32, #tpu.memory_space<any>> -> memref<1x8x128xf32, #tpu.memory_space<any>>
      %405 = tpu.memref_squeeze %404 : memref<1x8x128xf32, #tpu.memory_space<any>> -> memref<8x128xf32, #tpu.memory_space<any>>
      %406 = tpu.memref_slice %arg13[%c2_i32_197] : memref<3x!tpu.dma_semaphore, #tpu.memory_space<semaphore_mem>> -> memref<1x!tpu.dma_semaphore, #tpu.memory_space<semaphore_mem>>
      %407 = tpu.memref_squeeze %406 : memref<1x!tpu.dma_semaphore, #tpu.memory_space<semaphore_mem>> -> memref<!tpu.dma_semaphore, #tpu.memory_space<semaphore_mem>>
      tpu.enqueue_dma source(%405 : memref<8x128xf32, #tpu.memory_space<any>>) target(%arg12 : memref<8x128xf32, #tpu.memory_space<vmem>>) target_semaphore(%407 : memref<!tpu.dma_semaphore, #tpu.memory_space<semaphore_mem>>)
      %c0_i32_200 = arith.constant 0 : i32
      %c0_i32_201 = arith.constant 0 : i32
      %c0_i32_202 = arith.constant 0 : i32
      %408 = tpu.memref_slice %arg4[%arg0, %c0_i32_201, %c0_i32_202] : memref<1x128x512xf32, #tpu.memory_space<any>> -> memref<1x128x512xf32, #tpu.memory_space<any>>
      %409 = tpu.memref_squeeze %408 : memref<1x128x512xf32, #tpu.memory_space<any>> -> memref<128x512xf32, #tpu.memory_space<any>>
      %410 = tpu.memref_slice %arg13[%c0_i32_200] : memref<3x!tpu.dma_semaphore, #tpu.memory_space<semaphore_mem>> -> memref<1x!tpu.dma_semaphore, #tpu.memory_space<semaphore_mem>>
      %411 = tpu.memref_squeeze %410 : memref<1x!tpu.dma_semaphore, #tpu.memory_space<semaphore_mem>> -> memref<!tpu.dma_semaphore, #tpu.memory_space<semaphore_mem>>
      tpu.wait_dma2 semaphore(%411 : memref<!tpu.dma_semaphore, #tpu.memory_space<semaphore_mem>>) src(%409 : memref<128x512xf32, #tpu.memory_space<any>>) dst(%arg10 : memref<128x512xf32, #tpu.memory_space<vmem>>)
      %c1_i32_203 = arith.constant 1 : i32
      %c0_i32_204 = arith.constant 0 : i32
      %c0_i32_205 = arith.constant 0 : i32
      %412 = tpu.memref_slice %arg5[%arg0, %c0_i32_204, %c0_i32_205] : memref<1x8x128xf32, #tpu.memory_space<any>> -> memref<1x8x128xf32, #tpu.memory_space<any>>
      %413 = tpu.memref_squeeze %412 : memref<1x8x128xf32, #tpu.memory_space<any>> -> memref<8x128xf32, #tpu.memory_space<any>>
      %414 = tpu.memref_slice %arg13[%c1_i32_203] : memref<3x!tpu.dma_semaphore, #tpu.memory_space<semaphore_mem>> -> memref<1x!tpu.dma_semaphore, #tpu.memory_space<semaphore_mem>>
      %415 = tpu.memref_squeeze %414 : memref<1x!tpu.dma_semaphore, #tpu.memory_space<semaphore_mem>> -> memref<!tpu.dma_semaphore, #tpu.memory_space<semaphore_mem>>
      tpu.wait_dma2 semaphore(%415 : memref<!tpu.dma_semaphore, #tpu.memory_space<semaphore_mem>>) src(%413 : memref<8x128xf32, #tpu.memory_space<any>>) dst(%arg11 : memref<8x128xf32, #tpu.memory_space<vmem>>)
      %c2_i32_206 = arith.constant 2 : i32
      %c0_i32_207 = arith.constant 0 : i32
      %c0_i32_208 = arith.constant 0 : i32
      %416 = tpu.memref_slice %arg6[%arg0, %c0_i32_207, %c0_i32_208] : memref<1x8x128xf32, #tpu.memory_space<any>> -> memref<1x8x128xf32, #tpu.memory_space<any>>
      %417 = tpu.memref_squeeze %416 : memref<1x8x128xf32, #tpu.memory_space<any>> -> memref<8x128xf32, #tpu.memory_space<any>>
      %418 = tpu.memref_slice %arg13[%c2_i32_206] : memref<3x!tpu.dma_semaphore, #tpu.memory_space<semaphore_mem>> -> memref<1x!tpu.dma_semaphore, #tpu.memory_space<semaphore_mem>>
      %419 = tpu.memref_squeeze %418 : memref<1x!tpu.dma_semaphore, #tpu.memory_space<semaphore_mem>> -> memref<!tpu.dma_semaphore, #tpu.memory_space<semaphore_mem>>
      tpu.wait_dma2 semaphore(%419 : memref<!tpu.dma_semaphore, #tpu.memory_space<semaphore_mem>>) src(%417 : memref<8x128xf32, #tpu.memory_space<any>>) dst(%arg12 : memref<8x128xf32, #tpu.memory_space<vmem>>)
    } else {
    }
    %c0 = arith.constant 0 : index
    %c0_1 = arith.constant 0 : index
    %5 = vector.load %arg11[%c0, %c0_1] : memref<8x128xf32, #tpu.memory_space<vmem>>, vector<8x128xf32>
    %c0_2 = arith.constant 0 : index
    %c0_3 = arith.constant 0 : index
    %6 = vector.load %arg12[%c0_2, %c0_3] : memref<8x128xf32, #tpu.memory_space<vmem>>, vector<8x128xf32>
    %c0_i32_4 = arith.constant 0 : i32
    %c2_i32 = arith.constant 2 : i32
    %7 = arith.muli %c2_i32, %c0_i32_4 : i32
    %c7_i32 = arith.constant 7 : i32
    %8 = arith.subi %c7_i32, %7 : i32
    %9 = arith.muli %1, %8 : i32
    %10 = arith.addi %c0_i32_4, %9 : i32
    %c0_5 = arith.constant 0 : index
    %11 = arith.index_cast %10 : i32 to index
    %c0_6 = arith.constant 0 : index
    %c0_7 = arith.constant 0 : index
    %12 = vector.load %arg3[%c0_5, %11, %c0_6, %c0_7] : memref<1x8x8x512xf32, #tpu.memory_space<vmem>>, vector<1x1x8x512xf32>
    %13 = vector.shape_cast %12 : vector<1x1x8x512xf32> to vector<8x512xf32>
    %14 = vector.extract_strided_slice %13 {offsets = [0, 0], sizes = [8, 128], strides = [1, 1]} : vector<8x512xf32> to vector<8x128xf32>
    %c0_8 = arith.constant 0 : index
    %c0_9 = arith.constant 0 : index
    %15 = vector.load %arg10[%c0_8, %c0_9] : memref<128x512xf32, #tpu.memory_space<vmem>>, vector<128x128xf32>
    %cst = arith.constant dense<0.000000e+00> : vector<8x128xf32>
    %16 = tpu.matmul %5, %15, %cst {dimension_numbers = #tpu.dot_dimension_numbers<[1], [0], [0], [1], [0, 0, 1, 1], [], []>} : vector<8x128xf32>, vector<128x128xf32>, vector<8x128xf32> -> vector<8x128xf32>
    %17 = arith.addf %14, %16 : vector<8x128xf32>
    %18 = arith.negf %17 : vector<8x128xf32>
    %19 = math.exp %18 : vector<8x128xf32>
    %cst_10 = arith.constant 1.000000e+00 : f32
    %20 = vector.broadcast %cst_10 : f32 to vector<8x128xf32>
    %21 = arith.addf %20, %19 : vector<8x128xf32>
    %22 = arith.divf %20, %21 : vector<8x128xf32>
    %23 = vector.extract_strided_slice %13 {offsets = [0, 128], sizes = [8, 128], strides = [1, 1]} : vector<8x512xf32> to vector<8x128xf32>
    %c0_11 = arith.constant 0 : index
    %c128 = arith.constant 128 : index
    %24 = vector.load %arg10[%c0_11, %c128] : memref<128x512xf32, #tpu.memory_space<vmem>>, vector<128x128xf32>
    %cst_12 = arith.constant dense<0.000000e+00> : vector<8x128xf32>
    %25 = tpu.matmul %5, %24, %cst_12 {dimension_numbers = #tpu.dot_dimension_numbers<[1], [0], [0], [1], [0, 0, 1, 1], [], []>} : vector<8x128xf32>, vector<128x128xf32>, vector<8x128xf32> -> vector<8x128xf32>
    %26 = arith.addf %23, %25 : vector<8x128xf32>
    %27 = arith.negf %26 : vector<8x128xf32>
    %28 = math.exp %27 : vector<8x128xf32>
    %cst_13 = arith.constant 1.000000e+00 : f32
    %29 = vector.broadcast %cst_13 : f32 to vector<8x128xf32>
    %30 = arith.addf %29, %28 : vector<8x128xf32>
    %31 = arith.divf %29, %30 : vector<8x128xf32>
    %32 = vector.extract_strided_slice %13 {offsets = [0, 256], sizes = [8, 128], strides = [1, 1]} : vector<8x512xf32> to vector<8x128xf32>
    %c0_14 = arith.constant 0 : index
    %c256 = arith.constant 256 : index
    %33 = vector.load %arg10[%c0_14, %c256] : memref<128x512xf32, #tpu.memory_space<vmem>>, vector<128x128xf32>
    %cst_15 = arith.constant dense<0.000000e+00> : vector<8x128xf32>
    %34 = tpu.matmul %5, %33, %cst_15 {dimension_numbers = #tpu.dot_dimension_numbers<[1], [0], [0], [1], [0, 0, 1, 1], [], []>} : vector<8x128xf32>, vector<128x128xf32>, vector<8x128xf32> -> vector<8x128xf32>
    %35 = arith.addf %32, %34 : vector<8x128xf32>
    %36 = math.tanh %35 : vector<8x128xf32>
    %37 = vector.extract_strided_slice %13 {offsets = [0, 384], sizes = [8, 128], strides = [1, 1]} : vector<8x512xf32> to vector<8x128xf32>
    %c0_16 = arith.constant 0 : index
    %c384 = arith.constant 384 : index
    %38 = vector.load %arg10[%c0_16, %c384] : memref<128x512xf32, #tpu.memory_space<vmem>>, vector<128x128xf32>
    %cst_17 = arith.constant dense<0.000000e+00> : vector<8x128xf32>
    %39 = tpu.matmul %5, %38, %cst_17 {dimension_numbers = #tpu.dot_dimension_numbers<[1], [0], [0], [1], [0, 0, 1, 1], [], []>} : vector<8x128xf32>, vector<128x128xf32>, vector<8x128xf32> -> vector<8x128xf32>
    %40 = arith.addf %37, %39 : vector<8x128xf32>
    %41 = arith.negf %40 : vector<8x128xf32>
    %42 = math.exp %41 : vector<8x128xf32>
    %cst_18 = arith.constant 1.000000e+00 : f32
    %43 = vector.broadcast %cst_18 : f32 to vector<8x128xf32>
    %44 = arith.addf %43, %42 : vector<8x128xf32>
    %45 = arith.divf %43, %44 : vector<8x128xf32>
    %46 = arith.mulf %31, %6 : vector<8x128xf32>
    %47 = arith.mulf %22, %36 : vector<8x128xf32>
    %48 = arith.addf %46, %47 : vector<8x128xf32>
    %49 = math.tanh %48 : vector<8x128xf32>
    %50 = arith.mulf %45, %49 : vector<8x128xf32>
    %c0_19 = arith.constant 0 : index
    %51 = arith.index_cast %10 : i32 to index
    %c0_20 = arith.constant 0 : index
    %c0_21 = arith.constant 0 : index
    %52 = vector.load %arg7[%c0_19, %51, %c0_20, %c0_21] : memref<1x8x8x128xf32, #tpu.memory_space<vmem>>, vector<1x1x8x128xf32>
    %53 = vector.shape_cast %52 : vector<1x1x8x128xf32> to vector<8x128xf32>
    %54 = vector.shape_cast %50 : vector<8x128xf32> to vector<1x1x8x128xf32>
    tpu.vector_store %arg7[%c0_19, %51, %c0_20, %c0_21], %54 {strides = array<i32>} : memref<1x8x8x128xf32, #tpu.memory_space<vmem>>, vector<1x1x8x128xf32>,
    %c1_i32 = arith.constant 1 : i32
    %c2_i32_22 = arith.constant 2 : i32
    %55 = arith.muli %c2_i32_22, %c1_i32 : i32
    %c7_i32_23 = arith.constant 7 : i32
    %56 = arith.subi %c7_i32_23, %55 : i32
    %57 = arith.muli %1, %56 : i32
    %58 = arith.addi %c1_i32, %57 : i32
    %c0_24 = arith.constant 0 : index
    %59 = arith.index_cast %58 : i32 to index
    %c0_25 = arith.constant 0 : index
    %c0_26 = arith.constant 0 : index
    %60 = vector.load %arg3[%c0_24, %59, %c0_25, %c0_26] : memref<1x8x8x512xf32, #tpu.memory_space<vmem>>, vector<1x1x8x512xf32>
    %61 = vector.shape_cast %60 : vector<1x1x8x512xf32> to vector<8x512xf32>
    %62 = vector.extract_strided_slice %61 {offsets = [0, 0], sizes = [8, 128], strides = [1, 1]} : vector<8x512xf32> to vector<8x128xf32>
    %c0_27 = arith.constant 0 : index
    %c0_28 = arith.constant 0 : index
    %63 = vector.load %arg10[%c0_27, %c0_28] : memref<128x512xf32, #tpu.memory_space<vmem>>, vector<128x128xf32>
    %cst_29 = arith.constant dense<0.000000e+00> : vector<8x128xf32>
    %64 = tpu.matmul %50, %63, %cst_29 {dimension_numbers = #tpu.dot_dimension_numbers<[1], [0], [0], [1], [0, 0, 1, 1], [], []>} : vector<8x128xf32>, vector<128x128xf32>, vector<8x128xf32> -> vector<8x128xf32>
    %65 = arith.addf %62, %64 : vector<8x128xf32>
    %66 = arith.negf %65 : vector<8x128xf32>
    %67 = math.exp %66 : vector<8x128xf32>
    %cst_30 = arith.constant 1.000000e+00 : f32
    %68 = vector.broadcast %cst_30 : f32 to vector<8x128xf32>
    %69 = arith.addf %68, %67 : vector<8x128xf32>
    %70 = arith.divf %68, %69 : vector<8x128xf32>
    %71 = vector.extract_strided_slice %61 {offsets = [0, 128], sizes = [8, 128], strides = [1, 1]} : vector<8x512xf32> to vector<8x128xf32>
    %c0_31 = arith.constant 0 : index
    %c128_32 = arith.constant 128 : index
    %72 = vector.load %arg10[%c0_31, %c128_32] : memref<128x512xf32, #tpu.memory_space<vmem>>, vector<128x128xf32>
    %cst_33 = arith.constant dense<0.000000e+00> : vector<8x128xf32>
    %73 = tpu.matmul %50, %72, %cst_33 {dimension_numbers = #tpu.dot_dimension_numbers<[1], [0], [0], [1], [0, 0, 1, 1], [], []>} : vector<8x128xf32>, vector<128x128xf32>, vector<8x128xf32> -> vector<8x128xf32>
    %74 = arith.addf %71, %73 : vector<8x128xf32>
    %75 = arith.negf %74 : vector<8x128xf32>
    %76 = math.exp %75 : vector<8x128xf32>
    %cst_34 = arith.constant 1.000000e+00 : f32
    %77 = vector.broadcast %cst_34 : f32 to vector<8x128xf32>
    %78 = arith.addf %77, %76 : vector<8x128xf32>
    %79 = arith.divf %77, %78 : vector<8x128xf32>
    %80 = vector.extract_strided_slice %61 {offsets = [0, 256], sizes = [8, 128], strides = [1, 1]} : vector<8x512xf32> to vector<8x128xf32>
    %c0_35 = arith.constant 0 : index
    %c256_36 = arith.constant 256 : index
    %81 = vector.load %arg10[%c0_35, %c256_36] : memref<128x512xf32, #tpu.memory_space<vmem>>, vector<128x128xf32>
    %cst_37 = arith.constant dense<0.000000e+00> : vector<8x128xf32>
    %82 = tpu.matmul %50, %81, %cst_37 {dimension_numbers = #tpu.dot_dimension_numbers<[1], [0], [0], [1], [0, 0, 1, 1], [], []>} : vector<8x128xf32>, vector<128x128xf32>, vector<8x128xf32> -> vector<8x128xf32>
    %83 = arith.addf %80, %82 : vector<8x128xf32>
    %84 = math.tanh %83 : vector<8x128xf32>
    %85 = vector.extract_strided_slice %61 {offsets = [0, 384], sizes = [8, 128], strides = [1, 1]} : vector<8x512xf32> to vector<8x128xf32>
    %c0_38 = arith.constant 0 : index
    %c384_39 = arith.constant 384 : index
    %86 = vector.load %arg10[%c0_38, %c384_39] : memref<128x512xf32, #tpu.memory_space<vmem>>, vector<128x128xf32>
    %cst_40 = arith.constant dense<0.000000e+00> : vector<8x128xf32>
    %87 = tpu.matmul %50, %86, %cst_40 {dimension_numbers = #tpu.dot_dimension_numbers<[1], [0], [0], [1], [0, 0, 1, 1], [], []>} : vector<8x128xf32>, vector<128x128xf32>, vector<8x128xf32> -> vector<8x128xf32>
    %88 = arith.addf %85, %87 : vector<8x128xf32>
    %89 = arith.negf %88 : vector<8x128xf32>
    %90 = math.exp %89 : vector<8x128xf32>
    %cst_41 = arith.constant 1.000000e+00 : f32
    %91 = vector.broadcast %cst_41 : f32 to vector<8x128xf32>
    %92 = arith.addf %91, %90 : vector<8x128xf32>
    %93 = arith.divf %91, %92 : vector<8x128xf32>
    %94 = arith.mulf %79, %48 : vector<8x128xf32>
    %95 = arith.mulf %70, %84 : vector<8x128xf32>
    %96 = arith.addf %94, %95 : vector<8x128xf32>
    %97 = math.tanh %96 : vector<8x128xf32>
    %98 = arith.mulf %93, %97 : vector<8x128xf32>
    %c0_42 = arith.constant 0 : index
    %99 = arith.index_cast %58 : i32 to index
    %c0_43 = arith.constant 0 : index
    %c0_44 = arith.constant 0 : index
    %100 = vector.load %arg7[%c0_42, %99, %c0_43, %c0_44] : memref<1x8x8x128xf32, #tpu.memory_space<vmem>>, vector<1x1x8x128xf32>
    %101 = vector.shape_cast %100 : vector<1x1x8x128xf32> to vector<8x128xf32>
    %102 = vector.shape_cast %98 : vector<8x128xf32> to vector<1x1x8x128xf32>
    tpu.vector_store %arg7[%c0_42, %99, %c0_43, %c0_44], %102 {strides = array<i32>} : memref<1x8x8x128xf32, #tpu.memory_space<vmem>>, vector<1x1x8x128xf32>,
    %c2_i32_45 = arith.constant 2 : i32
    %c2_i32_46 = arith.constant 2 : i32
    %103 = arith.muli %c2_i32_46, %c2_i32_45 : i32
    %c7_i32_47 = arith.constant 7 : i32
    %104 = arith.subi %c7_i32_47, %103 : i32
    %105 = arith.muli %1, %104 : i32
    %106 = arith.addi %c2_i32_45, %105 : i32
    %c0_48 = arith.constant 0 : index
    %107 = arith.index_cast %106 : i32 to index
    %c0_49 = arith.constant 0 : index
    %c0_50 = arith.constant 0 : index
    %108 = vector.load %arg3[%c0_48, %107, %c0_49, %c0_50] : memref<1x8x8x512xf32, #tpu.memory_space<vmem>>, vector<1x1x8x512xf32>
    %109 = vector.shape_cast %108 : vector<1x1x8x512xf32> to vector<8x512xf32>
    %110 = vector.extract_strided_slice %109 {offsets = [0, 0], sizes = [8, 128], strides = [1, 1]} : vector<8x512xf32> to vector<8x128xf32>
    %c0_51 = arith.constant 0 : index
    %c0_52 = arith.constant 0 : index
    %111 = vector.load %arg10[%c0_51, %c0_52] : memref<128x512xf32, #tpu.memory_space<vmem>>, vector<128x128xf32>
    %cst_53 = arith.constant dense<0.000000e+00> : vector<8x128xf32>
    %112 = tpu.matmul %98, %111, %cst_53 {dimension_numbers = #tpu.dot_dimension_numbers<[1], [0], [0], [1], [0, 0, 1, 1], [], []>} : vector<8x128xf32>, vector<128x128xf32>, vector<8x128xf32> -> vector<8x128xf32>
    %113 = arith.addf %110, %112 : vector<8x128xf32>
    %114 = arith.negf %113 : vector<8x128xf32>
    %115 = math.exp %114 : vector<8x128xf32>
    %cst_54 = arith.constant 1.000000e+00 : f32
    %116 = vector.broadcast %cst_54 : f32 to vector<8x128xf32>
    %117 = arith.addf %116, %115 : vector<8x128xf32>
    %118 = arith.divf %116, %117 : vector<8x128xf32>
    %119 = vector.extract_strided_slice %109 {offsets = [0, 128], sizes = [8, 128], strides = [1, 1]} : vector<8x512xf32> to vector<8x128xf32>
    %c0_55 = arith.constant 0 : index
    %c128_56 = arith.constant 128 : index
    %120 = vector.load %arg10[%c0_55, %c128_56] : memref<128x512xf32, #tpu.memory_space<vmem>>, vector<128x128xf32>
    %cst_57 = arith.constant dense<0.000000e+00> : vector<8x128xf32>
    %121 = tpu.matmul %98, %120, %cst_57 {dimension_numbers = #tpu.dot_dimension_numbers<[1], [0], [0], [1], [0, 0, 1, 1], [], []>} : vector<8x128xf32>, vector<128x128xf32>, vector<8x128xf32> -> vector<8x128xf32>
    %122 = arith.addf %119, %121 : vector<8x128xf32>
    %123 = arith.negf %122 : vector<8x128xf32>
    %124 = math.exp %123 : vector<8x128xf32>
    %cst_58 = arith.constant 1.000000e+00 : f32
    %125 = vector.broadcast %cst_58 : f32 to vector<8x128xf32>
    %126 = arith.addf %125, %124 : vector<8x128xf32>
    %127 = arith.divf %125, %126 : vector<8x128xf32>
    %128 = vector.extract_strided_slice %109 {offsets = [0, 256], sizes = [8, 128], strides = [1, 1]} : vector<8x512xf32> to vector<8x128xf32>
    %c0_59 = arith.constant 0 : index
    %c256_60 = arith.constant 256 : index
    %129 = vector.load %arg10[%c0_59, %c256_60] : memref<128x512xf32, #tpu.memory_space<vmem>>, vector<128x128xf32>
    %cst_61 = arith.constant dense<0.000000e+00> : vector<8x128xf32>
    %130 = tpu.matmul %98, %129, %cst_61 {dimension_numbers = #tpu.dot_dimension_numbers<[1], [0], [0], [1], [0, 0, 1, 1], [], []>} : vector<8x128xf32>, vector<128x128xf32>, vector<8x128xf32> -> vector<8x128xf32>
    %131 = arith.addf %128, %130 : vector<8x128xf32>
    %132 = math.tanh %131 : vector<8x128xf32>
    %133 = vector.extract_strided_slice %109 {offsets = [0, 384], sizes = [8, 128], strides = [1, 1]} : vector<8x512xf32> to vector<8x128xf32>
    %c0_62 = arith.constant 0 : index
    %c384_63 = arith.constant 384 : index
    %134 = vector.load %arg10[%c0_62, %c384_63] : memref<128x512xf32, #tpu.memory_space<vmem>>, vector<128x128xf32>
    %cst_64 = arith.constant dense<0.000000e+00> : vector<8x128xf32>
    %135 = tpu.matmul %98, %134, %cst_64 {dimension_numbers = #tpu.dot_dimension_numbers<[1], [0], [0], [1], [0, 0, 1, 1], [], []>} : vector<8x128xf32>, vector<128x128xf32>, vector<8x128xf32> -> vector<8x128xf32>
    %136 = arith.addf %133, %135 : vector<8x128xf32>
    %137 = arith.negf %136 : vector<8x128xf32>
    %138 = math.exp %137 : vector<8x128xf32>
    %cst_65 = arith.constant 1.000000e+00 : f32
    %139 = vector.broadcast %cst_65 : f32 to vector<8x128xf32>
    %140 = arith.addf %139, %138 : vector<8x128xf32>
    %141 = arith.divf %139, %140 : vector<8x128xf32>
    %142 = arith.mulf %127, %96 : vector<8x128xf32>
    %143 = arith.mulf %118, %132 : vector<8x128xf32>
    %144 = arith.addf %142, %143 : vector<8x128xf32>
    %145 = math.tanh %144 : vector<8x128xf32>
    %146 = arith.mulf %141, %145 : vector<8x128xf32>
    %c0_66 = arith.constant 0 : index
    %147 = arith.index_cast %106 : i32 to index
    %c0_67 = arith.constant 0 : index
    %c0_68 = arith.constant 0 : index
    %148 = vector.load %arg7[%c0_66, %147, %c0_67, %c0_68] : memref<1x8x8x128xf32, #tpu.memory_space<vmem>>, vector<1x1x8x128xf32>
    %149 = vector.shape_cast %148 : vector<1x1x8x128xf32> to vector<8x128xf32>
    %150 = vector.shape_cast %146 : vector<8x128xf32> to vector<1x1x8x128xf32>
    tpu.vector_store %arg7[%c0_66, %147, %c0_67, %c0_68], %150 {strides = array<i32>} : memref<1x8x8x128xf32, #tpu.memory_space<vmem>>, vector<1x1x8x128xf32>,
    %c3_i32 = arith.constant 3 : i32
    %c2_i32_69 = arith.constant 2 : i32
    %151 = arith.muli %c2_i32_69, %c3_i32 : i32
    %c7_i32_70 = arith.constant 7 : i32
    %152 = arith.subi %c7_i32_70, %151 : i32
    %153 = arith.muli %1, %152 : i32
    %154 = arith.addi %c3_i32, %153 : i32
    %c0_71 = arith.constant 0 : index
    %155 = arith.index_cast %154 : i32 to index
    %c0_72 = arith.constant 0 : index
    %c0_73 = arith.constant 0 : index
    %156 = vector.load %arg3[%c0_71, %155, %c0_72, %c0_73] : memref<1x8x8x512xf32, #tpu.memory_space<vmem>>, vector<1x1x8x512xf32>
    %157 = vector.shape_cast %156 : vector<1x1x8x512xf32> to vector<8x512xf32>
    %158 = vector.extract_strided_slice %157 {offsets = [0, 0], sizes = [8, 128], strides = [1, 1]} : vector<8x512xf32> to vector<8x128xf32>
    %c0_74 = arith.constant 0 : index
    %c0_75 = arith.constant 0 : index
    %159 = vector.load %arg10[%c0_74, %c0_75] : memref<128x512xf32, #tpu.memory_space<vmem>>, vector<128x128xf32>
    %cst_76 = arith.constant dense<0.000000e+00> : vector<8x128xf32>
    %160 = tpu.matmul %146, %159, %cst_76 {dimension_numbers = #tpu.dot_dimension_numbers<[1], [0], [0], [1], [0, 0, 1, 1], [], []>} : vector<8x128xf32>, vector<128x128xf32>, vector<8x128xf32> -> vector<8x128xf32>
    %161 = arith.addf %158, %160 : vector<8x128xf32>
    %162 = arith.negf %161 : vector<8x128xf32>
    %163 = math.exp %162 : vector<8x128xf32>
    %cst_77 = arith.constant 1.000000e+00 : f32
    %164 = vector.broadcast %cst_77 : f32 to vector<8x128xf32>
    %165 = arith.addf %164, %163 : vector<8x128xf32>
    %166 = arith.divf %164, %165 : vector<8x128xf32>
    %167 = vector.extract_strided_slice %157 {offsets = [0, 128], sizes = [8, 128], strides = [1, 1]} : vector<8x512xf32> to vector<8x128xf32>
    %c0_78 = arith.constant 0 : index
    %c128_79 = arith.constant 128 : index
    %168 = vector.load %arg10[%c0_78, %c128_79] : memref<128x512xf32, #tpu.memory_space<vmem>>, vector<128x128xf32>
    %cst_80 = arith.constant dense<0.000000e+00> : vector<8x128xf32>
    %169 = tpu.matmul %146, %168, %cst_80 {dimension_numbers = #tpu.dot_dimension_numbers<[1], [0], [0], [1], [0, 0, 1, 1], [], []>} : vector<8x128xf32>, vector<128x128xf32>, vector<8x128xf32> -> vector<8x128xf32>
    %170 = arith.addf %167, %169 : vector<8x128xf32>
    %171 = arith.negf %170 : vector<8x128xf32>
    %172 = math.exp %171 : vector<8x128xf32>
    %cst_81 = arith.constant 1.000000e+00 : f32
    %173 = vector.broadcast %cst_81 : f32 to vector<8x128xf32>
    %174 = arith.addf %173, %172 : vector<8x128xf32>
    %175 = arith.divf %173, %174 : vector<8x128xf32>
    %176 = vector.extract_strided_slice %157 {offsets = [0, 256], sizes = [8, 128], strides = [1, 1]} : vector<8x512xf32> to vector<8x128xf32>
    %c0_82 = arith.constant 0 : index
    %c256_83 = arith.constant 256 : index
    %177 = vector.load %arg10[%c0_82, %c256_83] : memref<128x512xf32, #tpu.memory_space<vmem>>, vector<128x128xf32>
    %cst_84 = arith.constant dense<0.000000e+00> : vector<8x128xf32>
    %178 = tpu.matmul %146, %177, %cst_84 {dimension_numbers = #tpu.dot_dimension_numbers<[1], [0], [0], [1], [0, 0, 1, 1], [], []>} : vector<8x128xf32>, vector<128x128xf32>, vector<8x128xf32> -> vector<8x128xf32>
    %179 = arith.addf %176, %178 : vector<8x128xf32>
    %180 = math.tanh %179 : vector<8x128xf32>
    %181 = vector.extract_strided_slice %157 {offsets = [0, 384], sizes = [8, 128], strides = [1, 1]} : vector<8x512xf32> to vector<8x128xf32>
    %c0_85 = arith.constant 0 : index
    %c384_86 = arith.constant 384 : index
    %182 = vector.load %arg10[%c0_85, %c384_86] : memref<128x512xf32, #tpu.memory_space<vmem>>, vector<128x128xf32>
    %cst_87 = arith.constant dense<0.000000e+00> : vector<8x128xf32>
    %183 = tpu.matmul %146, %182, %cst_87 {dimension_numbers = #tpu.dot_dimension_numbers<[1], [0], [0], [1], [0, 0, 1, 1], [], []>} : vector<8x128xf32>, vector<128x128xf32>, vector<8x128xf32> -> vector<8x128xf32>
    %184 = arith.addf %181, %183 : vector<8x128xf32>
    %185 = arith.negf %184 : vector<8x128xf32>
    %186 = math.exp %185 : vector<8x128xf32>
    %cst_88 = arith.constant 1.000000e+00 : f32
    %187 = vector.broadcast %cst_88 : f32 to vector<8x128xf32>
    %188 = arith.addf %187, %186 : vector<8x128xf32>
    %189 = arith.divf %187, %188 : vector<8x128xf32>
    %190 = arith.mulf %175, %144 : vector<8x128xf32>
    %191 = arith.mulf %166, %180 : vector<8x128xf32>
    %192 = arith.addf %190, %191 : vector<8x128xf32>
    %193 = math.tanh %192 : vector<8x128xf32>
    %194 = arith.mulf %189, %193 : vector<8x128xf32>
    %c0_89 = arith.constant 0 : index
    %195 = arith.index_cast %154 : i32 to index
    %c0_90 = arith.constant 0 : index
    %c0_91 = arith.constant 0 : index
    %196 = vector.load %arg7[%c0_89, %195, %c0_90, %c0_91] : memref<1x8x8x128xf32, #tpu.memory_space<vmem>>, vector<1x1x8x128xf32>
    %197 = vector.shape_cast %196 : vector<1x1x8x128xf32> to vector<8x128xf32>
    %198 = vector.shape_cast %194 : vector<8x128xf32> to vector<1x1x8x128xf32>
    tpu.vector_store %arg7[%c0_89, %195, %c0_90, %c0_91], %198 {strides = array<i32>} : memref<1x8x8x128xf32, #tpu.memory_space<vmem>>, vector<1x1x8x128xf32>,
    %c4_i32 = arith.constant 4 : i32
    %c2_i32_92 = arith.constant 2 : i32
    %199 = arith.muli %c2_i32_92, %c4_i32 : i32
    %c7_i32_93 = arith.constant 7 : i32
    %200 = arith.subi %c7_i32_93, %199 : i32
    %201 = arith.muli %1, %200 : i32
    %202 = arith.addi %c4_i32, %201 : i32
    %c0_94 = arith.constant 0 : index
    %203 = arith.index_cast %202 : i32 to index
    %c0_95 = arith.constant 0 : index
    %c0_96 = arith.constant 0 : index
    %204 = vector.load %arg3[%c0_94, %203, %c0_95, %c0_96] : memref<1x8x8x512xf32, #tpu.memory_space<vmem>>, vector<1x1x8x512xf32>
    %205 = vector.shape_cast %204 : vector<1x1x8x512xf32> to vector<8x512xf32>
    %206 = vector.extract_strided_slice %205 {offsets = [0, 0], sizes = [8, 128], strides = [1, 1]} : vector<8x512xf32> to vector<8x128xf32>
    %c0_97 = arith.constant 0 : index
    %c0_98 = arith.constant 0 : index
    %207 = vector.load %arg10[%c0_97, %c0_98] : memref<128x512xf32, #tpu.memory_space<vmem>>, vector<128x128xf32>
    %cst_99 = arith.constant dense<0.000000e+00> : vector<8x128xf32>
    %208 = tpu.matmul %194, %207, %cst_99 {dimension_numbers = #tpu.dot_dimension_numbers<[1], [0], [0], [1], [0, 0, 1, 1], [], []>} : vector<8x128xf32>, vector<128x128xf32>, vector<8x128xf32> -> vector<8x128xf32>
    %209 = arith.addf %206, %208 : vector<8x128xf32>
    %210 = arith.negf %209 : vector<8x128xf32>
    %211 = math.exp %210 : vector<8x128xf32>
    %cst_100 = arith.constant 1.000000e+00 : f32
    %212 = vector.broadcast %cst_100 : f32 to vector<8x128xf32>
    %213 = arith.addf %212, %211 : vector<8x128xf32>
    %214 = arith.divf %212, %213 : vector<8x128xf32>
    %215 = vector.extract_strided_slice %205 {offsets = [0, 128], sizes = [8, 128], strides = [1, 1]} : vector<8x512xf32> to vector<8x128xf32>
    %c0_101 = arith.constant 0 : index
    %c128_102 = arith.constant 128 : index
    %216 = vector.load %arg10[%c0_101, %c128_102] : memref<128x512xf32, #tpu.memory_space<vmem>>, vector<128x128xf32>
    %cst_103 = arith.constant dense<0.000000e+00> : vector<8x128xf32>
    %217 = tpu.matmul %194, %216, %cst_103 {dimension_numbers = #tpu.dot_dimension_numbers<[1], [0], [0], [1], [0, 0, 1, 1], [], []>} : vector<8x128xf32>, vector<128x128xf32>, vector<8x128xf32> -> vector<8x128xf32>
    %218 = arith.addf %215, %217 : vector<8x128xf32>
    %219 = arith.negf %218 : vector<8x128xf32>
    %220 = math.exp %219 : vector<8x128xf32>
    %cst_104 = arith.constant 1.000000e+00 : f32
    %221 = vector.broadcast %cst_104 : f32 to vector<8x128xf32>
    %222 = arith.addf %221, %220 : vector<8x128xf32>
    %223 = arith.divf %221, %222 : vector<8x128xf32>
    %224 = vector.extract_strided_slice %205 {offsets = [0, 256], sizes = [8, 128], strides = [1, 1]} : vector<8x512xf32> to vector<8x128xf32>
    %c0_105 = arith.constant 0 : index
    %c256_106 = arith.constant 256 : index
    %225 = vector.load %arg10[%c0_105, %c256_106] : memref<128x512xf32, #tpu.memory_space<vmem>>, vector<128x128xf32>
    %cst_107 = arith.constant dense<0.000000e+00> : vector<8x128xf32>
    %226 = tpu.matmul %194, %225, %cst_107 {dimension_numbers = #tpu.dot_dimension_numbers<[1], [0], [0], [1], [0, 0, 1, 1], [], []>} : vector<8x128xf32>, vector<128x128xf32>, vector<8x128xf32> -> vector<8x128xf32>
    %227 = arith.addf %224, %226 : vector<8x128xf32>
    %228 = math.tanh %227 : vector<8x128xf32>
    %229 = vector.extract_strided_slice %205 {offsets = [0, 384], sizes = [8, 128], strides = [1, 1]} : vector<8x512xf32> to vector<8x128xf32>
    %c0_108 = arith.constant 0 : index
    %c384_109 = arith.constant 384 : index
    %230 = vector.load %arg10[%c0_108, %c384_109] : memref<128x512xf32, #tpu.memory_space<vmem>>, vector<128x128xf32>
    %cst_110 = arith.constant dense<0.000000e+00> : vector<8x128xf32>
    %231 = tpu.matmul %194, %230, %cst_110 {dimension_numbers = #tpu.dot_dimension_numbers<[1], [0], [0], [1], [0, 0, 1, 1], [], []>} : vector<8x128xf32>, vector<128x128xf32>, vector<8x128xf32> -> vector<8x128xf32>
    %232 = arith.addf %229, %231 : vector<8x128xf32>
    %233 = arith.negf %232 : vector<8x128xf32>
    %234 = math.exp %233 : vector<8x128xf32>
    %cst_111 = arith.constant 1.000000e+00 : f32
    %235 = vector.broadcast %cst_111 : f32 to vector<8x128xf32>
    %236 = arith.addf %235, %234 : vector<8x128xf32>
    %237 = arith.divf %235, %236 : vector<8x128xf32>
    %238 = arith.mulf %223, %192 : vector<8x128xf32>
    %239 = arith.mulf %214, %228 : vector<8x128xf32>
    %240 = arith.addf %238, %239 : vector<8x128xf32>
    %241 = math.tanh %240 : vector<8x128xf32>
    %242 = arith.mulf %237, %241 : vector<8x128xf32>
    %c0_112 = arith.constant 0 : index
    %243 = arith.index_cast %202 : i32 to index
    %c0_113 = arith.constant 0 : index
    %c0_114 = arith.constant 0 : index
    %244 = vector.load %arg7[%c0_112, %243, %c0_113, %c0_114] : memref<1x8x8x128xf32, #tpu.memory_space<vmem>>, vector<1x1x8x128xf32>
    %245 = vector.shape_cast %244 : vector<1x1x8x128xf32> to vector<8x128xf32>
    %246 = vector.shape_cast %242 : vector<8x128xf32> to vector<1x1x8x128xf32>
    tpu.vector_store %arg7[%c0_112, %243, %c0_113, %c0_114], %246 {strides = array<i32>} : memref<1x8x8x128xf32, #tpu.memory_space<vmem>>, vector<1x1x8x128xf32>,
    %c5_i32 = arith.constant 5 : i32
    %c2_i32_115 = arith.constant 2 : i32
    %247 = arith.muli %c2_i32_115, %c5_i32 : i32
    %c7_i32_116 = arith.constant 7 : i32
    %248 = arith.subi %c7_i32_116, %247 : i32
    %249 = arith.muli %1, %248 : i32
    %250 = arith.addi %c5_i32, %249 : i32
    %c0_117 = arith.constant 0 : index
    %251 = arith.index_cast %250 : i32 to index
    %c0_118 = arith.constant 0 : index
    %c0_119 = arith.constant 0 : index
    %252 = vector.load %arg3[%c0_117, %251, %c0_118, %c0_119] : memref<1x8x8x512xf32, #tpu.memory_space<vmem>>, vector<1x1x8x512xf32>
    %253 = vector.shape_cast %252 : vector<1x1x8x512xf32> to vector<8x512xf32>
    %254 = vector.extract_strided_slice %253 {offsets = [0, 0], sizes = [8, 128], strides = [1, 1]} : vector<8x512xf32> to vector<8x128xf32>
    %c0_120 = arith.constant 0 : index
    %c0_121 = arith.constant 0 : index
    %255 = vector.load %arg10[%c0_120, %c0_121] : memref<128x512xf32, #tpu.memory_space<vmem>>, vector<128x128xf32>
    %cst_122 = arith.constant dense<0.000000e+00> : vector<8x128xf32>
    %256 = tpu.matmul %242, %255, %cst_122 {dimension_numbers = #tpu.dot_dimension_numbers<[1], [0], [0], [1], [0, 0, 1, 1], [], []>} : vector<8x128xf32>, vector<128x128xf32>, vector<8x128xf32> -> vector<8x128xf32>
    %257 = arith.addf %254, %256 : vector<8x128xf32>
    %258 = arith.negf %257 : vector<8x128xf32>
    %259 = math.exp %258 : vector<8x128xf32>
    %cst_123 = arith.constant 1.000000e+00 : f32
    %260 = vector.broadcast %cst_123 : f32 to vector<8x128xf32>
    %261 = arith.addf %260, %259 : vector<8x128xf32>
    %262 = arith.divf %260, %261 : vector<8x128xf32>
    %263 = vector.extract_strided_slice %253 {offsets = [0, 128], sizes = [8, 128], strides = [1, 1]} : vector<8x512xf32> to vector<8x128xf32>
    %c0_124 = arith.constant 0 : index
    %c128_125 = arith.constant 128 : index
    %264 = vector.load %arg10[%c0_124, %c128_125] : memref<128x512xf32, #tpu.memory_space<vmem>>, vector<128x128xf32>
    %cst_126 = arith.constant dense<0.000000e+00> : vector<8x128xf32>
    %265 = tpu.matmul %242, %264, %cst_126 {dimension_numbers = #tpu.dot_dimension_numbers<[1], [0], [0], [1], [0, 0, 1, 1], [], []>} : vector<8x128xf32>, vector<128x128xf32>, vector<8x128xf32> -> vector<8x128xf32>
    %266 = arith.addf %263, %265 : vector<8x128xf32>
    %267 = arith.negf %266 : vector<8x128xf32>
    %268 = math.exp %267 : vector<8x128xf32>
    %cst_127 = arith.constant 1.000000e+00 : f32
    %269 = vector.broadcast %cst_127 : f32 to vector<8x128xf32>
    %270 = arith.addf %269, %268 : vector<8x128xf32>
    %271 = arith.divf %269, %270 : vector<8x128xf32>
    %272 = vector.extract_strided_slice %253 {offsets = [0, 256], sizes = [8, 128], strides = [1, 1]} : vector<8x512xf32> to vector<8x128xf32>
    %c0_128 = arith.constant 0 : index
    %c256_129 = arith.constant 256 : index
    %273 = vector.load %arg10[%c0_128, %c256_129] : memref<128x512xf32, #tpu.memory_space<vmem>>, vector<128x128xf32>
    %cst_130 = arith.constant dense<0.000000e+00> : vector<8x128xf32>
    %274 = tpu.matmul %242, %273, %cst_130 {dimension_numbers = #tpu.dot_dimension_numbers<[1], [0], [0], [1], [0, 0, 1, 1], [], []>} : vector<8x128xf32>, vector<128x128xf32>, vector<8x128xf32> -> vector<8x128xf32>
    %275 = arith.addf %272, %274 : vector<8x128xf32>
    %276 = math.tanh %275 : vector<8x128xf32>
    %277 = vector.extract_strided_slice %253 {offsets = [0, 384], sizes = [8, 128], strides = [1, 1]} : vector<8x512xf32> to vector<8x128xf32>
    %c0_131 = arith.constant 0 : index
    %c384_132 = arith.constant 384 : index
    %278 = vector.load %arg10[%c0_131, %c384_132] : memref<128x512xf32, #tpu.memory_space<vmem>>, vector<128x128xf32>
    %cst_133 = arith.constant dense<0.000000e+00> : vector<8x128xf32>
    %279 = tpu.matmul %242, %278, %cst_133 {dimension_numbers = #tpu.dot_dimension_numbers<[1], [0], [0], [1], [0, 0, 1, 1], [], []>} : vector<8x128xf32>, vector<128x128xf32>, vector<8x128xf32> -> vector<8x128xf32>
    %280 = arith.addf %277, %279 : vector<8x128xf32>
    %281 = arith.negf %280 : vector<8x128xf32>
    %282 = math.exp %281 : vector<8x128xf32>
    %cst_134 = arith.constant 1.000000e+00 : f32
    %283 = vector.broadcast %cst_134 : f32 to vector<8x128xf32>
    %284 = arith.addf %283, %282 : vector<8x128xf32>
    %285 = arith.divf %283, %284 : vector<8x128xf32>
    %286 = arith.mulf %271, %240 : vector<8x128xf32>
    %287 = arith.mulf %262, %276 : vector<8x128xf32>
    %288 = arith.addf %286, %287 : vector<8x128xf32>
    %289 = math.tanh %288 : vector<8x128xf32>
    %290 = arith.mulf %285, %289 : vector<8x128xf32>
    %c0_135 = arith.constant 0 : index
    %291 = arith.index_cast %250 : i32 to index
    %c0_136 = arith.constant 0 : index
    %c0_137 = arith.constant 0 : index
    %292 = vector.load %arg7[%c0_135, %291, %c0_136, %c0_137] : memref<1x8x8x128xf32, #tpu.memory_space<vmem>>, vector<1x1x8x128xf32>
    %293 = vector.shape_cast %292 : vector<1x1x8x128xf32> to vector<8x128xf32>
    %294 = vector.shape_cast %290 : vector<8x128xf32> to vector<1x1x8x128xf32>
    tpu.vector_store %arg7[%c0_135, %291, %c0_136, %c0_137], %294 {strides = array<i32>} : memref<1x8x8x128xf32, #tpu.memory_space<vmem>>, vector<1x1x8x128xf32>,
    %c6_i32 = arith.constant 6 : i32
    %c2_i32_138 = arith.constant 2 : i32
    %295 = arith.muli %c2_i32_138, %c6_i32 : i32
    %c7_i32_139 = arith.constant 7 : i32
    %296 = arith.subi %c7_i32_139, %295 : i32
    %297 = arith.muli %1, %296 : i32
    %298 = arith.addi %c6_i32, %297 : i32
    %c0_140 = arith.constant 0 : index
    %299 = arith.index_cast %298 : i32 to index
    %c0_141 = arith.constant 0 : index
    %c0_142 = arith.constant 0 : index
    %300 = vector.load %arg3[%c0_140, %299, %c0_141, %c0_142] : memref<1x8x8x512xf32, #tpu.memory_space<vmem>>, vector<1x1x8x512xf32>
    %301 = vector.shape_cast %300 : vector<1x1x8x512xf32> to vector<8x512xf32>
    %302 = vector.extract_strided_slice %301 {offsets = [0, 0], sizes = [8, 128], strides = [1, 1]} : vector<8x512xf32> to vector<8x128xf32>
    %c0_143 = arith.constant 0 : index
    %c0_144 = arith.constant 0 : index
    %303 = vector.load %arg10[%c0_143, %c0_144] : memref<128x512xf32, #tpu.memory_space<vmem>>, vector<128x128xf32>
    %cst_145 = arith.constant dense<0.000000e+00> : vector<8x128xf32>
    %304 = tpu.matmul %290, %303, %cst_145 {dimension_numbers = #tpu.dot_dimension_numbers<[1], [0], [0], [1], [0, 0, 1, 1], [], []>} : vector<8x128xf32>, vector<128x128xf32>, vector<8x128xf32> -> vector<8x128xf32>
    %305 = arith.addf %302, %304 : vector<8x128xf32>
    %306 = arith.negf %305 : vector<8x128xf32>
    %307 = math.exp %306 : vector<8x128xf32>
    %cst_146 = arith.constant 1.000000e+00 : f32
    %308 = vector.broadcast %cst_146 : f32 to vector<8x128xf32>
    %309 = arith.addf %308, %307 : vector<8x128xf32>
    %310 = arith.divf %308, %309 : vector<8x128xf32>
    %311 = vector.extract_strided_slice %301 {offsets = [0, 128], sizes = [8, 128], strides = [1, 1]} : vector<8x512xf32> to vector<8x128xf32>
    %c0_147 = arith.constant 0 : index
    %c128_148 = arith.constant 128 : index
    %312 = vector.load %arg10[%c0_147, %c128_148] : memref<128x512xf32, #tpu.memory_space<vmem>>, vector<128x128xf32>
    %cst_149 = arith.constant dense<0.000000e+00> : vector<8x128xf32>
    %313 = tpu.matmul %290, %312, %cst_149 {dimension_numbers = #tpu.dot_dimension_numbers<[1], [0], [0], [1], [0, 0, 1, 1], [], []>} : vector<8x128xf32>, vector<128x128xf32>, vector<8x128xf32> -> vector<8x128xf32>
    %314 = arith.addf %311, %313 : vector<8x128xf32>
    %315 = arith.negf %314 : vector<8x128xf32>
    %316 = math.exp %315 : vector<8x128xf32>
    %cst_150 = arith.constant 1.000000e+00 : f32
    %317 = vector.broadcast %cst_150 : f32 to vector<8x128xf32>
    %318 = arith.addf %317, %316 : vector<8x128xf32>
    %319 = arith.divf %317, %318 : vector<8x128xf32>
    %320 = vector.extract_strided_slice %301 {offsets = [0, 256], sizes = [8, 128], strides = [1, 1]} : vector<8x512xf32> to vector<8x128xf32>
    %c0_151 = arith.constant 0 : index
    %c256_152 = arith.constant 256 : index
    %321 = vector.load %arg10[%c0_151, %c256_152] : memref<128x512xf32, #tpu.memory_space<vmem>>, vector<128x128xf32>
    %cst_153 = arith.constant dense<0.000000e+00> : vector<8x128xf32>
    %322 = tpu.matmul %290, %321, %cst_153 {dimension_numbers = #tpu.dot_dimension_numbers<[1], [0], [0], [1], [0, 0, 1, 1], [], []>} : vector<8x128xf32>, vector<128x128xf32>, vector<8x128xf32> -> vector<8x128xf32>
    %323 = arith.addf %320, %322 : vector<8x128xf32>
    %324 = math.tanh %323 : vector<8x128xf32>
    %325 = vector.extract_strided_slice %301 {offsets = [0, 384], sizes = [8, 128], strides = [1, 1]} : vector<8x512xf32> to vector<8x128xf32>
    %c0_154 = arith.constant 0 : index
    %c384_155 = arith.constant 384 : index
    %326 = vector.load %arg10[%c0_154, %c384_155] : memref<128x512xf32, #tpu.memory_space<vmem>>, vector<128x128xf32>
    %cst_156 = arith.constant dense<0.000000e+00> : vector<8x128xf32>
    %327 = tpu.matmul %290, %326, %cst_156 {dimension_numbers = #tpu.dot_dimension_numbers<[1], [0], [0], [1], [0, 0, 1, 1], [], []>} : vector<8x128xf32>, vector<128x128xf32>, vector<8x128xf32> -> vector<8x128xf32>
    %328 = arith.addf %325, %327 : vector<8x128xf32>
    %329 = arith.negf %328 : vector<8x128xf32>
    %330 = math.exp %329 : vector<8x128xf32>
    %cst_157 = arith.constant 1.000000e+00 : f32
    %331 = vector.broadcast %cst_157 : f32 to vector<8x128xf32>
    %332 = arith.addf %331, %330 : vector<8x128xf32>
    %333 = arith.divf %331, %332 : vector<8x128xf32>
    %334 = arith.mulf %319, %288 : vector<8x128xf32>
    %335 = arith.mulf %310, %324 : vector<8x128xf32>
    %336 = arith.addf %334, %335 : vector<8x128xf32>
    %337 = math.tanh %336 : vector<8x128xf32>
    %338 = arith.mulf %333, %337 : vector<8x128xf32>
    %c0_158 = arith.constant 0 : index
    %339 = arith.index_cast %298 : i32 to index
    %c0_159 = arith.constant 0 : index
    %c0_160 = arith.constant 0 : index
    %340 = vector.load %arg7[%c0_158, %339, %c0_159, %c0_160] : memref<1x8x8x128xf32, #tpu.memory_space<vmem>>, vector<1x1x8x128xf32>
    %341 = vector.shape_cast %340 : vector<1x1x8x128xf32> to vector<8x128xf32>
    %342 = vector.shape_cast %338 : vector<8x128xf32> to vector<1x1x8x128xf32>
    tpu.vector_store %arg7[%c0_158, %339, %c0_159, %c0_160], %342 {strides = array<i32>} : memref<1x8x8x128xf32, #tpu.memory_space<vmem>>, vector<1x1x8x128xf32>,
    %c7_i32_161 = arith.constant 7 : i32
    %c2_i32_162 = arith.constant 2 : i32
    %343 = arith.muli %c2_i32_162, %c7_i32_161 : i32
    %c7_i32_163 = arith.constant 7 : i32
    %344 = arith.subi %c7_i32_163, %343 : i32
    %345 = arith.muli %1, %344 : i32
    %346 = arith.addi %c7_i32_161, %345 : i32
    %c0_164 = arith.constant 0 : index
    %347 = arith.index_cast %346 : i32 to index
    %c0_165 = arith.constant 0 : index
    %c0_166 = arith.constant 0 : index
    %348 = vector.load %arg3[%c0_164, %347, %c0_165, %c0_166] : memref<1x8x8x512xf32, #tpu.memory_space<vmem>>, vector<1x1x8x512xf32>
    %349 = vector.shape_cast %348 : vector<1x1x8x512xf32> to vector<8x512xf32>
    %350 = vector.extract_strided_slice %349 {offsets = [0, 0], sizes = [8, 128], strides = [1, 1]} : vector<8x512xf32> to vector<8x128xf32>
    %c0_167 = arith.constant 0 : index
    %c0_168 = arith.constant 0 : index
    %351 = vector.load %arg10[%c0_167, %c0_168] : memref<128x512xf32, #tpu.memory_space<vmem>>, vector<128x128xf32>
    %cst_169 = arith.constant dense<0.000000e+00> : vector<8x128xf32>
    %352 = tpu.matmul %338, %351, %cst_169 {dimension_numbers = #tpu.dot_dimension_numbers<[1], [0], [0], [1], [0, 0, 1, 1], [], []>} : vector<8x128xf32>, vector<128x128xf32>, vector<8x128xf32> -> vector<8x128xf32>
    %353 = arith.addf %350, %352 : vector<8x128xf32>
    %354 = arith.negf %353 : vector<8x128xf32>
    %355 = math.exp %354 : vector<8x128xf32>
    %cst_170 = arith.constant 1.000000e+00 : f32
    %356 = vector.broadcast %cst_170 : f32 to vector<8x128xf32>
    %357 = arith.addf %356, %355 : vector<8x128xf32>
    %358 = arith.divf %356, %357 : vector<8x128xf32>
    %359 = vector.extract_strided_slice %349 {offsets = [0, 128], sizes = [8, 128], strides = [1, 1]} : vector<8x512xf32> to vector<8x128xf32>
    %c0_171 = arith.constant 0 : index
    %c128_172 = arith.constant 128 : index
    %360 = vector.load %arg10[%c0_171, %c128_172] : memref<128x512xf32, #tpu.memory_space<vmem>>, vector<128x128xf32>
    %cst_173 = arith.constant dense<0.000000e+00> : vector<8x128xf32>
    %361 = tpu.matmul %338, %360, %cst_173 {dimension_numbers = #tpu.dot_dimension_numbers<[1], [0], [0], [1], [0, 0, 1, 1], [], []>} : vector<8x128xf32>, vector<128x128xf32>, vector<8x128xf32> -> vector<8x128xf32>
    %362 = arith.addf %359, %361 : vector<8x128xf32>
    %363 = arith.negf %362 : vector<8x128xf32>
    %364 = math.exp %363 : vector<8x128xf32>
    %cst_174 = arith.constant 1.000000e+00 : f32
    %365 = vector.broadcast %cst_174 : f32 to vector<8x128xf32>
    %366 = arith.addf %365, %364 : vector<8x128xf32>
    %367 = arith.divf %365, %366 : vector<8x128xf32>
    %368 = vector.extract_strided_slice %349 {offsets = [0, 256], sizes = [8, 128], strides = [1, 1]} : vector<8x512xf32> to vector<8x128xf32>
    %c0_175 = arith.constant 0 : index
    %c256_176 = arith.constant 256 : index
    %369 = vector.load %arg10[%c0_175, %c256_176] : memref<128x512xf32, #tpu.memory_space<vmem>>, vector<128x128xf32>
    %cst_177 = arith.constant dense<0.000000e+00> : vector<8x128xf32>
    %370 = tpu.matmul %338, %369, %cst_177 {dimension_numbers = #tpu.dot_dimension_numbers<[1], [0], [0], [1], [0, 0, 1, 1], [], []>} : vector<8x128xf32>, vector<128x128xf32>, vector<8x128xf32> -> vector<8x128xf32>
    %371 = arith.addf %368, %370 : vector<8x128xf32>
    %372 = math.tanh %371 : vector<8x128xf32>
    %373 = vector.extract_strided_slice %349 {offsets = [0, 384], sizes = [8, 128], strides = [1, 1]} : vector<8x512xf32> to vector<8x128xf32>
    %c0_178 = arith.constant 0 : index
    %c384_179 = arith.constant 384 : index
    %374 = vector.load %arg10[%c0_178, %c384_179] : memref<128x512xf32, #tpu.memory_space<vmem>>, vector<128x128xf32>
    %cst_180 = arith.constant dense<0.000000e+00> : vector<8x128xf32>
    %375 = tpu.matmul %338, %374, %cst_180 {dimension_numbers = #tpu.dot_dimension_numbers<[1], [0], [0], [1], [0, 0, 1, 1], [], []>} : vector<8x128xf32>, vector<128x128xf32>, vector<8x128xf32> -> vector<8x128xf32>
    %376 = arith.addf %373, %375 : vector<8x128xf32>
    %377 = arith.negf %376 : vector<8x128xf32>
    %378 = math.exp %377 : vector<8x128xf32>
    %cst_181 = arith.constant 1.000000e+00 : f32
    %379 = vector.broadcast %cst_181 : f32 to vector<8x128xf32>
    %380 = arith.addf %379, %378 : vector<8x128xf32>
    %381 = arith.divf %379, %380 : vector<8x128xf32>
    %382 = arith.mulf %367, %336 : vector<8x128xf32>
    %383 = arith.mulf %358, %372 : vector<8x128xf32>
    %384 = arith.addf %382, %383 : vector<8x128xf32>
    %385 = math.tanh %384 : vector<8x128xf32>
    %386 = arith.mulf %381, %385 : vector<8x128xf32>
    %c0_182 = arith.constant 0 : index
    %387 = arith.index_cast %346 : i32 to index
    %c0_183 = arith.constant 0 : index
    %c0_184 = arith.constant 0 : index
    %388 = vector.load %arg7[%c0_182, %387, %c0_183, %c0_184] : memref<1x8x8x128xf32, #tpu.memory_space<vmem>>, vector<1x1x8x128xf32>
    %389 = vector.shape_cast %388 : vector<1x1x8x128xf32> to vector<8x128xf32>
    %390 = vector.shape_cast %386 : vector<8x128xf32> to vector<1x1x8x128xf32>
    tpu.vector_store %arg7[%c0_182, %387, %c0_183, %c0_184], %390 {strides = array<i32>} : memref<1x8x8x128xf32, #tpu.memory_space<vmem>>, vector<1x1x8x128xf32>,
    %c8_i32 = arith.constant 8 : i32
    %c0_185 = arith.constant 0 : index
    %c0_186 = arith.constant 0 : index
    %391 = vector.load %arg11[%c0_185, %c0_186] : memref<8x128xf32, #tpu.memory_space<vmem>>, vector<8x128xf32>
    tpu.vector_store %arg11[%c0_185, %c0_186], %386 {strides = array<i32>} : memref<8x128xf32, #tpu.memory_space<vmem>>, vector<8x128xf32>,
    %c0_187 = arith.constant 0 : index
    %c0_188 = arith.constant 0 : index
    %392 = vector.load %arg12[%c0_187, %c0_188] : memref<8x128xf32, #tpu.memory_space<vmem>>, vector<8x128xf32>
    tpu.vector_store %arg12[%c0_187, %c0_188], %384 {strides = array<i32>} : memref<8x128xf32, #tpu.memory_space<vmem>>, vector<8x128xf32>,
    %c0_i32_189 = arith.constant 0 : i32
    %393 = arith.cmpi eq, %arg1, %c0_i32_189 : i32
    %394 = arith.extui %393 : i1 to i32
    %c0_i32_190 = arith.constant 0 : i32
    %395 = arith.cmpi ne, %394, %c0_i32_190 : i32
    scf.if %395 {
      %c0_191 = arith.constant 0 : index
      %c0_192 = arith.constant 0 : index
      %c0_193 = arith.constant 0 : index
      %396 = vector.load %arg8[%c0_191, %c0_192, %c0_193] : memref<1x8x128xf32, #tpu.memory_space<vmem>>, vector<1x8x128xf32>
      %397 = vector.shape_cast %396 : vector<1x8x128xf32> to vector<8x128xf32>
      %398 = vector.shape_cast %386 : vector<8x128xf32> to vector<1x8x128xf32>
      tpu.vector_store %arg8[%c0_191, %c0_192, %c0_193], %398 {strides = array<i32>} : memref<1x8x128xf32, #tpu.memory_space<vmem>>, vector<1x8x128xf32>,
      %c0_194 = arith.constant 0 : index
      %c0_195 = arith.constant 0 : index
      %c0_196 = arith.constant 0 : index
      %399 = vector.load %arg9[%c0_194, %c0_195, %c0_196] : memref<1x8x128xf32, #tpu.memory_space<vmem>>, vector<1x8x128xf32>
      %400 = vector.shape_cast %399 : vector<1x8x128xf32> to vector<8x128xf32>
      %401 = vector.shape_cast %384 : vector<8x128xf32> to vector<1x8x128xf32>
      tpu.vector_store %arg9[%c0_194, %c0_195, %c0_196], %401 {strides = array<i32>} : memref<1x8x128xf32, #tpu.memory_space<vmem>>, vector<1x8x128xf32>,
    } else {
    }
    return
  }
  func.func @transform_0(%arg0: i32, %arg1: i32, %arg2: memref<1xi32, #tpu.memory_space<smem>>) -> (i32, i32, i32, i32) {
    %0 = arith.index_cast %arg0 : i32 to index
    %1 = memref.load %arg2[%0] : memref<1xi32, #tpu.memory_space<smem>>
    %c2_i32 = arith.constant 2 : i32
    %2 = arith.muli %c2_i32, %arg1 : i32
    %c0_i32 = arith.constant 0 : i32
    %3 = arith.subi %c0_i32, %2 : i32
    %4 = arith.muli %1, %3 : i32
    %5 = arith.addi %arg1, %4 : i32
    %c0_i32_0 = arith.constant 0 : i32
    %c0_i32_1 = arith.constant 0 : i32
    %c0_i32_2 = arith.constant 0 : i32
    return %arg0, %5, %c0_i32_0, %c0_i32_1 : i32, i32, i32, i32
  }
  func.func @transform_4(%arg0: i32, %arg1: i32, %arg2: memref<1xi32, #tpu.memory_space<smem>>) -> (i32, i32, i32, i32) {
    %0 = arith.index_cast %arg0 : i32 to index
    %1 = memref.load %arg2[%0] : memref<1xi32, #tpu.memory_space<smem>>
    %c2_i32 = arith.constant 2 : i32
    %2 = arith.muli %c2_i32, %arg1 : i32
    %c0_i32 = arith.constant 0 : i32
    %3 = arith.subi %c0_i32, %2 : i32
    %4 = arith.muli %1, %3 : i32
    %5 = arith.addi %arg1, %4 : i32
    %c0_i32_0 = arith.constant 0 : i32
    %c0_i32_1 = arith.constant 0 : i32
    %c0_i32_2 = arith.constant 0 : i32
    return %arg0, %5, %c0_i32_0, %c0_i32_1 : i32, i32, i32, i32
  }
  func.func @transform_5(%arg0: i32, %arg1: i32, %arg2: memref<1xi32, #tpu.memory_space<smem>>) -> (i32, i32, i32) {
    %c0_i32 = arith.constant 0 : i32
    %c0_i32_0 = arith.constant 0 : i32
    %c0_i32_1 = arith.constant 0 : i32
    return %arg0, %c0_i32, %c0_i32_0 : i32, i32, i32
  }
  func.func @transform_6(%arg0: i32, %arg1: i32, %arg2: memref<1xi32, #tpu.memory_space<smem>>) -> (i32, i32, i32) {
    %c0_i32 = arith.constant 0 : i32
    %c0_i32_0 = arith.constant 0 : i32
    %c0_i32_1 = arith.constant 0 : i32
    return %arg0, %c0_i32, %c0_i32_0 : i32, i32, i32
  }
}

</mosaic_0001>

<bundles_post_ra>
// kernel: tpu_custom_call.1
= control target key start
LH: loop header
LB: loop body
LE: loop exit
PB: predicated region body
PF: predicated region fallthrough
CT: control target
= control target key end

     0   :  { %14 = vsyncpa [#allocation9], 0  ;;  %s7034_s0 = inlined_call_operand.<no memory space> [shape: s32[1], index: 0, kind: input, shape index: {}]   ;;  %s7035_s1 = inlined_call_operand.hbm [shape: f32[1,8,8,512], index: 1, kind: input, shape index: {}]   ;;  %s7036_s2 = inlined_call_operand.hbm [shape: f32[1,128,512], index: 2, kind: input, shape index: {}]   ;;  %s7037_s3 = inlined_call_operand.hbm [shape: f32[1,8,128], index: 3, kind: input, shape index: {}]   ;;  %s7038_s4 = inlined_call_operand.hbm [shape: f32[1,8,128], index: 4, kind: input, shape index: {}]   ;;  %s7039_s5 = inlined_call_operand.hbm [shape: f32[1,8,8,128], index: 5, kind: output, shape index: {0}]   ;;  %s7040_s6 = inlined_call_operand.hbm [shape: f32[1,8,128], index: 6, kind: output, shape index: {1}]   ;;  %s7041_s7 = inlined_call_operand.hbm [shape: f32[1,8,128], index: 7, kind: output, shape index: {2}]  }
   0x1   :  { %15 = vsyncpa [#allocation10], 0 }
   0x2   :  { %16 = vsyncpa [#allocation13], 0  ;;  %s5352_s24 = smov [#allocation8]  }
   0x3   :  { %s31_s25 = sshll.u32 %s5352_s24, 4  ;;  %s32_s25 = int_to_ptr.vmem [resolvable:$true] %s31_s25 }
   0x4   :  { %s5208_s26 = scalar_lea.vmem %s32_s25, 4096  ;;  %p5213_p1 = scmp.lt.s32.totalorder %s32_s25, %s32_s25 }
   0x5   :  { %p5209_p0 = scmp.ne.s32.totalorder %s32_s25, %s5208_s26  ;;  %p5214_p2 = scmp.lt.s32.totalorder %s5208_s26, %s5208_s26 }
   0x7   :  { %p5215_p3 = por %p5214_p2, %p5213_p1 }
   0x9   :  { %p5216_p4 = pnand %p5215_p3, %p5209_p0 }
   0xb   :  { %5219 = shalt.err (!%p5216_p4)
}
   0xc   :  { %s5353_s27 = smov 512   ;;  %s5354_s28 = smov 32  }
   0xd   :  { %37 = dma.hbm_to_vmem [thread:$0]  %s7035_s1, 4096, %s32_s25, [#allocation9], %s5353_s27, %s5353_s27, %s5354_s28  }
   0xe   :  { %5340 = dma.done.wait [#allocation9], 4096  }
   0xf   :  { %5341 = vsyncadd [#allocation9], 4294963200  ;;  %s5355_s8 = smov [#allocation2]   ;;  %s5356_s10 = smov [#allocation3]  }
  0x10   :  { %s68_s9 = sshll.u32 %s5355_s8, 4  ;;  %s83_s11 = sshll.u32 %s5356_s10, 4  ;;  %s69_s9 = int_to_ptr.vmem [resolvable:$true] %s68_s9  ;;  %s84_s11 = int_to_ptr.vmem [resolvable:$true] %s83_s11 }
  0x11   :  { %s5228_s12 = scalar_lea.vmem %s69_s9, 8192  ;;  %p5233_p6 = scmp.lt.s32.totalorder %s69_s9, %s69_s9 }
  0x12   :  { %p5229_p5 = scmp.ne.s32.totalorder %s69_s9, %s5228_s12  ;;  %p5234_p7 = scmp.lt.s32.totalorder %s5228_s12, %s5228_s12 }
  0x14   :  { %p5235_p8 = por %p5234_p7, %p5233_p6 }
  0x16   :  { %p5236_p9 = pnand %p5235_p8, %p5229_p5 }
  0x18   :  { %5239 = shalt.err (!%p5236_p9)  }
  0x19   :  { %71 = dma.hbm_to_vmem [thread:$0]  %s7036_s2, 8192, %s69_s9, [#allocation5] }
  0x1a   :  { %s5248_s1 = scalar_lea.vmem %s84_s11, 128  ;;  %p5253_p11 = scmp.lt.s32.totalorder %s84_s11, %s84_s11 }
  0x1b   :  { %p5249_p10 = scmp.ne.s32.totalorder %s84_s11, %s5248_s1  ;;  %p5254_p12 = scmp.lt.s32.totalorder %s5248_s1, %s5248_s1 }
  0x1d   :  { %p5255_p13 = por %p5254_p12, %p5253_p11 }
  0x1f   :  { %p5256_p0 = pnand %p5255_p13, %p5249_p10 }
  0x21   :  { %5259 = shalt.err (!%p5256_p0)  }
  0x22   :  { %86 = dma.hbm_to_vmem [thread:$0]  %s7037_s3, 128, %s84_s11, [#allocation5 + $0x1] }
  0x23   :  { %s5357_s17 = smov [#allocation4]  }
  0x24   :  { %s97_s18 = sshll.u32 %s5357_s17, 4  ;;  %s98_s18 = int_to_ptr.vmem [resolvable:$true] %s97_s18 }
  0x25   :  { %s5268_s19 = scalar_lea.vmem %s98_s18, 128  ;;  %p5273_p2 = scmp.lt.s32.totalorder %s98_s18, %s98_s18 }
  0x26   :  { %p5269_p1 = scmp.ne.s32.totalorder %s98_s18, %s5268_s19  ;;  %p5274_p3 = scmp.lt.s32.totalorder %s5268_s19, %s5268_s19 }
  0x28   :  { %p5275_p4 = por %p5274_p3, %p5273_p2 }
  0x2a   :  { %p5276_p5 = pnand %p5275_p4, %p5269_p1 }
  0x2c   :  { %5279 = shalt.err (!%p5276_p5)  }
  0x2d   :  { %100 = dma.hbm_to_vmem [thread:$0]  %s7038_s4, 128, %s98_s18, [#allocation5 + $0x2] }
  0x2e   :  { %5342 = dma.done.wait [#allocation5], 8192 }
  0x2f   :  { %5343 = vsyncadd [#allocation5], 4294959104 }
  0x30   :  { %5344 = dma.done.wait [#allocation5 + $0x1], 128 }
  0x31   :  { %5345 = vsyncadd [#allocation5 + $0x1], 4294967168 }
  0x32   :  { %5346 = dma.done.wait [#allocation5 + $0x2], 128 }
  0x33   :  { %5347 = vsyncadd [#allocation5 + $0x2], 4294967168  ;;  %v7057_v0 = vmov 0.0   ;;  %vm5359_vm0 = vmmov 0   ;;  %v5423_v1 = vld [vmem:[#allocation2 + $0x1e0] sm:$0xff]  ;;  %v5425_v2 = vld [vmem:[#allocation2 + $0x1e8] sm:$0xff] }
  0x34   :  { %3939 = vmatprep.subr.mxu0 %v7057_v0  ;;  %3974 = vmatprep.subr.mxu1 %v7057_v0  ;;  %v5427_v3 = vld [vmem:[#allocation2 + $0x1c0] sm:$0xff]  ;;  %v5431_v4 = vld [vmem:[#allocation2 + $0x1c8] sm:$0xff]  ;;  %v5551_v34 = vld [vmem:[#allocation2 + $0x1f0] sm:$0xff]  ;;  %s3393_s21 = smul.u32 224, %s7034_s0  ;;  %s3344_s20 = sshll.u32 %s7034_s0, 5 }
  0x35   :  { %3971 = vmatprep.mubr.msk.f32.mxu0 %vm5359_vm0, %v7057_v0  ;;  %4006 = vmatprep.mubr.msk.f32.mxu1 %vm5359_vm0, %v7057_v0  ;;  %v5435_v5 = vld [vmem:[#allocation2 + $0x1a0] sm:$0xff]  ;;  %v5437_v6 = vld [vmem:[#allocation2 + $0x1a8] sm:$0xff]  ;;  %v5553_v35 = vld [vmem:[#allocation2 + $0x1f8] sm:$0xff]  ;;  %s3323_s25 = smul.u32 56, %s7034_s0  ;;  %s3283_s3 = scalar_lea.vmem [#allocation8], %s3344_s20 }
  0x36   :  { %3940 = vmatpush3.msra.mxu0 %v5423_v1  ;;  %3975 = vmatpush3.msra.mxu1 %v5425_v2  ;;  %v5443_v7 = vld [vmem:[#allocation2 + $0x180] sm:$0xff]  ;;  %v5445_v8 = vld [vmem:[#allocation2 + $0x188] sm:$0xff]  ;;  %v5559_v36 = vld [vmem:[#allocation2 + $0x1d0] sm:$0xff]  ;;  %s115_s22 = scalar_lea.vmem [#allocation8], %s3393_s21  ;;  %s3324_s29 = smul.u32 160, %s7034_s0 }
  0x37   :  { %3941 = vmatprep.subr.mxu0 %v7057_v0  ;;  %3976 = vmatprep.subr.mxu1 %v7057_v0  ;;  %v5451_v9 = vld [vmem:[#allocation2 + $0x160] sm:$0xff]  ;;  %v5453_v10 = vld [vmem:[#allocation2 + $0x168] sm:$0xff]  ;;  %v5561_v37 = vld [vmem:[#allocation2 + $0x1d8] sm:$0xff]  ;;  %s493_s26 = scalar_lea.vmem [#allocation11], %s3323_s25  ;;  %s3332_s10 = smul.u32 40, %s7034_s0 }
  0x38   :  { %3942 = vmatpush3.msra.mxu0 %v5427_v3  ;;  %3977 = vmatpush3.msra.mxu1 %v5431_v4  ;;  %v5459_v11 = vld [vmem:[#allocation2 + $0x140] sm:$0xff]  ;;  %v5461_v12 = vld [vmem:[#allocation2 + $0x148] sm:$0xff]  ;;  %v5567_v38 = vld [vmem:[#allocation2 + $0x1b0] sm:$0xff]  ;;  %s3268_s30 = scalar_lea.vmem [#allocation8], %s3324_s29  ;;  %s3334_s14 = smul.u32 96, %s7034_s0 }
  0x39   :  { %3943 = vmatprep.subr.mxu0 %v7057_v0  ;;  %3978 = vmatprep.subr.mxu1 %v7057_v0  ;;  %v5467_v13 = vld [vmem:[#allocation2 + $0x120] sm:$0xff]  ;;  %v5469_v14 = vld [vmem:[#allocation2 + $0x128] sm:$0xff]  ;;  %v5569_v39 = vld [vmem:[#allocation2 + $0x1b8] sm:$0xff]  ;;  %s3272_s11 = scalar_lea.vmem [#allocation11], %s3332_s10  ;;  %s3342_s17 = smul.u32 24, %s7034_s0 }
  0x3a   :  { %3944 = vmatpush3.msra.mxu0 %v5435_v5  ;;  %3979 = vmatpush3.msra.mxu1 %v5437_v6  ;;  %v5475_v15 = vld [vmem:[#allocation2 + $0x100] sm:$0xff]  ;;  %v5477_v16 = vld [vmem:[#allocation2 + $0x108] sm:$0xff]  ;;  %v5575_v40 = vld [vmem:[#allocation2 + $0x190] sm:$0xff]  ;;  %s3276_s1 = scalar_lea.vmem [#allocation8], %s3334_s14  ;;  %s3360_s14 = smul.u32 4294967200, %s7034_s0 }
  0x3b   :  { %3945 = vmatprep.subr.mxu0 %v7057_v0  ;;  %3980 = vmatprep.subr.mxu1 %v7057_v0  ;;  %7094 = vst [vmem:[#allocation29_spill] sm:$0xff] %v5475_v15  ;;  %7095 = vst [vmem:[#allocation30_spill] sm:$0xff] %v5477_v16  ;;  %v5483_v17 = vld [vmem:[#allocation2 + $0xe0] sm:$0xff]  ;;  %v5485_v18 = vld [vmem:[#allocation2 + $0xe8] sm:$0xff]  ;;  %s3280_s18 = scalar_lea.vmem [#allocation11], %s3342_s17  ;;  %s3368_s17 = smul.u32 4294967272, %s7034_s0 }
  0x3c   :  { %3946 = vmatpush3.msra.mxu0 %v5443_v7  ;;  %3981 = vmatpush3.msra.mxu1 %v5445_v8  ;;  %7096 = vst [vmem:[#allocation31_spill] sm:$0xff] %v5483_v17  ;;  %7097 = vst [vmem:[#allocation32_spill] sm:$0xff] %v5485_v18  ;;  %v5491_v19 = vld [vmem:[#allocation2 + $0xc0] sm:$0xff]  ;;  %v5493_v20 = vld [vmem:[#allocation2 + $0xc8] sm:$0xff]  ;;  %s3370_s20 = smul.u32 4294967136, %s7034_s0  ;;  %s5360_s8 = smov [#allocation12]  }
  0x3d   :  { %3947 = vmatprep.subr.mxu0 %v7057_v0  ;;  %3982 = vmatprep.subr.mxu1 %v7057_v0  ;;  %7098 = vst [vmem:[#allocation33_spill] sm:$0xff] %v5491_v19  ;;  %7099 = vst [vmem:[#allocation34_spill] sm:$0xff] %v5493_v20  ;;  %v5499_v21 = vld [vmem:[#allocation2 + $0xa0] sm:$0xff]  ;;  %v5501_v22 = vld [vmem:[#allocation2 + $0xa8] sm:$0xff]  ;;  %s3214_s9 = sshll.u32 %s5360_s8, 4  ;;  %s5362_s12 = smov [#allocation14]   ;;  %s3215_s9 = int_to_ptr.vmem [resolvable:$true] %s3214_s9 }
  0x3e   :  { %3948 = vmatpush3.msra.mxu0 %v5451_v9  ;;  %3983 = vmatpush3.msra.mxu1 %v5453_v10  ;;  %7100 = vst [vmem:[#allocation35_spill] sm:$0xff] %v5499_v21  ;;  %7101 = vst [vmem:[#allocation36_spill] sm:$0xff] %v5501_v22  ;;  %v5507_v23 = vld [vmem:[#allocation2 + $0x80] sm:$0xff]  ;;  %v5509_v24 = vld [vmem:[#allocation2 + $0x88] sm:$0xff]  ;;  %s3224_s13 = sshll.u32 %s5362_s12, 4  ;;  %p5285_p7 = scmp.lt.s32.totalorder %s3215_s9, %s3215_s9  ;;  %s3225_s13 = int_to_ptr.vmem [resolvable:$true] %s3224_s13 }
  0x3f   :  { %3949 = vmatprep.subr.mxu0 %v7057_v0  ;;  %3984 = vmatprep.subr.mxu1 %v7057_v0  ;;  %7102 = vst [vmem:[#allocation37_spill] sm:$0xff] %v5507_v23  ;;  %7103 = vst [vmem:[#allocation38_spill] sm:$0xff] %v5509_v24  ;;  %v5515_v25 = vld [vmem:[#allocation2 + $0x60] sm:$0xff]  ;;  %v5517_v26 = vld [vmem:[#allocation2 + $0x68] sm:$0xff] }
  0x40   :  { %3950 = vmatpush3.msra.mxu0 %v5459_v11  ;;  %3985 = vmatpush3.msra.mxu1 %v5461_v12  ;;  %7104 = vst [vmem:[#allocation39_spill] sm:$0xff] %v5515_v25  ;;  %7105 = vst [vmem:[#allocation40_spill] sm:$0xff] %v5517_v26  ;;  %v5523_v27 = vld [vmem:[#allocation2 + $0x40] sm:$0xff]  ;;  %v5525_v28 = vld [vmem:[#allocation2 + $0x48] sm:$0xff] }
  0x41   :  { %3951 = vmatprep.subr.mxu0 %v7057_v0  ;;  %3986 = vmatprep.subr.mxu1 %v7057_v0  ;;  %7106 = vst [vmem:[#allocation41_spill] sm:$0xff] %v5523_v27  ;;  %7107 = vst [vmem:[#allocation42_spill] sm:$0xff] %v5525_v28  ;;  %v5531_v29 = vld [vmem:[#allocation2 + $0x20] sm:$0xff]  ;;  %v5533_v30 = vld [vmem:[#allocation2 + $0x28] sm:$0xff] }
  0x42   :  { %3952 = vmatpush3.msra.mxu0 %v5467_v13  ;;  %3987 = vmatpush3.msra.mxu1 %v5469_v14  ;;  %7108 = vst [vmem:[#allocation43_spill] sm:$0xff] %v5531_v29  ;;  %7109 = vst [vmem:[#allocation44_spill] sm:$0xff] %v5533_v30  ;;  %v5539_v31 = vld [vmem:[#allocation2] sm:$0xff]  ;;  %v5541_v32 = vld [vmem:[#allocation2 + $0x8] sm:$0xff] }
  0x43   :  { %3953 = vmatprep.subr.mxu0 %v7057_v0  ;;  %3988 = vmatprep.subr.mxu1 %v7057_v0  ;;  %7110 = vst [vmem:[#allocation45_spill] sm:$0xff] %v5539_v31  ;;  %7111 = vst [vmem:[#allocation46_spill] sm:$0xff] %v5541_v32  ;;  %v5545_v33 = vld [vmem:[#allocation3] sm:$0xff]  ;;  %v5577_v41 = vld [vmem:[#allocation2 + $0x198] sm:$0xff] }
  0x44   :  { %3954 = vmatpush3.msra.mxu0 %v5475_v15  ;;  %3989 = vmatpush3.msra.mxu1 %v5477_v16  ;;  %v5583_v42 = vld [vmem:[#allocation2 + $0x170] sm:$0xff]  ;;  %v5585_v43 = vld [vmem:[#allocation2 + $0x178] sm:$0xff] }
  0x45   :  { %3955 = vmatprep.subr.mxu0 %v7057_v0  ;;  %3990 = vmatprep.subr.mxu1 %v7057_v0  ;;  %v5591_v44 = vld [vmem:[#allocation2 + $0x150] sm:$0xff]  ;;  %v5593_v45 = vld [vmem:[#allocation2 + $0x158] sm:$0xff] }
  0x46   :  { %3956 = vmatpush3.msra.mxu0 %v5483_v17  ;;  %3991 = vmatpush3.msra.mxu1 %v5485_v18  ;;  %v5599_v46 = vld [vmem:[#allocation2 + $0x130] sm:$0xff]  ;;  %v5601_v47 = vld [vmem:[#allocation2 + $0x138] sm:$0xff] }
  0x47   :  { %3957 = vmatprep.subr.mxu0 %v7057_v0  ;;  %3992 = vmatprep.subr.mxu1 %v7057_v0  ;;  %v5607_v48 = vld [vmem:[#allocation2 + $0x110] sm:$0xff]  ;;  %v5609_v49 = vld [vmem:[#allocation2 + $0x118] sm:$0xff] }
  0x48   :  { %3958 = vmatpush3.msra.mxu0 %v5491_v19  ;;  %3993 = vmatpush3.msra.mxu1 %v5493_v20  ;;  %v5615_v50 = vld [vmem:[#allocation2 + $0xf0] sm:$0xff]  ;;  %v5617_v51 = vld [vmem:[#allocation2 + $0xf8] sm:$0xff] }
  0x49   :  { %3959 = vmatprep.subr.mxu0 %v7057_v0  ;;  %3994 = vmatprep.subr.mxu1 %v7057_v0  ;;  %v5623_v52 = vld [vmem:[#allocation2 + $0xd0] sm:$0xff]  ;;  %v5625_v53 = vld [vmem:[#allocation2 + $0xd8] sm:$0xff] }
  0x4a   :  { %3960 = vmatpush3.msra.mxu0 %v5499_v21  ;;  %3995 = vmatpush3.msra.mxu1 %v5501_v22  ;;  %v5631_v54 = vld [vmem:[#allocation2 + $0xb0] sm:$0xff]  ;;  %v5633_v55 = vld [vmem:[#allocation2 + $0xb8] sm:$0xff] }
  0x4b   :  { %3961 = vmatprep.subr.mxu0 %v7057_v0  ;;  %3996 = vmatprep.subr.mxu1 %v7057_v0  ;;  %v5639_v56 = vld [vmem:[#allocation2 + $0x90] sm:$0xff]  ;;  %v5641_v57 = vld [vmem:[#allocation2 + $0x98] sm:$0xff] }
  0x4c   :  { %3962 = vmatpush3.msra.mxu0 %v5507_v23  ;;  %3997 = vmatpush3.msra.mxu1 %v5509_v24  ;;  %7112 = vst [vmem:[#allocation47_spill] sm:$0xff] %v5641_v57  ;;  %v5647_v58 = vld [vmem:[#allocation2 + $0x70] sm:$0xff]  ;;  %v5649_v59 = vld [vmem:[#allocation2 + $0x78] sm:$0xff] }
  0x4d   :  { %3963 = vmatprep.subr.mxu0 %v7057_v0  ;;  %3998 = vmatprep.subr.mxu1 %v7057_v0  ;;  %7113 = vst [vmem:[#allocation48_spill] sm:$0xff] %v5649_v59  ;;  %v5655_v60 = vld [vmem:[#allocation2 + $0x50] sm:$0xff]  ;;  %v5657_v61 = vld [vmem:[#allocation2 + $0x58] sm:$0xff] }
  0x4e   :  { %3964 = vmatpush3.msra.mxu0 %v5515_v25  ;;  %3999 = vmatpush3.msra.mxu1 %v5517_v26  ;;  %v5663_v62 = vld [vmem:[#allocation2 + $0x30] sm:$0xff]  ;;  %v5665_v63 = vld [vmem:[#allocation2 + $0x38] sm:$0xff] }
  0x4f   :  { %3965 = vmatprep.subr.mxu0 %v7057_v0  ;;  %4000 = vmatprep.subr.mxu1 %v7057_v0 }
  0x50   :  { %3966 = vmatpush3.msra.mxu0 %v5523_v27  ;;  %4001 = vmatpush3.msra.mxu1 %v5525_v28 }
  0x51   :  { %3967 = vmatprep.subr.mxu0 %v7057_v0  ;;  %4002 = vmatprep.subr.mxu1 %v7057_v0 }
  0x52   :  { %3968 = vmatpush3.msra.mxu0 %v5531_v29  ;;  %4003 = vmatpush3.msra.mxu1 %v5533_v30 }
  0x53   :  { %3969 = vmatprep.subr.mxu0 %v7057_v0  ;;  %4004 = vmatprep.subr.mxu1 %v7057_v0 }
  0x54   :  { %3970 = vmatpush3.msra.mxu0 %v5539_v31  ;;  %4005 = vmatpush3.msra.mxu1 %v5541_v32 }
  0x55   :  { %3972 = vmatmul.mubr.f32.vlgmr.msra.gmra.mxu0 %v5545_v33  ;;  %4007 = vmatmul.mubr.f32.vlgmr.msra.gmra.mxu1 %v5545_v33 }
  0x56   :  { %4009 = vmatprep.subr.mxu0 %v7057_v0  ;;  %4044 = vmatprep.subr.mxu1 %v7057_v0 }
  0x57   :  { %4010 = vmatpush3.msra.mxu0 %v5551_v34  ;;  %4045 = vmatpush3.msra.mxu1 %v5553_v35 }
  0x58   :  { %4011 = vmatprep.subr.mxu0 %v7057_v0  ;;  %4046 = vmatprep.subr.mxu1 %v7057_v0 }
  0x59   :  { %4012 = vmatpush3.msra.mxu0 %v5559_v36  ;;  %4047 = vmatpush3.msra.mxu1 %v5561_v37 }
  0x5a   :  { %4013 = vmatprep.subr.mxu0 %v7057_v0  ;;  %4048 = vmatprep.subr.mxu1 %v7057_v0 }
  0x5b   :  { %4014 = vmatpush3.msra.mxu0 %v5567_v38  ;;  %4049 = vmatpush3.msra.mxu1 %v5569_v39 }
  0x5c   :  { %4015 = vmatprep.subr.mxu0 %v7057_v0  ;;  %4050 = vmatprep.subr.mxu1 %v7057_v0 }
  0x5d   :  { %4016 = vmatpush3.msra.mxu0 %v5575_v40  ;;  %4051 = vmatpush3.msra.mxu1 %v5577_v41 }
  0x5e   :  { %4017 = vmatprep.subr.mxu0 %v7057_v0  ;;  %4052 = vmatprep.subr.mxu1 %v7057_v0 }
  0x5f   :  { %4018 = vmatpush3.msra.mxu0 %v5583_v42  ;;  %4053 = vmatpush3.msra.mxu1 %v5585_v43 }
  0x60   :  { %4019 = vmatprep.subr.mxu0 %v7057_v0  ;;  %4054 = vmatprep.subr.mxu1 %v7057_v0 }
  0x61   :  { %4020 = vmatpush3.msra.mxu0 %v5591_v44  ;;  %4055 = vmatpush3.msra.mxu1 %v5593_v45 }
  0x62   :  { %4021 = vmatprep.subr.mxu0 %v7057_v0  ;;  %4056 = vmatprep.subr.mxu1 %v7057_v0 }
  0x63   :  { %4022 = vmatpush3.msra.mxu0 %v5599_v46  ;;  %4057 = vmatpush3.msra.mxu1 %v5601_v47 }
  0x64   :  { %4023 = vmatprep.subr.mxu0 %v7057_v0  ;;  %4058 = vmatprep.subr.mxu1 %v7057_v0 }
  0x65   :  { %4024 = vmatpush3.msra.mxu0 %v5607_v48  ;;  %4059 = vmatpush3.msra.mxu1 %v5609_v49 }
  0x66   :  { %4025 = vmatprep.subr.mxu0 %v7057_v0  ;;  %4060 = vmatprep.subr.mxu1 %v7057_v0 }
  0x67   :  { %4026 = vmatpush3.msra.mxu0 %v5615_v50  ;;  %4061 = vmatpush3.msra.mxu1 %v5617_v51 }
  0x68   :  { %4027 = vmatprep.subr.mxu0 %v7057_v0  ;;  %4062 = vmatprep.subr.mxu1 %v7057_v0 }
  0x69   :  { %4028 = vmatpush3.msra.mxu0 %v5623_v52  ;;  %4063 = vmatpush3.msra.mxu1 %v5625_v53 }
  0x6a   :  { %4029 = vmatprep.subr.mxu0 %v7057_v0  ;;  %4064 = vmatprep.subr.mxu1 %v7057_v0 }
  0x6b   :  { %4030 = vmatpush3.msra.mxu0 %v5631_v54  ;;  %4065 = vmatpush3.msra.mxu1 %v5633_v55 }
  0x6c   :  { %4031 = vmatprep.subr.mxu0 %v7057_v0  ;;  %4066 = vmatprep.subr.mxu1 %v7057_v0 }
  0x6d   :  { %4032 = vmatpush3.msra.mxu0 %v5639_v56  ;;  %4067 = vmatpush3.msra.mxu1 %v5641_v57  ;;  %v5671_v57 = vld [vmem:[#allocation2 + $0x10] sm:$0xff] }
  0x6e   :  { %4033 = vmatprep.subr.mxu0 %v7057_v0  ;;  %4068 = vmatprep.subr.mxu1 %v7057_v0 }
  0x6f   :  { %4034 = vmatpush3.msra.mxu0 %v5647_v58  ;;  %4069 = vmatpush3.msra.mxu1 %v5649_v59  ;;  %v5675_v59 = vld [vmem:[#allocation2 + $0x18] sm:$0xff] }
  0x70   :  { %4035 = vmatprep.subr.mxu0 %v7057_v0  ;;  %4070 = vmatprep.subr.mxu1 %v7057_v0 }
  0x71   :  { %4036 = vmatpush3.msra.mxu0 %v5655_v60  ;;  %4071 = vmatpush3.msra.mxu1 %v5657_v61 }
  0x72   :  { %4037 = vmatprep.subr.mxu0 %v7057_v0  ;;  %4072 = vmatprep.subr.mxu1 %v7057_v0 }
  0x73   :  { %4038 = vmatpush3.msra.mxu0 %v5663_v62  ;;  %4073 = vmatpush3.msra.mxu1 %v5665_v63 }
  0x74   :  { %4039 = vmatprep.subr.mxu0 %v7057_v0  ;;  %4074 = vmatprep.subr.mxu1 %v7057_v0 }
  0x75   :  { %4040 = vmatpush3.msra.mxu0 %v5671_v57  ;;  %4041 = vmatprep.mubr.msk.f32.mxu0 %vm5359_vm0, %v7057_v0 }
  0x76   :  { %4075 = vmatpush3.msra.mxu1 %v5675_v59  ;;  %4076 = vmatprep.mubr.msk.f32.mxu1 %vm5359_vm0, %v7057_v0 }
  0x77   :  { %4042 = vmatmul.mubr.f32.vlgmr.msra.gmra.mxu0 %v5545_v33  ;;  %4077 = vmatmul.mubr.f32.vlgmr.msra.gmra.mxu1 %v5545_v33 }
  0x78   :  { %4079 = vmatprep.subr.mxu0 %v7057_v0  ;;  %4114 = vmatprep.subr.mxu1 %v7057_v0 }
  0x79   :  { %4080 = vmatpush3.msra.mxu0 %v5423_v1  ;;  %4115 = vmatpush3.msra.mxu1 %v5425_v2 }
  0x7a   :  { %4081 = vmatprep.subr.mxu0 %v7057_v0  ;;  %4116 = vmatprep.subr.mxu1 %v7057_v0 }
  0x7b   :  { %4082 = vmatpush3.msra.mxu0 %v5427_v3  ;;  %4117 = vmatpush3.msra.mxu1 %v5431_v4 }
  0x7c   :  { %4083 = vmatprep.subr.mxu0 %v7057_v0  ;;  %4118 = vmatprep.subr.mxu1 %v7057_v0 }
  0x7d   :  { %4084 = vmatpush3.msra.mxu0 %v5435_v5  ;;  %4119 = vmatpush3.msra.mxu1 %v5437_v6 }
  0x7e   :  { %4085 = vmatprep.subr.mxu0 %v7057_v0  ;;  %4120 = vmatprep.subr.mxu1 %v7057_v0 }
  0x7f   :  { %4086 = vmatpush3.msra.mxu0 %v5443_v7  ;;  %4121 = vmatpush3.msra.mxu1 %v5445_v8 }
  0x80   :  { %4087 = vmatprep.subr.mxu0 %v7057_v0  ;;  %4122 = vmatprep.subr.mxu1 %v7057_v0 }
  0x81   :  { %4088 = vmatpush3.msra.mxu0 %v5451_v9  ;;  %4123 = vmatpush3.msra.mxu1 %v5453_v10 }
  0x82   :  { %4089 = vmatprep.subr.mxu0 %v7057_v0  ;;  %4124 = vmatprep.subr.mxu1 %v7057_v0 }
  0x83   :  { %4090 = vmatpush3.msra.mxu0 %v5459_v11  ;;  %4125 = vmatpush3.msra.mxu1 %v5461_v12 }
  0x84   :  { %4091 = vmatprep.subr.mxu0 %v7057_v0  ;;  %4126 = vmatprep.subr.mxu1 %v7057_v0 }
  0x85   :  { %4092 = vmatpush3.msra.mxu0 %v5467_v13  ;;  %4127 = vmatpush3.msra.mxu1 %v5469_v14 }
  0x86   :  { %4093 = vmatprep.subr.mxu0 %v7057_v0  ;;  %4128 = vmatprep.subr.mxu1 %v7057_v0 }
  0x87   :  { %4094 = vmatpush3.msra.mxu0 %v5475_v15  ;;  %4129 = vmatpush3.msra.mxu1 %v5477_v16 }
  0x88   :  { %4095 = vmatprep.subr.mxu0 %v7057_v0  ;;  %4130 = vmatprep.subr.mxu1 %v7057_v0 }
  0x89   :  { %4096 = vmatpush3.msra.mxu0 %v5483_v17  ;;  %4131 = vmatpush3.msra.mxu1 %v5485_v18 }
  0x8a   :  { %4097 = vmatprep.subr.mxu0 %v7057_v0  ;;  %4132 = vmatprep.subr.mxu1 %v7057_v0 }
  0x8b   :  { %4098 = vmatpush3.msra.mxu0 %v5491_v19  ;;  %4133 = vmatpush3.msra.mxu1 %v5493_v20  ;;  %v118_v20 = vld [vmem:[%s115_s22 + $0x10] sm:$0xff]  ;;  %v119_v19 = vld [vmem:[%s115_s22 + $0x18] sm:$0xff] }
  0x8c   :  { %4099 = vmatprep.subr.mxu0 %v7057_v0  ;;  %4134 = vmatprep.subr.mxu1 %v7057_v0 }
  0x8d   :  { %4100 = vmatpush3.msra.mxu0 %v5499_v21  ;;  %4135 = vmatpush3.msra.mxu1 %v5501_v22 }
  0x8e   :  { %4101 = vmatprep.subr.mxu0 %v7057_v0  ;;  %4136 = vmatprep.subr.mxu1 %v7057_v0 }
  0x8f   :  { %4102 = vmatpush3.msra.mxu0 %v5507_v23  ;;  %4137 = vmatpush3.msra.mxu1 %v5509_v24 }
  0x90   :  { %4103 = vmatprep.subr.mxu0 %v7057_v0  ;;  %4138 = vmatprep.subr.mxu1 %v7057_v0 }
  0x91   :  { %4104 = vmatpush3.msra.mxu0 %v5515_v25  ;;  %4139 = vmatpush3.msra.mxu1 %v5517_v26 }
  0x92   :  { %4105 = vmatprep.subr.mxu0 %v7057_v0  ;;  %4140 = vmatprep.subr.mxu1 %v7057_v0 }
  0x93   :  { %4106 = vmatpush3.msra.mxu0 %v5523_v27  ;;  %4141 = vmatpush3.msra.mxu1 %v5525_v28  ;;  %v116_v28 = vld [vmem:[%s115_s22] sm:$0xff] }
  0x94   :  { %4107 = vmatprep.subr.mxu0 %v7057_v0  ;;  %4142 = vmatprep.subr.mxu1 %v7057_v0 }
  0x95   :  { %4108 = vmatpush3.msra.mxu0 %v5531_v29  ;;  %4143 = vmatpush3.msra.mxu1 %v5533_v30 }
  0x96   :  { %4109 = vmatprep.subr.mxu0 %v7057_v0  ;;  %4144 = vmatprep.subr.mxu1 %v7057_v0 }
  0x97   :  { %4110 = vmatpush3.msra.mxu0 %v5539_v31  ;;  %4145 = vmatpush3.msra.mxu1 %v5541_v32  ;;  %v117_v32 = vld [vmem:[%s115_s22 + $0x8] sm:$0xff]  ;;  %s3352_s22 = sshll.u32 %s7034_s0, 3 }
  0x98   :  { %4111 = vmatprep.mubr.msk.f32.mxu0 %vm5359_vm0, %v7057_v0  ;;  %4146 = vmatprep.mubr.msk.f32.mxu1 %vm5359_vm0, %v7057_v0  ;;  %s3286_s23 = scalar_lea.vmem [#allocation11], %s3352_s22  ;;  %s3378_s22 = smul.u32 4294967256, %s7034_s0 }
  0x99   :  { %4149 = vmatprep.subr.mxu0 %v7057_v0  ;;  %4184 = vmatprep.subr.mxu1 %v7057_v0 }
 0x115   :  { %v202_v33 = vpop.f32.mrf.mxu0  ;;  %v295_v30 = vpop.f32.mrf.mxu1 }
 0x116   :  { %v299_v27 = vadd.f32 %v295_v30, %v117_v32  ;;  %v206_v26 = vadd.f32 %v202_v33, %v116_v28 }
 0x117   :  { %v3973_v29 = vpop.f32.mrf.mxu0  ;;  %v4008_v31 = vpop.f32.mrf.mxu1 }
 0x118   :  { %v3321_v25 = vmul.f32 -1.442695, %v299_v27  ;;  %v3320_v24 = vmul.f32 -1.442695, %v206_v26 }
 0x11a   :  { %5072 = vpow2.f32 %v3321_v25  ;;  %v111_v25 = vld [vmem:[#allocation4] sm:$0xff] }
 0x11b   :  { %5074 = vpow2.f32 %v3320_v24 }
 0x127   :  { %v5073_v23 = vpop.eup %5072 }
 0x128   :  { %v5075_v22 = vpop.eup %5074  ;;  %v303_v0 = vadd.f32 1.0, %v5073_v23 }
 0x129   :  { %v210_v21 = vadd.f32 1.0, %v5075_v22 }
 0x12a   :  { %5076 = vrcp.f32 %v303_v0 }
 0x12b   :  { %5078 = vrcp.f32 %v210_v21  ;;  %v7132_v21 = vld [vmem:[#allocation44_spill] sm:$0xff] }
 0x137   :  { %v388_v18 = vpop.f32.mrf.mxu0  ;;  %v476_v17 = vpop.f32.mrf.mxu1 }
 0x138   :  { %v392_v29 = vadd.f32 %v388_v18, %v118_v20  ;;  %v480_v31 = vadd.f32 %v476_v17, %v119_v19  ;;  %v5077_v26 = vpop.eup %5076  ;;  %v7114_v17 = vmov 0.0   ;;  %v7115_v18 = vld [vmem:[#allocation47_spill] sm:$0xff]  ;;  %v7116_v19 = vld [vmem:[#allocation48_spill] sm:$0xff] }
 0x139   :  { %v4043_v16 = vpop.f32.mrf.mxu0  ;;  %v4078_v15 = vpop.f32.mrf.mxu1  ;;  %v487_v30 = vmul.f32 %v5077_v26, %v111_v25  ;;  %v7131_v20 = vld [vmem:[#allocation43_spill] sm:$0xff] }
 0x13a   :  { %5080 = vtanh.f32 %v392_v29  ;;  %v3322_v28 = vmul.f32 -1.442695, %v480_v31  ;;  %v5079_v24 = vpop.eup %5078  ;;  %v7133_v29 = vld [vmem:[#allocation45_spill] sm:$0xff]  ;;  %v7134_v31 = vld [vmem:[#allocation46_spill] sm:$0xff] }
 0x13c   :  { %5082 = vpow2.f32 %v3322_v28 }
 0x147   :  { %v5081_v27 = vpop.eup %5080 }
 0x148   :  { %v488_v23 = vmul.f32 %v5081_v27, %v5079_v24  ;;  %v3326_v27 = vld [vmem:[%s3268_s30 + $0x28] sm:$0xff] }
 0x149   :  { %v5083_v22 = vpop.eup %5082 }
 0x14a   :  { %v5760_v32 = vadd.f32 %v488_v23, %v487_v30  ;;  %v484_v33 = vadd.f32 1.0, %v5083_v22  ;;  %v3325_v30 = vld [vmem:[%s3268_s30 + $0x20] sm:$0xff] }
 0x14c   :  { %5084 = vtanh.f32 %v5760_v32 }
 0x14d   :  { %5086 = vrcp.f32 %v484_v33 }
 0x159   :  { %v5085_v0 = vpop.eup %5084 }
 0x15a   :  { %v5087_v15 = vpop.eup %5086 }
 0x15b   :  { %v5766_v16 = vmul.f32 %v5087_v15, %v5085_v0 }
 0x15d   :  { %494 = vst [vmem:[%s493_s26] sm:$0xff] %v5766_v16  ;;  %4112 = vmatmul.mubr.f32.vlgmr.msra.gmra.mxu0 %v5766_v16  ;;  %4147 = vmatmul.mubr.f32.vlgmr.msra.gmra.mxu1 %v5766_v16  ;;  %s1646_s26 = ssub.s32 4, %s7034_s0 }
 0x15e   :  { %4150 = vmatpush3.msra.mxu0 %v5551_v34  ;;  %4185 = vmatpush3.msra.mxu1 %v5553_v35  ;;  %s3394_s29 = sshll.u32 %s1646_s26, 5  ;;  %s3359_s10 = sshll.u32 %s1646_s26, 3 }
 0x15f   :  { %4151 = vmatprep.subr.mxu0 %v7114_v17  ;;  %4186 = vmatprep.subr.mxu1 %v7114_v17  ;;  %s3380_s26 = smul.u32 4294967072, %s7034_s0 }
 0x160   :  { %4152 = vmatpush3.msra.mxu0 %v5559_v36  ;;  %4187 = vmatpush3.msra.mxu1 %v5561_v37 }
 0x161   :  { %4153 = vmatprep.subr.mxu0 %v7114_v17  ;;  %4188 = vmatprep.subr.mxu1 %v7114_v17  ;;  %s3310_s27 = scalar_lea.vmem [#allocation8], %s3380_s26 }
 0x162   :  { %4154 = vmatpush3.msra.mxu0 %v5567_v38  ;;  %4189 = vmatpush3.msra.mxu1 %v5569_v39 }
 0x163   :  { %4155 = vmatprep.subr.mxu0 %v7114_v17  ;;  %4190 = vmatprep.subr.mxu1 %v7114_v17 }
 0x164   :  { %4156 = vmatpush3.msra.mxu0 %v5575_v40  ;;  %4191 = vmatpush3.msra.mxu1 %v5577_v41 }
 0x165   :  { %4157 = vmatprep.subr.mxu0 %v7114_v17  ;;  %4192 = vmatprep.subr.mxu1 %v7114_v17 }
 0x166   :  { %4158 = vmatpush3.msra.mxu0 %v5583_v42  ;;  %4193 = vmatpush3.msra.mxu1 %v5585_v43 }
 0x167   :  { %4159 = vmatprep.subr.mxu0 %v7114_v17  ;;  %4194 = vmatprep.subr.mxu1 %v7114_v17 }
 0x168   :  { %4160 = vmatpush3.msra.mxu0 %v5591_v44  ;;  %4195 = vmatpush3.msra.mxu1 %v5593_v45 }
 0x169   :  { %4161 = vmatprep.subr.mxu0 %v7114_v17  ;;  %4196 = vmatprep.subr.mxu1 %v7114_v17 }
 0x16a   :  { %4162 = vmatpush3.msra.mxu0 %v5599_v46  ;;  %4197 = vmatpush3.msra.mxu1 %v5601_v47 }
 0x16b   :  { %4163 = vmatprep.subr.mxu0 %v7114_v17  ;;  %4198 = vmatprep.subr.mxu1 %v7114_v17 }
 0x16c   :  { %4164 = vmatpush3.msra.mxu0 %v5607_v48  ;;  %4199 = vmatpush3.msra.mxu1 %v5609_v49 }
 0x16d   :  { %4165 = vmatprep.subr.mxu0 %v7114_v17  ;;  %4200 = vmatprep.subr.mxu1 %v7114_v17 }
 0x16e   :  { %4166 = vmatpush3.msra.mxu0 %v5615_v50  ;;  %4201 = vmatpush3.msra.mxu1 %v5617_v51 }
 0x16f   :  { %4167 = vmatprep.subr.mxu0 %v7114_v17  ;;  %4202 = vmatprep.subr.mxu1 %v7114_v17 }
 0x170   :  { %4168 = vmatpush3.msra.mxu0 %v5623_v52  ;;  %4203 = vmatpush3.msra.mxu1 %v5625_v53 }
 0x171   :  { %4169 = vmatprep.subr.mxu0 %v7114_v17  ;;  %4204 = vmatprep.subr.mxu1 %v7114_v17 }
 0x172   :  { %4170 = vmatpush3.msra.mxu0 %v5631_v54  ;;  %4205 = vmatpush3.msra.mxu1 %v5633_v55 }
 0x173   :  { %4171 = vmatprep.subr.mxu0 %v7114_v17  ;;  %4206 = vmatprep.subr.mxu1 %v7114_v17 }
 0x174   :  { %4172 = vmatpush3.msra.mxu0 %v5639_v56  ;;  %4207 = vmatpush3.msra.mxu1 %v7115_v18 }
 0x175   :  { %4173 = vmatprep.subr.mxu0 %v7114_v17  ;;  %4208 = vmatprep.subr.mxu1 %v7114_v17 }
 0x176   :  { %4174 = vmatpush3.msra.mxu0 %v5647_v58  ;;  %4209 = vmatpush3.msra.mxu1 %v7116_v19 }
 0x177   :  { %4175 = vmatprep.subr.mxu0 %v7114_v17  ;;  %4210 = vmatprep.subr.mxu1 %v7114_v17 }
 0x178   :  { %4176 = vmatpush3.msra.mxu0 %v5655_v60  ;;  %4211 = vmatpush3.msra.mxu1 %v5657_v61 }
 0x179   :  { %4177 = vmatprep.subr.mxu0 %v7114_v17  ;;  %4212 = vmatprep.subr.mxu1 %v7114_v17 }
 0x17a   :  { %4178 = vmatpush3.msra.mxu0 %v5663_v62  ;;  %4213 = vmatpush3.msra.mxu1 %v5665_v63 }
 0x17b   :  { %4179 = vmatprep.subr.mxu0 %v7114_v17  ;;  %4214 = vmatprep.subr.mxu1 %v7114_v17 }
 0x17c   :  { %4180 = vmatpush3.msra.mxu0 %v5671_v57  ;;  %4181 = vmatprep.mubr.msk.f32.mxu0 %vm5359_vm0, %v7114_v17 }
 0x17d   :  { %4215 = vmatpush3.msra.mxu1 %v5675_v59  ;;  %4216 = vmatprep.mubr.msk.f32.mxu1 %vm5359_vm0, %v7114_v17 }
 0x17e   :  { %4182 = vmatmul.mubr.f32.vlgmr.msra.gmra.mxu0 %v5766_v16  ;;  %4217 = vmatmul.mubr.f32.vlgmr.msra.gmra.mxu1 %v5766_v16 }
 0x17f   :  { %4219 = vmatprep.subr.mxu0 %v7114_v17  ;;  %4254 = vmatprep.subr.mxu1 %v7114_v17 }
 0x180   :  { %4220 = vmatpush3.msra.mxu0 %v5423_v1  ;;  %4255 = vmatpush3.msra.mxu1 %v5425_v2  ;;  %v7117_v1 = vld [vmem:[#allocation29_spill] sm:$0xff]  ;;  %v7118_v2 = vld [vmem:[#allocation30_spill] sm:$0xff] }
 0x181   :  { %4221 = vmatprep.subr.mxu0 %v7114_v17  ;;  %4256 = vmatprep.subr.mxu1 %v7114_v17 }
 0x182   :  { %4222 = vmatpush3.msra.mxu0 %v5427_v3  ;;  %4257 = vmatpush3.msra.mxu1 %v5431_v4  ;;  %v7119_v3 = vld [vmem:[#allocation31_spill] sm:$0xff]  ;;  %v7120_v4 = vld [vmem:[#allocation32_spill] sm:$0xff] }
 0x183   :  { %4223 = vmatprep.subr.mxu0 %v7114_v17  ;;  %4258 = vmatprep.subr.mxu1 %v7114_v17 }
 0x184   :  { %4224 = vmatpush3.msra.mxu0 %v5435_v5  ;;  %4259 = vmatpush3.msra.mxu1 %v5437_v6  ;;  %v7121_v5 = vld [vmem:[#allocation33_spill] sm:$0xff]  ;;  %v7122_v6 = vld [vmem:[#allocation34_spill] sm:$0xff] }
 0x185   :  { %4225 = vmatprep.subr.mxu0 %v7114_v17  ;;  %4260 = vmatprep.subr.mxu1 %v7114_v17 }
 0x186   :  { %4226 = vmatpush3.msra.mxu0 %v5443_v7  ;;  %4261 = vmatpush3.msra.mxu1 %v5445_v8  ;;  %v7123_v7 = vld [vmem:[#allocation35_spill] sm:$0xff]  ;;  %v7124_v8 = vld [vmem:[#allocation36_spill] sm:$0xff] }
 0x187   :  { %4227 = vmatprep.subr.mxu0 %v7114_v17  ;;  %4262 = vmatprep.subr.mxu1 %v7114_v17 }
 0x188   :  { %4228 = vmatpush3.msra.mxu0 %v5451_v9  ;;  %4263 = vmatpush3.msra.mxu1 %v5453_v10  ;;  %v7125_v9 = vld [vmem:[#allocation37_spill] sm:$0xff]  ;;  %v7126_v10 = vld [vmem:[#allocation38_spill] sm:$0xff] }
 0x189   :  { %4229 = vmatprep.subr.mxu0 %v7114_v17  ;;  %4264 = vmatprep.subr.mxu1 %v7114_v17 }
 0x18a   :  { %4230 = vmatpush3.msra.mxu0 %v5459_v11  ;;  %4265 = vmatpush3.msra.mxu1 %v5461_v12  ;;  %v7127_v11 = vld [vmem:[#allocation39_spill] sm:$0xff]  ;;  %v7128_v12 = vld [vmem:[#allocation40_spill] sm:$0xff] }
 0x18b   :  { %4231 = vmatprep.subr.mxu0 %v7114_v17  ;;  %4266 = vmatprep.subr.mxu1 %v7114_v17 }
 0x18c   :  { %4232 = vmatpush3.msra.mxu0 %v5467_v13  ;;  %4267 = vmatpush3.msra.mxu1 %v5469_v14  ;;  %v7129_v13 = vld [vmem:[#allocation41_spill] sm:$0xff]  ;;  %v7130_v14 = vld [vmem:[#allocation42_spill] sm:$0xff] }
 0x18d   :  { %4233 = vmatprep.subr.mxu0 %v7114_v17  ;;  %4268 = vmatprep.subr.mxu1 %v7114_v17 }
 0x18e   :  { %4234 = vmatpush3.msra.mxu0 %v7117_v1  ;;  %4269 = vmatpush3.msra.mxu1 %v7118_v2 }
 0x18f   :  { %4235 = vmatprep.subr.mxu0 %v7114_v17  ;;  %4270 = vmatprep.subr.mxu1 %v7114_v17 }
 0x190   :  { %4236 = vmatpush3.msra.mxu0 %v7119_v3  ;;  %4271 = vmatpush3.msra.mxu1 %v7120_v4  ;;  %v3327_v3 = vld [vmem:[%s3268_s30 + $0x30] sm:$0xff]  ;;  %v3328_v4 = vld [vmem:[%s3268_s30 + $0x38] sm:$0xff]  ;;  %s1649_s30 = scalar_lea.vmem [#allocation8], %s3394_s29 }
 0x191   :  { %4237 = vmatprep.subr.mxu0 %v7114_v17  ;;  %4272 = vmatprep.subr.mxu1 %v7114_v17 }
 0x192   :  { %4238 = vmatpush3.msra.mxu0 %v7121_v5  ;;  %4273 = vmatpush3.msra.mxu1 %v7122_v6 }
 0x193   :  { %4239 = vmatprep.subr.mxu0 %v7114_v17  ;;  %4274 = vmatprep.subr.mxu1 %v7114_v17 }
 0x194   :  { %4240 = vmatpush3.msra.mxu0 %v7123_v7  ;;  %4275 = vmatpush3.msra.mxu1 %v7124_v8 }
 0x195   :  { %4241 = vmatprep.subr.mxu0 %v7114_v17  ;;  %4276 = vmatprep.subr.mxu1 %v7114_v17 }
 0x196   :  { %4242 = vmatpush3.msra.mxu0 %v7125_v9  ;;  %4277 = vmatpush3.msra.mxu1 %v7126_v10 }
 0x197   :  { %4243 = vmatprep.subr.mxu0 %v7114_v17  ;;  %4278 = vmatprep.subr.mxu1 %v7114_v17 }
 0x198   :  { %4244 = vmatpush3.msra.mxu0 %v7127_v11  ;;  %4279 = vmatpush3.msra.mxu1 %v7128_v12 }
 0x199   :  { %4245 = vmatprep.subr.mxu0 %v7114_v17  ;;  %4280 = vmatprep.subr.mxu1 %v7114_v17 }
 0x19a   :  { %4246 = vmatpush3.msra.mxu0 %v7129_v13  ;;  %4281 = vmatpush3.msra.mxu1 %v7130_v14 }
 0x19b   :  { %4247 = vmatprep.subr.mxu0 %v7114_v17  ;;  %4282 = vmatprep.subr.mxu1 %v7114_v17 }
 0x19c   :  { %4248 = vmatpush3.msra.mxu0 %v7131_v20  ;;  %4283 = vmatpush3.msra.mxu1 %v7132_v21 }
 0x19d   :  { %4249 = vmatprep.subr.mxu0 %v7114_v17  ;;  %4284 = vmatprep.subr.mxu1 %v7114_v17 }
 0x19e   :  { %4250 = vmatpush3.msra.mxu0 %v7133_v29  ;;  %4285 = vmatpush3.msra.mxu1 %v7134_v31 }
 0x19f   :  { %4251 = vmatprep.mubr.msk.f32.mxu0 %vm5359_vm0, %v7114_v17  ;;  %4286 = vmatprep.mubr.msk.f32.mxu1 %vm5359_vm0, %v7114_v17 }
 0x1a0   :  { %4289 = vmatprep.subr.mxu0 %v7114_v17  ;;  %4324 = vmatprep.subr.mxu1 %v7114_v17 }
 0x21d   :  { %v586_v28 = vpop.f32.mrf.mxu0  ;;  %v679_v26 = vpop.f32.mrf.mxu1 }
 0x21e   :  { %v683_v23 = vadd.f32 %v3326_v27, %v679_v26  ;;  %v590_v22 = vadd.f32 %v3325_v30, %v586_v28 }
 0x21f   :  { %v4113_v25 = vpop.f32.mrf.mxu0  ;;  %v4148_v24 = vpop.f32.mrf.mxu1 }
 0x220   :  { %v3330_v33 = vmul.f32 -1.442695, %v683_v23  ;;  %v3329_v0 = vmul.f32 -1.442695, %v590_v22  ;;  %v3336_v22 = vld [vmem:[%s3276_s1 + $0x48] sm:$0xff] }
 0x222   :  { %5088 = vpow2.f32 %v3330_v33  ;;  %v3335_v33 = vld [vmem:[%s3276_s1 + $0x40] sm:$0xff] }
 0x223   :  { %5090 = vpow2.f32 %v3329_v0 }
 0x22f   :  { %v5089_v15 = vpop.eup %5088 }
 0x230   :  { %v5091_v16 = vpop.eup %5090  ;;  %v687_v1 = vadd.f32 1.0, %v5089_v15 }
 0x231   :  { %v594_v2 = vadd.f32 1.0, %v5091_v16 }
 0x232   :  { %5092 = vrcp.f32 %v687_v1 }
 0x233   :  { %5094 = vrcp.f32 %v594_v2 }
 0x23e   :  { %v772_v5 = vpop.f32.mrf.mxu0  ;;  %v860_v6 = vpop.f32.mrf.mxu1 }
 0x23f   :  { %v776_v7 = vadd.f32 %v3327_v3, %v772_v5  ;;  %v864_v8 = vadd.f32 %v3328_v4, %v860_v6  ;;  %v5093_v12 = vpop.eup %5092  ;;  %v3337_v6 = vld [vmem:[%s3276_s1 + $0x50] sm:$0xff] }
 0x240   :  { %v4183_v9 = vpop.f32.mrf.mxu0  ;;  %v4218_v10 = vpop.f32.mrf.mxu1  ;;  %v871_v20 = vmul.f32 %v5093_v12, %v5760_v32  ;;  %v6114_v32 = vld [vmem:[#allocation2] sm:$0xff] }
 0x241   :  { %5096 = vtanh.f32 %v776_v7  ;;  %v3331_v11 = vmul.f32 -1.442695, %v864_v8  ;;  %v5095_v13 = vpop.eup %5094  ;;  %7152 = vst [vmem:[#allocation44_spill] sm:$0xff] %v6114_v32  ;;  %v3338_v7 = vld [vmem:[%s3276_s1 + $0x58] sm:$0xff]  ;;  %s3294_s1 = scalar_lea.vmem [#allocation8], %s3360_s14 }
 0x243   :  { %5098 = vpow2.f32 %v3331_v11 }
 0x24e   :  { %v5097_v14 = vpop.eup %5096 }
 0x24f   :  { %v872_v21 = vmul.f32 %v5097_v14, %v5095_v13 }
 0x250   :  { %v5099_v29 = vpop.eup %5098 }
 0x251   :  { %v5913_v31 = vadd.f32 %v872_v21, %v871_v20  ;;  %v868_v28 = vadd.f32 1.0, %v5099_v29 }
 0x253   :  { %5100 = vtanh.f32 %v5913_v31 }
 0x254   :  { %5102 = vrcp.f32 %v868_v28 }
 0x260   :  { %v5101_v26 = vpop.eup %5100 }
 0x261   :  { %v5103_v25 = vpop.eup %5102 }
 0x262   :  { %v5919_v24 = vmul.f32 %v5103_v25, %v5101_v26 }
 0x264   :  { %3333 = vst [vmem:[%s3272_s11 + $0x8] sm:$0xff] %v5919_v24  ;;  %4252 = vmatmul.mubr.f32.vlgmr.msra.gmra.mxu0 %v5919_v24  ;;  %4287 = vmatmul.mubr.f32.vlgmr.msra.gmra.mxu1 %v5919_v24  ;;  %s2027_s11 = scalar_lea.vmem [#allocation11], %s3359_s10  ;;  %s5361_s10 = smov [#allocation11]  }
 0x265   :  { %4290 = vmatpush3.msra.mxu0 %v5551_v34  ;;  %4325 = vmatpush3.msra.mxu1 %v5553_v35  ;;  %v5998_v34 = vld [vmem:[#allocation2 + $0x1e0] sm:$0xff]  ;;  %v6000_v35 = vld [vmem:[#allocation2 + $0x1e8] sm:$0xff] }
 0x266   :  { %4291 = vmatprep.subr.mxu0 %v7114_v17  ;;  %4326 = vmatprep.subr.mxu1 %v7114_v17 }
 0x267   :  { %4292 = vmatpush3.msra.mxu0 %v5559_v36  ;;  %4327 = vmatpush3.msra.mxu1 %v5561_v37  ;;  %v6006_v36 = vld [vmem:[#allocation2 + $0x1c0] sm:$0xff]  ;;  %v6008_v37 = vld [vmem:[#allocation2 + $0x1c8] sm:$0xff] }
 0x268   :  { %4293 = vmatprep.subr.mxu0 %v7114_v17  ;;  %4328 = vmatprep.subr.mxu1 %v7114_v17 }
 0x269   :  { %4294 = vmatpush3.msra.mxu0 %v5567_v38  ;;  %4329 = vmatpush3.msra.mxu1 %v5569_v39  ;;  %v6014_v38 = vld [vmem:[#allocation2 + $0x1a0] sm:$0xff]  ;;  %v6016_v39 = vld [vmem:[#allocation2 + $0x1a8] sm:$0xff] }
 0x26a   :  { %4295 = vmatprep.subr.mxu0 %v7114_v17  ;;  %4330 = vmatprep.subr.mxu1 %v7114_v17 }
 0x26b   :  { %4296 = vmatpush3.msra.mxu0 %v5575_v40  ;;  %4331 = vmatpush3.msra.mxu1 %v5577_v41  ;;  %v6022_v40 = vld [vmem:[#allocation2 + $0x180] sm:$0xff]  ;;  %v6024_v41 = vld [vmem:[#allocation2 + $0x188] sm:$0xff] }
 0x26c   :  { %4297 = vmatprep.subr.mxu0 %v7114_v17  ;;  %4332 = vmatprep.subr.mxu1 %v7114_v17 }
 0x26d   :  { %4298 = vmatpush3.msra.mxu0 %v5583_v42  ;;  %4333 = vmatpush3.msra.mxu1 %v5585_v43  ;;  %v6030_v42 = vld [vmem:[#allocation2 + $0x160] sm:$0xff]  ;;  %v6032_v43 = vld [vmem:[#allocation2 + $0x168] sm:$0xff] }
 0x26e   :  { %4299 = vmatprep.subr.mxu0 %v7114_v17  ;;  %4334 = vmatprep.subr.mxu1 %v7114_v17 }
 0x26f   :  { %4300 = vmatpush3.msra.mxu0 %v5591_v44  ;;  %4335 = vmatpush3.msra.mxu1 %v5593_v45  ;;  %v6038_v44 = vld [vmem:[#allocation2 + $0x140] sm:$0xff]  ;;  %v6040_v45 = vld [vmem:[#allocation2 + $0x148] sm:$0xff] }
 0x270   :  { %4301 = vmatprep.subr.mxu0 %v7114_v17  ;;  %4336 = vmatprep.subr.mxu1 %v7114_v17 }
 0x271   :  { %4302 = vmatpush3.msra.mxu0 %v5599_v46  ;;  %4337 = vmatpush3.msra.mxu1 %v5601_v47  ;;  %v6046_v46 = vld [vmem:[#allocation2 + $0x120] sm:$0xff]  ;;  %v6048_v47 = vld [vmem:[#allocation2 + $0x128] sm:$0xff] }
 0x272   :  { %4303 = vmatprep.subr.mxu0 %v7114_v17  ;;  %4338 = vmatprep.subr.mxu1 %v7114_v17  ;;  %7135 = vst [vmem:[#allocation47_spill] sm:$0xff] %v6048_v47 }
 0x273   :  { %4304 = vmatpush3.msra.mxu0 %v5607_v48  ;;  %4339 = vmatpush3.msra.mxu1 %v5609_v49  ;;  %v6054_v48 = vld [vmem:[#allocation2 + $0x100] sm:$0xff]  ;;  %v6056_v49 = vld [vmem:[#allocation2 + $0x108] sm:$0xff] }
 0x274   :  { %4305 = vmatprep.subr.mxu0 %v7114_v17  ;;  %4340 = vmatprep.subr.mxu1 %v7114_v17  ;;  %7136 = vst [vmem:[#allocation48_spill] sm:$0xff] %v6054_v48  ;;  %7137 = vst [vmem:[#allocation29_spill] sm:$0xff] %v6056_v49 }
 0x275   :  { %4306 = vmatpush3.msra.mxu0 %v5615_v50  ;;  %4341 = vmatpush3.msra.mxu1 %v5617_v51  ;;  %v6062_v50 = vld [vmem:[#allocation2 + $0xe0] sm:$0xff]  ;;  %v6064_v51 = vld [vmem:[#allocation2 + $0xe8] sm:$0xff] }
 0x276   :  { %4307 = vmatprep.subr.mxu0 %v7114_v17  ;;  %4342 = vmatprep.subr.mxu1 %v7114_v17  ;;  %7138 = vst [vmem:[#allocation30_spill] sm:$0xff] %v6062_v50  ;;  %7139 = vst [vmem:[#allocation31_spill] sm:$0xff] %v6064_v51 }
 0x277   :  { %4308 = vmatpush3.msra.mxu0 %v5623_v52  ;;  %4343 = vmatpush3.msra.mxu1 %v5625_v53  ;;  %v6068_v52 = vld [vmem:[#allocation2 + $0xc0] sm:$0xff]  ;;  %v6070_v53 = vld [vmem:[#allocation2 + $0xc8] sm:$0xff] }
 0x278   :  { %4309 = vmatprep.subr.mxu0 %v7114_v17  ;;  %4344 = vmatprep.subr.mxu1 %v7114_v17  ;;  %7140 = vst [vmem:[#allocation32_spill] sm:$0xff] %v6068_v52  ;;  %7141 = vst [vmem:[#allocation33_spill] sm:$0xff] %v6070_v53 }
 0x279   :  { %4310 = vmatpush3.msra.mxu0 %v5631_v54  ;;  %4345 = vmatpush3.msra.mxu1 %v5633_v55  ;;  %v6074_v54 = vld [vmem:[#allocation2 + $0xa0] sm:$0xff]  ;;  %v6076_v55 = vld [vmem:[#allocation2 + $0xa8] sm:$0xff] }
 0x27a   :  { %4311 = vmatprep.subr.mxu0 %v7114_v17  ;;  %4346 = vmatprep.subr.mxu1 %v7114_v17  ;;  %7142 = vst [vmem:[#allocation34_spill] sm:$0xff] %v6074_v54  ;;  %7143 = vst [vmem:[#allocation35_spill] sm:$0xff] %v6076_v55 }
 0x27b   :  { %4312 = vmatpush3.msra.mxu0 %v5639_v56  ;;  %4347 = vmatpush3.msra.mxu1 %v7115_v18  ;;  %v6082_v56 = vld [vmem:[#allocation2 + $0x80] sm:$0xff]  ;;  %v6116_v18 = vld [vmem:[#allocation2 + $0x8] sm:$0xff] }
 0x27c   :  { %4313 = vmatprep.subr.mxu0 %v7114_v17  ;;  %4348 = vmatprep.subr.mxu1 %v7114_v17  ;;  %7144 = vst [vmem:[#allocation36_spill] sm:$0xff] %v6082_v56  ;;  %7153 = vst [vmem:[#allocation45_spill] sm:$0xff] %v6116_v18 }
 0x27d   :  { %4314 = vmatpush3.msra.mxu0 %v5647_v58  ;;  %4349 = vmatpush3.msra.mxu1 %v7116_v19  ;;  %v6090_v58 = vld [vmem:[#allocation2 + $0x60] sm:$0xff] }
 0x27e   :  { %4315 = vmatprep.subr.mxu0 %v7114_v17  ;;  %4350 = vmatprep.subr.mxu1 %v7114_v17  ;;  %7146 = vst [vmem:[#allocation38_spill] sm:$0xff] %v6090_v58 }
 0x27f   :  { %4316 = vmatpush3.msra.mxu0 %v5655_v60  ;;  %4351 = vmatpush3.msra.mxu1 %v5657_v61  ;;  %v6098_v60 = vld [vmem:[#allocation2 + $0x40] sm:$0xff]  ;;  %v6100_v61 = vld [vmem:[#allocation2 + $0x48] sm:$0xff] }
 0x280   :  { %4317 = vmatprep.subr.mxu0 %v7114_v17  ;;  %4352 = vmatprep.subr.mxu1 %v7114_v17  ;;  %7148 = vst [vmem:[#allocation40_spill] sm:$0xff] %v6098_v60  ;;  %7149 = vst [vmem:[#allocation41_spill] sm:$0xff] %v6100_v61 }
 0x281   :  { %4318 = vmatpush3.msra.mxu0 %v5663_v62  ;;  %4353 = vmatpush3.msra.mxu1 %v5665_v63  ;;  %v6106_v62 = vld [vmem:[#allocation2 + $0x20] sm:$0xff]  ;;  %v6108_v63 = vld [vmem:[#allocation2 + $0x28] sm:$0xff] }
 0x282   :  { %4319 = vmatprep.subr.mxu0 %v7114_v17  ;;  %4354 = vmatprep.subr.mxu1 %v7114_v17  ;;  %7150 = vst [vmem:[#allocation42_spill] sm:$0xff] %v6106_v62  ;;  %7151 = vst [vmem:[#allocation43_spill] sm:$0xff] %v6108_v63 }
 0x283   :  { %4320 = vmatpush3.msra.mxu0 %v5671_v57  ;;  %4321 = vmatprep.mubr.msk.f32.mxu0 %vm5359_vm0, %v7114_v17  ;;  %v6084_v57 = vld [vmem:[#allocation2 + $0x88] sm:$0xff] }
 0x284   :  { %4355 = vmatpush3.msra.mxu1 %v5675_v59  ;;  %4356 = vmatprep.mubr.msk.f32.mxu1 %vm5359_vm0, %v7114_v17  ;;  %7145 = vst [vmem:[#allocation37_spill] sm:$0xff] %v6084_v57  ;;  %v6092_v59 = vld [vmem:[#allocation2 + $0x68] sm:$0xff] }
 0x285   :  { %4322 = vmatmul.mubr.f32.vlgmr.msra.gmra.mxu0 %v5919_v24  ;;  %4357 = vmatmul.mubr.f32.vlgmr.msra.gmra.mxu1 %v5919_v24  ;;  %7147 = vst [vmem:[#allocation39_spill] sm:$0xff] %v6092_v59 }
 0x286   :  { %4359 = vmatprep.subr.mxu0 %v7114_v17  ;;  %4394 = vmatprep.subr.mxu1 %v7114_v17 }
 0x287   :  { %4391 = vmatprep.mubr.msk.f32.mxu0 %vm5359_vm0, %v7114_v17  ;;  %4426 = vmatprep.mubr.msk.f32.mxu1 %vm5359_vm0, %v7114_v17 }
 0x288   :  { %4360 = vmatpush3.msra.mxu0 %v5998_v34  ;;  %4395 = vmatpush3.msra.mxu1 %v6000_v35 }
 0x289   :  { %4361 = vmatprep.subr.mxu0 %v7114_v17  ;;  %4396 = vmatprep.subr.mxu1 %v7114_v17 }
 0x28a   :  { %4362 = vmatpush3.msra.mxu0 %v6006_v36  ;;  %4397 = vmatpush3.msra.mxu1 %v6008_v37 }
 0x28b   :  { %4363 = vmatprep.subr.mxu0 %v7114_v17  ;;  %4398 = vmatprep.subr.mxu1 %v7114_v17 }
 0x28c   :  { %4364 = vmatpush3.msra.mxu0 %v6014_v38  ;;  %4399 = vmatpush3.msra.mxu1 %v6016_v39 }
 0x28d   :  { %4365 = vmatprep.subr.mxu0 %v7114_v17  ;;  %4400 = vmatprep.subr.mxu1 %v7114_v17 }
 0x28e   :  { %4366 = vmatpush3.msra.mxu0 %v6022_v40  ;;  %4401 = vmatpush3.msra.mxu1 %v6024_v41 }
 0x28f   :  { %4367 = vmatprep.subr.mxu0 %v7114_v17  ;;  %4402 = vmatprep.subr.mxu1 %v7114_v17 }
 0x290   :  { %4368 = vmatpush3.msra.mxu0 %v6030_v42  ;;  %4403 = vmatpush3.msra.mxu1 %v6032_v43 }
 0x291   :  { %4369 = vmatprep.subr.mxu0 %v7114_v17  ;;  %4404 = vmatprep.subr.mxu1 %v7114_v17 }
 0x292   :  { %4370 = vmatpush3.msra.mxu0 %v6038_v44  ;;  %4405 = vmatpush3.msra.mxu1 %v6040_v45 }
 0x293   :  { %4371 = vmatprep.subr.mxu0 %v7114_v17  ;;  %4406 = vmatprep.subr.mxu1 %v7114_v17 }
 0x294   :  { %4372 = vmatpush3.msra.mxu0 %v6046_v46  ;;  %4407 = vmatpush3.msra.mxu1 %v6048_v47 }
 0x295   :  { %4373 = vmatprep.subr.mxu0 %v7114_v17  ;;  %4408 = vmatprep.subr.mxu1 %v7114_v17 }
 0x296   :  { %4374 = vmatpush3.msra.mxu0 %v6054_v48  ;;  %4409 = vmatpush3.msra.mxu1 %v6056_v49 }
 0x297   :  { %4375 = vmatprep.subr.mxu0 %v7114_v17  ;;  %4410 = vmatprep.subr.mxu1 %v7114_v17 }
 0x298   :  { %4376 = vmatpush3.msra.mxu0 %v6062_v50  ;;  %4411 = vmatpush3.msra.mxu1 %v6064_v51 }
 0x299   :  { %4377 = vmatprep.subr.mxu0 %v7114_v17  ;;  %4412 = vmatprep.subr.mxu1 %v7114_v17 }
 0x29a   :  { %4378 = vmatpush3.msra.mxu0 %v6068_v52  ;;  %4413 = vmatpush3.msra.mxu1 %v6070_v53 }
 0x29b   :  { %4379 = vmatprep.subr.mxu0 %v7114_v17  ;;  %4414 = vmatprep.subr.mxu1 %v7114_v17 }
 0x29c   :  { %4380 = vmatpush3.msra.mxu0 %v6074_v54  ;;  %4415 = vmatpush3.msra.mxu1 %v6076_v55 }
 0x29d   :  { %4381 = vmatprep.subr.mxu0 %v7114_v17  ;;  %4416 = vmatprep.subr.mxu1 %v7114_v17 }
 0x29e   :  { %4382 = vmatpush3.msra.mxu0 %v6082_v56  ;;  %4417 = vmatpush3.msra.mxu1 %v6084_v57 }
 0x29f   :  { %4383 = vmatprep.subr.mxu0 %v7114_v17  ;;  %4418 = vmatprep.subr.mxu1 %v7114_v17 }
 0x2a0   :  { %4384 = vmatpush3.msra.mxu0 %v6090_v58  ;;  %4419 = vmatpush3.msra.mxu1 %v6092_v59 }
 0x2a1   :  { %4385 = vmatprep.subr.mxu0 %v7114_v17  ;;  %4420 = vmatprep.subr.mxu1 %v7114_v17 }
 0x2a2   :  { %4386 = vmatpush3.msra.mxu0 %v6098_v60  ;;  %4421 = vmatpush3.msra.mxu1 %v6100_v61 }
 0x2a3   :  { %4387 = vmatprep.subr.mxu0 %v7114_v17  ;;  %4422 = vmatprep.subr.mxu1 %v7114_v17 }
 0x2a4   :  { %4388 = vmatpush3.msra.mxu0 %v6106_v62  ;;  %4423 = vmatpush3.msra.mxu1 %v6108_v63 }
 0x2a5   :  { %4389 = vmatprep.subr.mxu0 %v7114_v17  ;;  %4424 = vmatprep.subr.mxu1 %v7114_v17 }
 0x2a6   :  { %4390 = vmatpush3.msra.mxu0 %v6114_v32  ;;  %4425 = vmatpush3.msra.mxu1 %v6116_v18 }
 0x2a7   :  { %4429 = vmatprep.subr.mxu0 %v7114_v17  ;;  %4464 = vmatprep.subr.mxu1 %v7114_v17 }
 0x324   :  { %v970_v19 = vpop.f32.mrf.mxu0  ;;  %v1063_v27 = vpop.f32.mrf.mxu1 }
 0x325   :  { %v1067_v0 = vadd.f32 %v3336_v22, %v1063_v27  ;;  %v974_v15 = vadd.f32 %v3335_v33, %v970_v19  ;;  %v6138_v22 = vld [vmem:[#allocation2 + $0x1f0] sm:$0xff]  ;;  %v6140_v33 = vld [vmem:[#allocation2 + $0x1f8] sm:$0xff] }
 0x326   :  { %v4253_v30 = vpop.f32.mrf.mxu0  ;;  %v4288_v23 = vpop.f32.mrf.mxu1 }
 0x327   :  { %v3340_v16 = vmul.f32 -1.442695, %v1067_v0  ;;  %v3339_v1 = vmul.f32 -1.442695, %v974_v15  ;;  %v6147_v0 = vld [vmem:[#allocation2 + $0x1d8] sm:$0xff]  ;;  %v6153_v15 = vld [vmem:[#allocation2 + $0x1b0] sm:$0xff] }
 0x329   :  { %5104 = vpow2.f32 %v3340_v16  ;;  %v6155_v16 = vld [vmem:[#allocation2 + $0x1b8] sm:$0xff] }
 0x32a   :  { %5106 = vpow2.f32 %v3339_v1  ;;  %v6161_v1 = vld [vmem:[#allocation2 + $0x190] sm:$0xff] }
 0x336   :  { %v5105_v2 = vpop.eup %5104 }
 0x337   :  { %v5107_v3 = vpop.eup %5106  ;;  %v1071_v4 = vadd.f32 1.0, %v5105_v2  ;;  %v6163_v2 = vld [vmem:[#allocation2 + $0x198] sm:$0xff] }
 0x338   :  { %v978_v5 = vadd.f32 1.0, %v5107_v3  ;;  %v6169_v3 = vld [vmem:[#allocation2 + $0x170] sm:$0xff] }
 0x339   :  { %5108 = vrcp.f32 %v1071_v4  ;;  %v6171_v4 = vld [vmem:[#allocation2 + $0x178] sm:$0xff] }
 0x33a   :  { %5110 = vrcp.f32 %v978_v5  ;;  %v6177_v5 = vld [vmem:[#allocation2 + $0x150] sm:$0xff] }
 0x345   :  { %v1156_v8 = vpop.f32.mrf.mxu0  ;;  %v1244_v9 = vpop.f32.mrf.mxu1 }
 0x346   :  { %v1160_v10 = vadd.f32 %v3337_v6, %v1156_v8  ;;  %v1248_v11 = vadd.f32 %v3338_v7, %v1244_v9  ;;  %v5109_v20 = vpop.eup %5108  ;;  %v6179_v6 = vld [vmem:[#allocation2 + $0x158] sm:$0xff]  ;;  %v6185_v7 = vld [vmem:[#allocation2 + $0x130] sm:$0xff] }
 0x347   :  { %v4323_v12 = vpop.f32.mrf.mxu0  ;;  %v4358_v13 = vpop.f32.mrf.mxu1  ;;  %v1255_v28 = vmul.f32 %v5109_v20, %v5913_v31  ;;  %v6145_v31 = vld [vmem:[#allocation2 + $0x1d0] sm:$0xff]  ;;  %v6187_v8 = vld [vmem:[#allocation2 + $0x138] sm:$0xff] }
 0x348   :  { %5112 = vtanh.f32 %v1160_v10  ;;  %v3341_v14 = vmul.f32 -1.442695, %v1248_v11  ;;  %v5111_v21 = vpop.eup %5110  ;;  %v6193_v9 = vld [vmem:[#allocation2 + $0x110] sm:$0xff]  ;;  %v6195_v10 = vld [vmem:[#allocation2 + $0x118] sm:$0xff] }
 0x349   :  { %v6201_v11 = vld [vmem:[#allocation2 + $0xf0] sm:$0xff]  ;;  %v6203_v12 = vld [vmem:[#allocation2 + $0xf8] sm:$0xff] }
 0x34a   :  { %5114 = vpow2.f32 %v3341_v14  ;;  %v6209_v13 = vld [vmem:[#allocation2 + $0xd0] sm:$0xff]  ;;  %v6211_v14 = vld [vmem:[#allocation2 + $0xd8] sm:$0xff] }
 0x34b   :  { %v6217_v20 = vld [vmem:[#allocation2 + $0xb0] sm:$0xff] }
 0x355   :  { %v5113_v29 = vpop.eup %5112 }
 0x356   :  { %v1256_v26 = vmul.f32 %v5113_v29, %v5111_v21  ;;  %v6219_v21 = vld [vmem:[#allocation2 + $0xb8] sm:$0xff]  ;;  %v6225_v29 = vld [vmem:[#allocation2 + $0x90] sm:$0xff] }
 0x357   :  { %v5115_v25 = vpop.eup %5114  ;;  %7154 = vst [vmem:[#allocation46_spill] sm:$0xff] %v6225_v29 }
 0x358   :  { %v6130_v24 = vadd.f32 %v1256_v26, %v1255_v28  ;;  %v1252_v19 = vadd.f32 1.0, %v5115_v25  ;;  %v6227_v28 = vld [vmem:[#allocation2 + $0x98] sm:$0xff]  ;;  %v6233_v26 = vld [vmem:[#allocation2 + $0x70] sm:$0xff] }
 0x359   :  { %7155 = vst [vmem:[#allocation49_spill] sm:$0xff] %v6227_v28  ;;  %v6235_v25 = vld [vmem:[#allocation2 + $0x78] sm:$0xff] }
 0x35a   :  { %5116 = vtanh.f32 %v6130_v24  ;;  %7156 = vst [vmem:[#allocation50_spill] sm:$0xff] %v6235_v25 }
 0x35b   :  { %5118 = vrcp.f32 %v1252_v19  ;;  %v6241_v19 = vld [vmem:[#allocation2 + $0x50] sm:$0xff] }
 0x367   :  { %v5117_v27 = vpop.eup %5116 }
 0x368   :  { %v5119_v30 = vpop.eup %5118 }
 0x369   :  { %v6136_v23 = vmul.f32 %v5119_v30, %v5117_v27  ;;  %v6243_v27 = vld [vmem:[#allocation2 + $0x58] sm:$0xff]  ;;  %v6249_v30 = vld [vmem:[#allocation2 + $0x30] sm:$0xff] }
 0x36b   :  { %3343 = vst [vmem:[%s3280_s18 + $0x10] sm:$0xff] %v6136_v23  ;;  %4392 = vmatmul.mubr.f32.vlgmr.msra.gmra.mxu0 %v6136_v23  ;;  %4427 = vmatmul.mubr.f32.vlgmr.msra.gmra.mxu1 %v6136_v23  ;;  %s3298_s18 = scalar_lea.vmem [#allocation11], %s3368_s17 }
 0x36c   :  { %4430 = vmatpush3.msra.mxu0 %v6138_v22  ;;  %4465 = vmatpush3.msra.mxu1 %v6140_v33 }
 0x36d   :  { %4431 = vmatprep.subr.mxu0 %v7114_v17  ;;  %4466 = vmatprep.subr.mxu1 %v7114_v17 }
 0x36e   :  { %4432 = vmatpush3.msra.mxu0 %v6145_v31  ;;  %4467 = vmatpush3.msra.mxu1 %v6147_v0 }
 0x36f   :  { %4433 = vmatprep.subr.mxu0 %v7114_v17  ;;  %4468 = vmatprep.subr.mxu1 %v7114_v17 }
 0x370   :  { %4434 = vmatpush3.msra.mxu0 %v6153_v15  ;;  %4469 = vmatpush3.msra.mxu1 %v6155_v16 }
 0x371   :  { %4435 = vmatprep.subr.mxu0 %v7114_v17  ;;  %4470 = vmatprep.subr.mxu1 %v7114_v17 }
 0x372   :  { %4436 = vmatpush3.msra.mxu0 %v6161_v1  ;;  %4471 = vmatpush3.msra.mxu1 %v6163_v2 }
 0x373   :  { %4437 = vmatprep.subr.mxu0 %v7114_v17  ;;  %4472 = vmatprep.subr.mxu1 %v7114_v17 }
 0x374   :  { %4438 = vmatpush3.msra.mxu0 %v6169_v3  ;;  %4473 = vmatpush3.msra.mxu1 %v6171_v4 }
 0x375   :  { %4439 = vmatprep.subr.mxu0 %v7114_v17  ;;  %4474 = vmatprep.subr.mxu1 %v7114_v17 }
 0x376   :  { %4440 = vmatpush3.msra.mxu0 %v6177_v5  ;;  %4475 = vmatpush3.msra.mxu1 %v6179_v6 }
 0x377   :  { %4441 = vmatprep.subr.mxu0 %v7114_v17  ;;  %4476 = vmatprep.subr.mxu1 %v7114_v17 }
 0x378   :  { %4442 = vmatpush3.msra.mxu0 %v6185_v7  ;;  %4477 = vmatpush3.msra.mxu1 %v6187_v8 }
 0x379   :  { %4443 = vmatprep.subr.mxu0 %v7114_v17  ;;  %4478 = vmatprep.subr.mxu1 %v7114_v17 }
 0x37a   :  { %4444 = vmatpush3.msra.mxu0 %v6193_v9  ;;  %4479 = vmatpush3.msra.mxu1 %v6195_v10 }
 0x37b   :  { %4445 = vmatprep.subr.mxu0 %v7114_v17  ;;  %4480 = vmatprep.subr.mxu1 %v7114_v17 }
 0x37c   :  { %4446 = vmatpush3.msra.mxu0 %v6201_v11  ;;  %4481 = vmatpush3.msra.mxu1 %v6203_v12 }
 0x37d   :  { %4447 = vmatprep.subr.mxu0 %v7114_v17  ;;  %4482 = vmatprep.subr.mxu1 %v7114_v17 }
 0x37e   :  { %4448 = vmatpush3.msra.mxu0 %v6209_v13  ;;  %4483 = vmatpush3.msra.mxu1 %v6211_v14 }
 0x37f   :  { %4449 = vmatprep.subr.mxu0 %v7114_v17  ;;  %4484 = vmatprep.subr.mxu1 %v7114_v17 }
 0x380   :  { %4450 = vmatpush3.msra.mxu0 %v6217_v20  ;;  %4485 = vmatpush3.msra.mxu1 %v6219_v21 }
 0x381   :  { %4451 = vmatprep.subr.mxu0 %v7114_v17  ;;  %4486 = vmatprep.subr.mxu1 %v7114_v17 }
 0x382   :  { %4452 = vmatpush3.msra.mxu0 %v6225_v29  ;;  %4487 = vmatpush3.msra.mxu1 %v6227_v28  ;;  %v6251_v29 = vld [vmem:[#allocation2 + $0x38] sm:$0xff]  ;;  %v6257_v28 = vld [vmem:[#allocation2 + $0x10] sm:$0xff] }
 0x383   :  { %4453 = vmatprep.subr.mxu0 %v7114_v17  ;;  %4488 = vmatprep.subr.mxu1 %v7114_v17 }
 0x384   :  { %4454 = vmatpush3.msra.mxu0 %v6233_v26  ;;  %4489 = vmatpush3.msra.mxu1 %v6235_v25  ;;  %v6261_v25 = vld [vmem:[#allocation2 + $0x18] sm:$0xff] }
 0x385   :  { %4455 = vmatprep.subr.mxu0 %v7114_v17  ;;  %4490 = vmatprep.subr.mxu1 %v7114_v17 }
 0x386   :  { %4456 = vmatpush3.msra.mxu0 %v6241_v19  ;;  %4491 = vmatpush3.msra.mxu1 %v6243_v27 }
 0x387   :  { %4457 = vmatprep.subr.mxu0 %v7114_v17  ;;  %4492 = vmatprep.subr.mxu1 %v7114_v17 }
 0x388   :  { %4458 = vmatpush3.msra.mxu0 %v6249_v30  ;;  %4493 = vmatpush3.msra.mxu1 %v6251_v29 }
 0x389   :  { %4459 = vmatprep.subr.mxu0 %v7114_v17  ;;  %4494 = vmatprep.subr.mxu1 %v7114_v17 }
 0x38a   :  { %4460 = vmatpush3.msra.mxu0 %v6257_v28  ;;  %4461 = vmatprep.mubr.msk.f32.mxu0 %vm5359_vm0, %v7114_v17 }
 0x38b   :  { %4495 = vmatpush3.msra.mxu1 %v6261_v25  ;;  %4496 = vmatprep.mubr.msk.f32.mxu1 %vm5359_vm0, %v7114_v17 }
 0x38c   :  { %4462 = vmatmul.mubr.f32.vlgmr.msra.gmra.mxu0 %v6136_v23  ;;  %4497 = vmatmul.mubr.f32.vlgmr.msra.gmra.mxu1 %v6136_v23 }
 0x38d   :  { %4499 = vmatprep.subr.mxu0 %v7114_v17  ;;  %4534 = vmatprep.subr.mxu1 %v7114_v17 }
 0x38e   :  { %4500 = vmatpush3.msra.mxu0 %v5998_v34  ;;  %4535 = vmatpush3.msra.mxu1 %v6000_v35 }
 0x38f   :  { %4501 = vmatprep.subr.mxu0 %v7114_v17  ;;  %4536 = vmatprep.subr.mxu1 %v7114_v17 }
 0x390   :  { %4502 = vmatpush3.msra.mxu0 %v6006_v36  ;;  %4537 = vmatpush3.msra.mxu1 %v6008_v37 }
 0x391   :  { %4503 = vmatprep.subr.mxu0 %v7114_v17  ;;  %4538 = vmatprep.subr.mxu1 %v7114_v17 }
 0x392   :  { %4504 = vmatpush3.msra.mxu0 %v6014_v38  ;;  %4539 = vmatpush3.msra.mxu1 %v6016_v39 }
 0x393   :  { %4505 = vmatprep.subr.mxu0 %v7114_v17  ;;  %4540 = vmatprep.subr.mxu1 %v7114_v17 }
 0x394   :  { %4506 = vmatpush3.msra.mxu0 %v6022_v40  ;;  %4541 = vmatpush3.msra.mxu1 %v6024_v41 }
 0x395   :  { %4507 = vmatprep.subr.mxu0 %v7114_v17  ;;  %4542 = vmatprep.subr.mxu1 %v7114_v17 }
 0x396   :  { %4508 = vmatpush3.msra.mxu0 %v6030_v42  ;;  %4543 = vmatpush3.msra.mxu1 %v6032_v43 }
 0x397   :  { %4509 = vmatprep.subr.mxu0 %v7114_v17  ;;  %4544 = vmatprep.subr.mxu1 %v7114_v17 }
 0x398   :  { %4510 = vmatpush3.msra.mxu0 %v6038_v44  ;;  %4545 = vmatpush3.msra.mxu1 %v6040_v45 }
 0x399   :  { %4511 = vmatprep.subr.mxu0 %v7114_v17  ;;  %4546 = vmatprep.subr.mxu1 %v7114_v17 }
 0x39a   :  { %4512 = vmatpush3.msra.mxu0 %v6046_v46  ;;  %4547 = vmatpush3.msra.mxu1 %v6048_v47 }
 0x39b   :  { %4513 = vmatprep.subr.mxu0 %v7114_v17  ;;  %4548 = vmatprep.subr.mxu1 %v7114_v17 }
 0x39c   :  { %4514 = vmatpush3.msra.mxu0 %v6054_v48  ;;  %4549 = vmatpush3.msra.mxu1 %v6056_v49 }
 0x39d   :  { %4515 = vmatprep.subr.mxu0 %v7114_v17  ;;  %4550 = vmatprep.subr.mxu1 %v7114_v17 }
 0x39e   :  { %4516 = vmatpush3.msra.mxu0 %v6062_v50  ;;  %4551 = vmatpush3.msra.mxu1 %v6064_v51  ;;  %v3348_v51 = vld [vmem:[%s3283_s3 + $0x78] sm:$0xff] }
 0x39f   :  { %4517 = vmatprep.subr.mxu0 %v7114_v17  ;;  %4552 = vmatprep.subr.mxu1 %v7114_v17 }
 0x3a0   :  { %4518 = vmatpush3.msra.mxu0 %v6068_v52  ;;  %4553 = vmatpush3.msra.mxu1 %v6070_v53  ;;  %v3347_v52 = vld [vmem:[%s3283_s3 + $0x70] sm:$0xff] }
 0x3a1   :  { %4519 = vmatprep.subr.mxu0 %v7114_v17  ;;  %4554 = vmatprep.subr.mxu1 %v7114_v17 }
 0x3a2   :  { %4520 = vmatpush3.msra.mxu0 %v6074_v54  ;;  %4555 = vmatpush3.msra.mxu1 %v6076_v55 }
 0x3a3   :  { %4521 = vmatprep.subr.mxu0 %v7114_v17  ;;  %4556 = vmatprep.subr.mxu1 %v7114_v17 }
 0x3a4   :  { %4522 = vmatpush3.msra.mxu0 %v6082_v56  ;;  %4557 = vmatpush3.msra.mxu1 %v6084_v57 }
 0x3a5   :  { %4523 = vmatprep.subr.mxu0 %v7114_v17  ;;  %4558 = vmatprep.subr.mxu1 %v7114_v17 }
 0x3a6   :  { %4524 = vmatpush3.msra.mxu0 %v6090_v58  ;;  %4559 = vmatpush3.msra.mxu1 %v6092_v59 }
 0x3a7   :  { %4525 = vmatprep.subr.mxu0 %v7114_v17  ;;  %4560 = vmatprep.subr.mxu1 %v7114_v17 }
 0x3a8   :  { %4526 = vmatpush3.msra.mxu0 %v6098_v60  ;;  %4561 = vmatpush3.msra.mxu1 %v6100_v61  ;;  %v3345_v61 = vld [vmem:[%s3283_s3 + $0x60] sm:$0xff] }
 0x3a9   :  { %4527 = vmatprep.subr.mxu0 %v7114_v17  ;;  %4562 = vmatprep.subr.mxu1 %v7114_v17 }
 0x3aa   :  { %4528 = vmatpush3.msra.mxu0 %v6106_v62  ;;  %4563 = vmatpush3.msra.mxu1 %v6108_v63 }
 0x3ab   :  { %4529 = vmatprep.subr.mxu0 %v7114_v17  ;;  %4564 = vmatprep.subr.mxu1 %v7114_v17 }
 0x3ac   :  { %4530 = vmatpush3.msra.mxu0 %v6114_v32  ;;  %4565 = vmatpush3.msra.mxu1 %v6116_v18  ;;  %v3346_v18 = vld [vmem:[%s3283_s3 + $0x68] sm:$0xff]  ;;  %s3302_s3 = scalar_lea.vmem [#allocation8], %s3370_s20 }
 0x3ad   :  { %4531 = vmatprep.mubr.msk.f32.mxu0 %vm5359_vm0, %v7114_v17  ;;  %4566 = vmatprep.mubr.msk.f32.mxu1 %vm5359_vm0, %v7114_v17 }
 0x3ae   :  { %4569 = vmatprep.subr.mxu0 %v7114_v17  ;;  %4604 = vmatprep.subr.mxu1 %v7114_v17 }
 0x42b   :  { %v1353_v23 = vpop.f32.mrf.mxu0  ;;  %v1446_v63 = vpop.f32.mrf.mxu1 }
 0x42c   :  { %v1450_v60 = vadd.f32 %v3346_v18, %v1446_v63  ;;  %v1357_v59 = vadd.f32 %v3345_v61, %v1353_v23  ;;  %v7176_v23 = vld [vmem:[#allocation43_spill] sm:$0xff] }
 0x42d   :  { %v4393_v62 = vpop.f32.mrf.mxu0  ;;  %v4428_v32 = vpop.f32.mrf.mxu1 }
 0x42e   :  { %v3350_v58 = vmul.f32 -1.442695, %v1450_v60  ;;  %v3349_v57 = vmul.f32 -1.442695, %v1357_v59 }
 0x430   :  { %5120 = vpow2.f32 %v3350_v58 }
 0x431   :  { %5122 = vpow2.f32 %v3349_v57 }
 0x43d   :  { %v5121_v56 = vpop.eup %5120 }
 0x43e   :  { %v5123_v55 = vpop.eup %5122  ;;  %v1454_v54 = vadd.f32 1.0, %v5121_v56 }
 0x43f   :  { %v1361_v53 = vadd.f32 1.0, %v5123_v55 }
 0x440   :  { %5124 = vrcp.f32 %v1454_v54  ;;  %v7174_v54 = vld [vmem:[#allocation41_spill] sm:$0xff] }
 0x441   :  { %5126 = vrcp.f32 %v1361_v53  ;;  %v7173_v53 = vld [vmem:[#allocation40_spill] sm:$0xff] }
 0x44c   :  { %v1539_v50 = vpop.f32.mrf.mxu0  ;;  %v1627_v49 = vpop.f32.mrf.mxu1 }
 0x44d   :  { %v1543_v62 = vadd.f32 %v3347_v52, %v1539_v50  ;;  %v1631_v32 = vadd.f32 %v3348_v51, %v1627_v49  ;;  %v5125_v59 = vpop.eup %5124  ;;  %v7157_v50 = vld [vmem:[#allocation46_spill] sm:$0xff]  ;;  %v7158_v51 = vld [vmem:[#allocation49_spill] sm:$0xff] }
 0x44e   :  { %v4463_v48 = vpop.f32.mrf.mxu0  ;;  %v4498_v47 = vpop.f32.mrf.mxu1  ;;  %v1638_v60 = vmul.f32 %v5125_v59, %v6130_v24  ;;  %v7159_v52 = vld [vmem:[#allocation50_spill] sm:$0xff] }
 0x44f   :  { %5128 = vtanh.f32 %v1543_v62  ;;  %v3351_v61 = vmul.f32 -1.442695, %v1631_v32  ;;  %v5127_v58 = vpop.eup %5126  ;;  %v7175_v24 = vld [vmem:[#allocation42_spill] sm:$0xff]  ;;  %v7177_v62 = vld [vmem:[#allocation44_spill] sm:$0xff]  ;;  %v7178_v32 = vld [vmem:[#allocation45_spill] sm:$0xff] }
 0x451   :  { %5130 = vpow2.f32 %v3351_v61 }
 0x45c   :  { %v5129_v57 = vpop.eup %5128 }
 0x45d   :  { %v1639_v56 = vmul.f32 %v5129_v57, %v5127_v58 }
 0x45e   :  { %v5131_v55 = vpop.eup %5130 }
 0x45f   :  { %v6347_v63 = vadd.f32 %v1639_v56, %v1638_v60  ;;  %v1635_v18 = vadd.f32 1.0, %v5131_v55  ;;  %v1651_v60 = vld [vmem:[%s1649_s30 + $0x8] sm:$0xff]  ;;  %v1650_v56 = vld [vmem:[%s1649_s30] sm:$0xff] }
 0x461   :  { %5132 = vtanh.f32 %v6347_v63 }
 0x462   :  { %5134 = vrcp.f32 %v1635_v18 }
 0x46e   :  { %v5133_v47 = vpop.eup %5132 }
 0x46f   :  { %v5135_v48 = vpop.eup %5134 }
 0x470   :  { %v6353_v49 = vmul.f32 %v5135_v48, %v5133_v47 }
 0x472   :  { %3353 = vst [vmem:[%s3286_s23 + $0x18] sm:$0xff] %v6353_v49  ;;  %4532 = vmatmul.mubr.f32.vlgmr.msra.gmra.mxu0 %v6353_v49  ;;  %4567 = vmatmul.mubr.f32.vlgmr.msra.gmra.mxu1 %v6353_v49  ;;  %s3306_s23 = scalar_lea.vmem [#allocation11], %s3378_s22 }
 0x473   :  { %4570 = vmatpush3.msra.mxu0 %v6138_v22  ;;  %4605 = vmatpush3.msra.mxu1 %v6140_v33 }
 0x474   :  { %4571 = vmatprep.subr.mxu0 %v7114_v17  ;;  %4606 = vmatprep.subr.mxu1 %v7114_v17 }
 0x475   :  { %4572 = vmatpush3.msra.mxu0 %v6145_v31  ;;  %4607 = vmatpush3.msra.mxu1 %v6147_v0 }
 0x476   :  { %4573 = vmatprep.subr.mxu0 %v7114_v17  ;;  %4608 = vmatprep.subr.mxu1 %v7114_v17 }
 0x477   :  { %4574 = vmatpush3.msra.mxu0 %v6153_v15  ;;  %4609 = vmatpush3.msra.mxu1 %v6155_v16 }
 0x478   :  { %4575 = vmatprep.subr.mxu0 %v7114_v17  ;;  %4610 = vmatprep.subr.mxu1 %v7114_v17 }
 0x479   :  { %4576 = vmatpush3.msra.mxu0 %v6161_v1  ;;  %4611 = vmatpush3.msra.mxu1 %v6163_v2 }
 0x47a   :  { %4577 = vmatprep.subr.mxu0 %v7114_v17  ;;  %4612 = vmatprep.subr.mxu1 %v7114_v17 }
 0x47b   :  { %4578 = vmatpush3.msra.mxu0 %v6169_v3  ;;  %4613 = vmatpush3.msra.mxu1 %v6171_v4 }
 0x47c   :  { %4579 = vmatprep.subr.mxu0 %v7114_v17  ;;  %4614 = vmatprep.subr.mxu1 %v7114_v17 }
 0x47d   :  { %4580 = vmatpush3.msra.mxu0 %v6177_v5  ;;  %4615 = vmatpush3.msra.mxu1 %v6179_v6 }
 0x47e   :  { %4581 = vmatprep.subr.mxu0 %v7114_v17  ;;  %4616 = vmatprep.subr.mxu1 %v7114_v17 }
 0x47f   :  { %4582 = vmatpush3.msra.mxu0 %v6185_v7  ;;  %4617 = vmatpush3.msra.mxu1 %v6187_v8 }
 0x480   :  { %4583 = vmatprep.subr.mxu0 %v7114_v17  ;;  %4618 = vmatprep.subr.mxu1 %v7114_v17 }
 0x481   :  { %4584 = vmatpush3.msra.mxu0 %v6193_v9  ;;  %4619 = vmatpush3.msra.mxu1 %v6195_v10 }
 0x482   :  { %4585 = vmatprep.subr.mxu0 %v7114_v17  ;;  %4620 = vmatprep.subr.mxu1 %v7114_v17 }
 0x483   :  { %4586 = vmatpush3.msra.mxu0 %v6201_v11  ;;  %4621 = vmatpush3.msra.mxu1 %v6203_v12 }
 0x484   :  { %4587 = vmatprep.subr.mxu0 %v7114_v17  ;;  %4622 = vmatprep.subr.mxu1 %v7114_v17 }
 0x485   :  { %4588 = vmatpush3.msra.mxu0 %v6209_v13  ;;  %4623 = vmatpush3.msra.mxu1 %v6211_v14 }
 0x486   :  { %4589 = vmatprep.subr.mxu0 %v7114_v17  ;;  %4624 = vmatprep.subr.mxu1 %v7114_v17 }
 0x487   :  { %4590 = vmatpush3.msra.mxu0 %v6217_v20  ;;  %4625 = vmatpush3.msra.mxu1 %v6219_v21 }
 0x488   :  { %4591 = vmatprep.subr.mxu0 %v7114_v17  ;;  %4626 = vmatprep.subr.mxu1 %v7114_v17 }
 0x489   :  { %4592 = vmatpush3.msra.mxu0 %v7157_v50  ;;  %4627 = vmatpush3.msra.mxu1 %v7158_v51 }
 0x48a   :  { %4593 = vmatprep.subr.mxu0 %v7114_v17  ;;  %4628 = vmatprep.subr.mxu1 %v7114_v17 }
 0x48b   :  { %4594 = vmatpush3.msra.mxu0 %v6233_v26  ;;  %4629 = vmatpush3.msra.mxu1 %v7159_v52 }
 0x48c   :  { %4595 = vmatprep.subr.mxu0 %v7114_v17  ;;  %4630 = vmatprep.subr.mxu1 %v7114_v17 }
 0x48d   :  { %4596 = vmatpush3.msra.mxu0 %v6241_v19  ;;  %4631 = vmatpush3.msra.mxu1 %v6243_v27 }
 0x48e   :  { %4597 = vmatprep.subr.mxu0 %v7114_v17  ;;  %4632 = vmatprep.subr.mxu1 %v7114_v17 }
 0x48f   :  { %4598 = vmatpush3.msra.mxu0 %v6249_v30  ;;  %4633 = vmatpush3.msra.mxu1 %v6251_v29 }
 0x490   :  { %4599 = vmatprep.subr.mxu0 %v7114_v17  ;;  %4634 = vmatprep.subr.mxu1 %v7114_v17 }
 0x491   :  { %4600 = vmatpush3.msra.mxu0 %v6257_v28  ;;  %4601 = vmatprep.mubr.msk.f32.mxu0 %vm5359_vm0, %v7114_v17 }
 0x492   :  { %4635 = vmatpush3.msra.mxu1 %v6261_v25  ;;  %4636 = vmatprep.mubr.msk.f32.mxu1 %vm5359_vm0, %v7114_v17 }
 0x493   :  { %4602 = vmatmul.mubr.f32.vlgmr.msra.gmra.mxu0 %v6353_v49  ;;  %4637 = vmatmul.mubr.f32.vlgmr.msra.gmra.mxu1 %v6353_v49 }
 0x494   :  { %4639 = vmatprep.subr.mxu0 %v7114_v17  ;;  %4674 = vmatprep.subr.mxu1 %v7114_v17 }
 0x495   :  { %4640 = vmatpush3.msra.mxu0 %v5998_v34  ;;  %4675 = vmatpush3.msra.mxu1 %v6000_v35  ;;  %v7160_v34 = vld [vmem:[#allocation47_spill] sm:$0xff]  ;;  %v7161_v35 = vld [vmem:[#allocation48_spill] sm:$0xff] }
 0x496   :  { %4641 = vmatprep.subr.mxu0 %v7114_v17  ;;  %4676 = vmatprep.subr.mxu1 %v7114_v17 }
 0x497   :  { %4642 = vmatpush3.msra.mxu0 %v6006_v36  ;;  %4677 = vmatpush3.msra.mxu1 %v6008_v37  ;;  %v7162_v36 = vld [vmem:[#allocation29_spill] sm:$0xff]  ;;  %v7163_v37 = vld [vmem:[#allocation30_spill] sm:$0xff] }
 0x498   :  { %4643 = vmatprep.subr.mxu0 %v7114_v17  ;;  %4678 = vmatprep.subr.mxu1 %v7114_v17 }
 0x499   :  { %4644 = vmatpush3.msra.mxu0 %v6014_v38  ;;  %4679 = vmatpush3.msra.mxu1 %v6016_v39  ;;  %v7164_v38 = vld [vmem:[#allocation31_spill] sm:$0xff]  ;;  %v7165_v39 = vld [vmem:[#allocation32_spill] sm:$0xff] }
 0x49a   :  { %4645 = vmatprep.subr.mxu0 %v7114_v17  ;;  %4680 = vmatprep.subr.mxu1 %v7114_v17 }
 0x49b   :  { %4646 = vmatpush3.msra.mxu0 %v6022_v40  ;;  %4681 = vmatpush3.msra.mxu1 %v6024_v41  ;;  %v7166_v40 = vld [vmem:[#allocation33_spill] sm:$0xff]  ;;  %v7167_v41 = vld [vmem:[#allocation34_spill] sm:$0xff] }
 0x49c   :  { %4647 = vmatprep.subr.mxu0 %v7114_v17  ;;  %4682 = vmatprep.subr.mxu1 %v7114_v17 }
 0x49d   :  { %4648 = vmatpush3.msra.mxu0 %v6030_v42  ;;  %4683 = vmatpush3.msra.mxu1 %v6032_v43  ;;  %v7168_v42 = vld [vmem:[#allocation35_spill] sm:$0xff]  ;;  %v7169_v43 = vld [vmem:[#allocation36_spill] sm:$0xff] }
 0x49e   :  { %4649 = vmatprep.subr.mxu0 %v7114_v17  ;;  %4684 = vmatprep.subr.mxu1 %v7114_v17 }
 0x49f   :  { %4650 = vmatpush3.msra.mxu0 %v6038_v44  ;;  %4685 = vmatpush3.msra.mxu1 %v6040_v45  ;;  %v7170_v44 = vld [vmem:[#allocation37_spill] sm:$0xff]  ;;  %v7171_v45 = vld [vmem:[#allocation38_spill] sm:$0xff] }
 0x4a0   :  { %4651 = vmatprep.subr.mxu0 %v7114_v17  ;;  %4686 = vmatprep.subr.mxu1 %v7114_v17 }
 0x4a1   :  { %4652 = vmatpush3.msra.mxu0 %v6046_v46  ;;  %4687 = vmatpush3.msra.mxu1 %v7160_v34  ;;  %v7172_v46 = vld [vmem:[#allocation39_spill] sm:$0xff] }
 0x4a2   :  { %4653 = vmatprep.subr.mxu0 %v7114_v17  ;;  %4688 = vmatprep.subr.mxu1 %v7114_v17 }
 0x4a3   :  { %4654 = vmatpush3.msra.mxu0 %v7161_v35  ;;  %4689 = vmatpush3.msra.mxu1 %v7162_v36 }
 0x4a4   :  { %4655 = vmatprep.subr.mxu0 %v7114_v17  ;;  %4690 = vmatprep.subr.mxu1 %v7114_v17 }
 0x4a5   :  { %4656 = vmatpush3.msra.mxu0 %v7163_v37  ;;  %4691 = vmatpush3.msra.mxu1 %v7164_v38  ;;  %v1652_v37 = vld [vmem:[%s1649_s30 + $0x10] sm:$0xff]  ;;  %v1653_v38 = vld [vmem:[%s1649_s30 + $0x18] sm:$0xff]  ;;  %s3388_s30 = smul.u32 4294967240, %s7034_s0 }
 0x4a6   :  { %4657 = vmatprep.subr.mxu0 %v7114_v17  ;;  %4692 = vmatprep.subr.mxu1 %v7114_v17 }
 0x4a7   :  { %4658 = vmatpush3.msra.mxu0 %v7165_v39  ;;  %4693 = vmatpush3.msra.mxu1 %v7166_v40  ;;  %s3314_s14 = scalar_lea.vmem [#allocation11], %s3388_s30 }
 0x4a8   :  { %4659 = vmatprep.subr.mxu0 %v7114_v17  ;;  %4694 = vmatprep.subr.mxu1 %v7114_v17 }
 0x4a9   :  { %4660 = vmatpush3.msra.mxu0 %v7167_v41  ;;  %4695 = vmatpush3.msra.mxu1 %v7168_v42 }
 0x4aa   :  { %4661 = vmatprep.subr.mxu0 %v7114_v17  ;;  %4696 = vmatprep.subr.mxu1 %v7114_v17 }
 0x4ab   :  { %4662 = vmatpush3.msra.mxu0 %v7169_v43  ;;  %4697 = vmatpush3.msra.mxu1 %v7170_v44 }
 0x4ac   :  { %4663 = vmatprep.subr.mxu0 %v7114_v17  ;;  %4698 = vmatprep.subr.mxu1 %v7114_v17 }
 0x4ad   :  { %4664 = vmatpush3.msra.mxu0 %v7171_v45  ;;  %4699 = vmatpush3.msra.mxu1 %v7172_v46 }
 0x4ae   :  { %4665 = vmatprep.subr.mxu0 %v7114_v17  ;;  %4700 = vmatprep.subr.mxu1 %v7114_v17 }
 0x4af   :  { %4666 = vmatpush3.msra.mxu0 %v7173_v53  ;;  %4701 = vmatpush3.msra.mxu1 %v7174_v54 }
 0x4b0   :  { %4667 = vmatprep.subr.mxu0 %v7114_v17  ;;  %4702 = vmatprep.subr.mxu1 %v7114_v17 }
 0x4b1   :  { %4668 = vmatpush3.msra.mxu0 %v7175_v24  ;;  %4703 = vmatpush3.msra.mxu1 %v7176_v23 }
 0x4b2   :  { %4669 = vmatprep.subr.mxu0 %v7114_v17  ;;  %4704 = vmatprep.subr.mxu1 %v7114_v17 }
 0x4b3   :  { %4670 = vmatpush3.msra.mxu0 %v7177_v62  ;;  %4705 = vmatpush3.msra.mxu1 %v7178_v32 }
 0x4b4   :  { %4671 = vmatprep.mubr.msk.f32.mxu0 %vm5359_vm0, %v7114_v17  ;;  %4706 = vmatprep.mubr.msk.f32.mxu1 %vm5359_vm0, %v7114_v17 }
 0x4b5   :  { %4709 = vmatprep.subr.mxu0 %v7114_v17  ;;  %4744 = vmatprep.subr.mxu1 %v7114_v17 }
 0x532   :  { %v1736_v61 = vpop.f32.mrf.mxu0  ;;  %v1829_v59 = vpop.f32.mrf.mxu1 }
 0x533   :  { %v1833_v55 = vadd.f32 %v1829_v59, %v1651_v60  ;;  %v1740_v18 = vadd.f32 %v1736_v61, %v1650_v56 }
 0x534   :  { %v4533_v58 = vpop.f32.mrf.mxu0  ;;  %v4568_v57 = vpop.f32.mrf.mxu1 }
 0x535   :  { %v3357_v47 = vmul.f32 -1.442695, %v1833_v55  ;;  %v3356_v48 = vmul.f32 -1.442695, %v1740_v18  ;;  %v3362_v18 = vld [vmem:[%s3294_s1 + $0xa8] sm:$0xff] }
 0x537   :  { %5136 = vpow2.f32 %v3357_v47  ;;  %v3361_v47 = vld [vmem:[%s3294_s1 + $0xa0] sm:$0xff] }
 0x538   :  { %5138 = vpow2.f32 %v3356_v48 }
 0x544   :  { %v5137_v49 = vpop.eup %5136 }
 0x545   :  { %v5139_v34 = vpop.eup %5138  ;;  %v1837_v35 = vadd.f32 1.0, %v5137_v49 }
 0x546   :  { %v1744_v36 = vadd.f32 1.0, %v5139_v34 }
 0x547   :  { %5140 = vrcp.f32 %v1837_v35 }
 0x548   :  { %5142 = vrcp.f32 %v1744_v36 }
 0x553   :  { %v1922_v39 = vpop.f32.mrf.mxu0  ;;  %v2010_v40 = vpop.f32.mrf.mxu1 }
 0x554   :  { %v1926_v41 = vadd.f32 %v1922_v39, %v1652_v37  ;;  %v2014_v42 = vadd.f32 %v2010_v40, %v1653_v38  ;;  %v5141_v46 = vpop.eup %5140  ;;  %v3363_v40 = vld [vmem:[%s3294_s1 + $0xb0] sm:$0xff] }
 0x555   :  { %v4603_v43 = vpop.f32.mrf.mxu0  ;;  %v4638_v44 = vpop.f32.mrf.mxu1  ;;  %v2021_v24 = vmul.f32 %v5141_v46, %v6347_v63  ;;  %v6700_v63 = vld [vmem:[#allocation2 + $0x28] sm:$0xff] }
 0x556   :  { %5144 = vtanh.f32 %v1926_v41  ;;  %v3358_v45 = vmul.f32 -1.442695, %v2014_v42  ;;  %v5143_v53 = vpop.eup %5142  ;;  %v3364_v41 = vld [vmem:[%s3294_s1 + $0xb8] sm:$0xff]  ;;  %s5280_s1 = scalar_lea.vmem %s3215_s9, 128 }
 0x557   :  { %p5281_p6 = scmp.ne.s32.totalorder %s3215_s9, %s5280_s1  ;;  %p5286_p8 = scmp.lt.s32.totalorder %s5280_s1, %s5280_s1 }
 0x558   :  { %5146 = vpow2.f32 %v3358_v45 }
 0x559   :  { %p5287_p9 = por %p5286_p8, %p5285_p7 }
 0x55b   :  { %p5288_p10 = pnand %p5287_p9, %p5281_p6 }
 0x563   :  { %v5145_v54 = vpop.eup %5144 }
 0x564   :  { %v2022_v23 = vmul.f32 %v5145_v54, %v5143_v53 }
 0x565   :  { %v5147_v62 = vpop.eup %5146 }
 0x566   :  { %v6504_v32 = vadd.f32 %v2022_v23, %v2021_v24  ;;  %v2018_v61 = vadd.f32 1.0, %v5147_v62 }
 0x568   :  { %5148 = vtanh.f32 %v6504_v32 }
 0x569   :  { %5150 = vrcp.f32 %v2018_v61 }
 0x575   :  { %v5149_v59 = vpop.eup %5148 }
 0x576   :  { %v5151_v58 = vpop.eup %5150 }
 0x577   :  { %v6511_v57 = vmul.f32 %v5151_v58, %v5149_v59 }
 0x579   :  { %4672 = vmatmul.mubr.f32.vlgmr.msra.gmra.mxu0 %v6511_v57  ;;  %2028 = vst [vmem:[%s2027_s11] sm:$0xff] %v6511_v57  ;;  %4707 = vmatmul.mubr.f32.vlgmr.msra.gmra.mxu1 %v6511_v57  ;;  %s3201_s11 = sshll.u32 %s5361_s10, 4  ;;  %s3202_s11 = int_to_ptr.vmem [resolvable:$true] %s3201_s11 }
 0x57a   :  { %4710 = vmatpush3.msra.mxu0 %v6138_v22  ;;  %4745 = vmatpush3.msra.mxu1 %v6140_v33  ;;  %v6590_v22 = vld [vmem:[#allocation2 + $0x1e0] sm:$0xff]  ;;  %v6592_v33 = vld [vmem:[#allocation2 + $0x1e8] sm:$0xff] }
 0x57b   :  { %4711 = vmatprep.subr.mxu0 %v7114_v17  ;;  %4746 = vmatprep.subr.mxu1 %v7114_v17 }
 0x57c   :  { %4712 = vmatpush3.msra.mxu0 %v6145_v31  ;;  %4747 = vmatpush3.msra.mxu1 %v6147_v0  ;;  %v6598_v31 = vld [vmem:[#allocation2 + $0x1c0] sm:$0xff]  ;;  %v6600_v0 = vld [vmem:[#allocation2 + $0x1c8] sm:$0xff] }
 0x57d   :  { %4713 = vmatprep.subr.mxu0 %v7114_v17  ;;  %4748 = vmatprep.subr.mxu1 %v7114_v17 }
 0x57e   :  { %4714 = vmatpush3.msra.mxu0 %v6153_v15  ;;  %4749 = vmatpush3.msra.mxu1 %v6155_v16  ;;  %v6606_v15 = vld [vmem:[#allocation2 + $0x1a0] sm:$0xff]  ;;  %v6608_v16 = vld [vmem:[#allocation2 + $0x1a8] sm:$0xff] }
 0x57f   :  { %4715 = vmatprep.subr.mxu0 %v7114_v17  ;;  %4750 = vmatprep.subr.mxu1 %v7114_v17 }
 0x580   :  { %4716 = vmatpush3.msra.mxu0 %v6161_v1  ;;  %4751 = vmatpush3.msra.mxu1 %v6163_v2  ;;  %v6614_v1 = vld [vmem:[#allocation2 + $0x180] sm:$0xff]  ;;  %v6616_v2 = vld [vmem:[#allocation2 + $0x188] sm:$0xff] }
 0x581   :  { %4717 = vmatprep.subr.mxu0 %v7114_v17  ;;  %4752 = vmatprep.subr.mxu1 %v7114_v17 }
 0x582   :  { %4718 = vmatpush3.msra.mxu0 %v6169_v3  ;;  %4753 = vmatpush3.msra.mxu1 %v6171_v4  ;;  %v6622_v3 = vld [vmem:[#allocation2 + $0x160] sm:$0xff]  ;;  %v6624_v4 = vld [vmem:[#allocation2 + $0x168] sm:$0xff] }
 0x583   :  { %4719 = vmatprep.subr.mxu0 %v7114_v17  ;;  %4754 = vmatprep.subr.mxu1 %v7114_v17 }
 0x584   :  { %4720 = vmatpush3.msra.mxu0 %v6177_v5  ;;  %4755 = vmatpush3.msra.mxu1 %v6179_v6  ;;  %v6630_v5 = vld [vmem:[#allocation2 + $0x140] sm:$0xff]  ;;  %v6632_v6 = vld [vmem:[#allocation2 + $0x148] sm:$0xff] }
 0x585   :  { %4721 = vmatprep.subr.mxu0 %v7114_v17  ;;  %4756 = vmatprep.subr.mxu1 %v7114_v17 }
 0x586   :  { %4722 = vmatpush3.msra.mxu0 %v6185_v7  ;;  %4757 = vmatpush3.msra.mxu1 %v6187_v8  ;;  %v6638_v7 = vld [vmem:[#allocation2 + $0x120] sm:$0xff]  ;;  %v6640_v8 = vld [vmem:[#allocation2 + $0x128] sm:$0xff] }
 0x587   :  { %4723 = vmatprep.subr.mxu0 %v7114_v17  ;;  %4758 = vmatprep.subr.mxu1 %v7114_v17 }
 0x588   :  { %4724 = vmatpush3.msra.mxu0 %v6193_v9  ;;  %4759 = vmatpush3.msra.mxu1 %v6195_v10  ;;  %v6646_v9 = vld [vmem:[#allocation2 + $0x100] sm:$0xff]  ;;  %v6648_v10 = vld [vmem:[#allocation2 + $0x108] sm:$0xff] }
 0x589   :  { %4725 = vmatprep.subr.mxu0 %v7114_v17  ;;  %4760 = vmatprep.subr.mxu1 %v7114_v17 }
 0x58a   :  { %4726 = vmatpush3.msra.mxu0 %v6201_v11  ;;  %4761 = vmatpush3.msra.mxu1 %v6203_v12  ;;  %v6654_v11 = vld [vmem:[#allocation2 + $0xe0] sm:$0xff]  ;;  %v6656_v12 = vld [vmem:[#allocation2 + $0xe8] sm:$0xff] }
 0x58b   :  { %4727 = vmatprep.subr.mxu0 %v7114_v17  ;;  %4762 = vmatprep.subr.mxu1 %v7114_v17 }
 0x58c   :  { %4728 = vmatpush3.msra.mxu0 %v6209_v13  ;;  %4763 = vmatpush3.msra.mxu1 %v6211_v14  ;;  %v6660_v13 = vld [vmem:[#allocation2 + $0xc0] sm:$0xff]  ;;  %v6662_v14 = vld [vmem:[#allocation2 + $0xc8] sm:$0xff] }
 0x58d   :  { %4729 = vmatprep.subr.mxu0 %v7114_v17  ;;  %4764 = vmatprep.subr.mxu1 %v7114_v17 }
 0x58e   :  { %4730 = vmatpush3.msra.mxu0 %v6217_v20  ;;  %4765 = vmatpush3.msra.mxu1 %v6219_v21  ;;  %v6666_v20 = vld [vmem:[#allocation2 + $0xa0] sm:$0xff]  ;;  %v6668_v21 = vld [vmem:[#allocation2 + $0xa8] sm:$0xff] }
 0x58f   :  { %4731 = vmatprep.subr.mxu0 %v7114_v17  ;;  %4766 = vmatprep.subr.mxu1 %v7114_v17 }
 0x590   :  { %4732 = vmatpush3.msra.mxu0 %v7157_v50  ;;  %4767 = vmatpush3.msra.mxu1 %v7158_v51  ;;  %v6706_v50 = vld [vmem:[#allocation2] sm:$0xff]  ;;  %v6708_v51 = vld [vmem:[#allocation2 + $0x8] sm:$0xff] }
 0x591   :  { %4733 = vmatprep.subr.mxu0 %v7114_v17  ;;  %4768 = vmatprep.subr.mxu1 %v7114_v17 }
 0x592   :  { %4734 = vmatpush3.msra.mxu0 %v6233_v26  ;;  %4769 = vmatpush3.msra.mxu1 %v7159_v52  ;;  %v6682_v26 = vld [vmem:[#allocation2 + $0x60] sm:$0xff] }
 0x593   :  { %4735 = vmatprep.subr.mxu0 %v7114_v17  ;;  %4770 = vmatprep.subr.mxu1 %v7114_v17 }
 0x594   :  { %4736 = vmatpush3.msra.mxu0 %v6241_v19  ;;  %4771 = vmatpush3.msra.mxu1 %v6243_v27  ;;  %v6690_v19 = vld [vmem:[#allocation2 + $0x40] sm:$0xff]  ;;  %v6692_v27 = vld [vmem:[#allocation2 + $0x48] sm:$0xff] }
 0x595   :  { %4737 = vmatprep.subr.mxu0 %v7114_v17  ;;  %4772 = vmatprep.subr.mxu1 %v7114_v17 }
 0x596   :  { %4738 = vmatpush3.msra.mxu0 %v6249_v30  ;;  %4773 = vmatpush3.msra.mxu1 %v6251_v29  ;;  %v6674_v29 = vld [vmem:[#allocation2 + $0x80] sm:$0xff] }
 0x597   :  { %4739 = vmatprep.subr.mxu0 %v7114_v17  ;;  %4774 = vmatprep.subr.mxu1 %v7114_v17  ;;  %v6698_v30 = vld [vmem:[#allocation2 + $0x20] sm:$0xff] }
 0x598   :  { %4740 = vmatpush3.msra.mxu0 %v6257_v28  ;;  %4741 = vmatprep.mubr.msk.f32.mxu0 %vm5359_vm0, %v7114_v17  ;;  %v6676_v28 = vld [vmem:[#allocation2 + $0x88] sm:$0xff] }
 0x599   :  { %4775 = vmatpush3.msra.mxu1 %v6261_v25  ;;  %4776 = vmatprep.mubr.msk.f32.mxu1 %vm5359_vm0, %v7114_v17  ;;  %v6684_v25 = vld [vmem:[#allocation2 + $0x68] sm:$0xff] }
 0x59a   :  { %4742 = vmatmul.mubr.f32.vlgmr.msra.gmra.mxu0 %v6511_v57  ;;  %4777 = vmatmul.mubr.f32.vlgmr.msra.gmra.mxu1 %v6511_v57 }
 0x59b   :  { %4779 = vmatprep.subr.mxu0 %v7114_v17  ;;  %4814 = vmatprep.subr.mxu1 %v7114_v17 }
 0x59c   :  { %4811 = vmatprep.mubr.msk.f32.mxu0 %vm5359_vm0, %v7114_v17  ;;  %4846 = vmatprep.mubr.msk.f32.mxu1 %vm5359_vm0, %v7114_v17 }
 0x59d   :  { %4780 = vmatpush3.msra.mxu0 %v6590_v22  ;;  %4815 = vmatpush3.msra.mxu1 %v6592_v33 }
 0x59e   :  { %4781 = vmatprep.subr.mxu0 %v7114_v17  ;;  %4816 = vmatprep.subr.mxu1 %v7114_v17 }
 0x59f   :  { %4782 = vmatpush3.msra.mxu0 %v6598_v31  ;;  %4817 = vmatpush3.msra.mxu1 %v6600_v0 }
 0x5a0   :  { %4783 = vmatprep.subr.mxu0 %v7114_v17  ;;  %4818 = vmatprep.subr.mxu1 %v7114_v17 }
 0x5a1   :  { %4784 = vmatpush3.msra.mxu0 %v6606_v15  ;;  %4819 = vmatpush3.msra.mxu1 %v6608_v16 }
 0x5a2   :  { %4785 = vmatprep.subr.mxu0 %v7114_v17  ;;  %4820 = vmatprep.subr.mxu1 %v7114_v17 }
 0x5a3   :  { %4786 = vmatpush3.msra.mxu0 %v6614_v1  ;;  %4821 = vmatpush3.msra.mxu1 %v6616_v2 }
 0x5a4   :  { %4787 = vmatprep.subr.mxu0 %v7114_v17  ;;  %4822 = vmatprep.subr.mxu1 %v7114_v17 }
 0x5a5   :  { %4788 = vmatpush3.msra.mxu0 %v6622_v3  ;;  %4823 = vmatpush3.msra.mxu1 %v6624_v4 }
 0x5a6   :  { %4789 = vmatprep.subr.mxu0 %v7114_v17  ;;  %4824 = vmatprep.subr.mxu1 %v7114_v17 }
 0x5a7   :  { %4790 = vmatpush3.msra.mxu0 %v6630_v5  ;;  %4825 = vmatpush3.msra.mxu1 %v6632_v6 }
 0x5a8   :  { %4791 = vmatprep.subr.mxu0 %v7114_v17  ;;  %4826 = vmatprep.subr.mxu1 %v7114_v17 }
 0x5a9   :  { %4792 = vmatpush3.msra.mxu0 %v6638_v7  ;;  %4827 = vmatpush3.msra.mxu1 %v6640_v8 }
 0x5aa   :  { %4793 = vmatprep.subr.mxu0 %v7114_v17  ;;  %4828 = vmatprep.subr.mxu1 %v7114_v17 }
 0x5ab   :  { %4794 = vmatpush3.msra.mxu0 %v6646_v9  ;;  %4829 = vmatpush3.msra.mxu1 %v6648_v10 }
 0x5ac   :  { %4795 = vmatprep.subr.mxu0 %v7114_v17  ;;  %4830 = vmatprep.subr.mxu1 %v7114_v17 }
 0x5ad   :  { %4796 = vmatpush3.msra.mxu0 %v6654_v11  ;;  %4831 = vmatpush3.msra.mxu1 %v6656_v12 }
 0x5ae   :  { %4797 = vmatprep.subr.mxu0 %v7114_v17  ;;  %4832 = vmatprep.subr.mxu1 %v7114_v17 }
 0x5af   :  { %4798 = vmatpush3.msra.mxu0 %v6660_v13  ;;  %4833 = vmatpush3.msra.mxu1 %v6662_v14 }
 0x5b0   :  { %4799 = vmatprep.subr.mxu0 %v7114_v17  ;;  %4834 = vmatprep.subr.mxu1 %v7114_v17 }
 0x5b1   :  { %4800 = vmatpush3.msra.mxu0 %v6666_v20  ;;  %4835 = vmatpush3.msra.mxu1 %v6668_v21 }
 0x5b2   :  { %4801 = vmatprep.subr.mxu0 %v7114_v17  ;;  %4836 = vmatprep.subr.mxu1 %v7114_v17 }
 0x5b3   :  { %4802 = vmatpush3.msra.mxu0 %v6674_v29  ;;  %4837 = vmatpush3.msra.mxu1 %v6676_v28 }
 0x5b4   :  { %4803 = vmatprep.subr.mxu0 %v7114_v17  ;;  %4838 = vmatprep.subr.mxu1 %v7114_v17 }
 0x5b5   :  { %4804 = vmatpush3.msra.mxu0 %v6682_v26  ;;  %4839 = vmatpush3.msra.mxu1 %v6684_v25 }
 0x5b6   :  { %4805 = vmatprep.subr.mxu0 %v7114_v17  ;;  %4840 = vmatprep.subr.mxu1 %v7114_v17 }
 0x5b7   :  { %4806 = vmatpush3.msra.mxu0 %v6690_v19  ;;  %4841 = vmatpush3.msra.mxu1 %v6692_v27 }
 0x5b8   :  { %4807 = vmatprep.subr.mxu0 %v7114_v17  ;;  %4842 = vmatprep.subr.mxu1 %v7114_v17 }
 0x5b9   :  { %4808 = vmatpush3.msra.mxu0 %v6698_v30  ;;  %4843 = vmatpush3.msra.mxu1 %v6700_v63 }
 0x5ba   :  { %4809 = vmatprep.subr.mxu0 %v7114_v17  ;;  %4844 = vmatprep.subr.mxu1 %v7114_v17 }
 0x5bb   :  { %4810 = vmatpush3.msra.mxu0 %v6706_v50  ;;  %4845 = vmatpush3.msra.mxu1 %v6708_v51 }
 0x5bc   :  { %4849 = vmatprep.subr.mxu0 %v7114_v17  ;;  %4884 = vmatprep.subr.mxu1 %v7114_v17 }
 0x639   :  { %v2120_v52 = vpop.f32.mrf.mxu0  ;;  %v2213_v60 = vpop.f32.mrf.mxu1 }
 0x63a   :  { %v2217_v48 = vadd.f32 %v3362_v18, %v2213_v60  ;;  %v2124_v49 = vadd.f32 %v3361_v47, %v2120_v52  ;;  %v6730_v18 = vld [vmem:[#allocation2 + $0x1f0] sm:$0xff]  ;;  %v6732_v47 = vld [vmem:[#allocation2 + $0x1f8] sm:$0xff] }
 0x63b   :  { %v4673_v56 = vpop.f32.mrf.mxu0  ;;  %v4708_v55 = vpop.f32.mrf.mxu1 }
 0x63c   :  { %v3366_v34 = vmul.f32 -1.442695, %v2217_v48  ;;  %v3365_v35 = vmul.f32 -1.442695, %v2124_v49  ;;  %v6738_v48 = vld [vmem:[#allocation2 + $0x1d8] sm:$0xff]  ;;  %v6745_v49 = vld [vmem:[#allocation2 + $0x1b0] sm:$0xff] }
 0x63e   :  { %5152 = vpow2.f32 %v3366_v34  ;;  %v6747_v34 = vld [vmem:[#allocation2 + $0x1b8] sm:$0xff] }
 0x63f   :  { %5154 = vpow2.f32 %v3365_v35  ;;  %v6753_v35 = vld [vmem:[#allocation2 + $0x190] sm:$0xff] }
 0x64b   :  { %v5153_v36 = vpop.eup %5152 }
 0x64c   :  { %v5155_v37 = vpop.eup %5154  ;;  %v2221_v38 = vadd.f32 1.0, %v5153_v36  ;;  %v6755_v36 = vld [vmem:[#allocation2 + $0x198] sm:$0xff] }
 0x64d   :  { %v2128_v39 = vadd.f32 1.0, %v5155_v37  ;;  %v6761_v37 = vld [vmem:[#allocation2 + $0x170] sm:$0xff] }
 0x64e   :  { %5156 = vrcp.f32 %v2221_v38  ;;  %v6763_v38 = vld [vmem:[#allocation2 + $0x178] sm:$0xff] }
 0x64f   :  { %5158 = vrcp.f32 %v2128_v39  ;;  %v6769_v39 = vld [vmem:[#allocation2 + $0x150] sm:$0xff] }
 0x65a   :  { %v2306_v42 = vpop.f32.mrf.mxu0  ;;  %v2394_v43 = vpop.f32.mrf.mxu1 }
 0x65b   :  { %v2310_v44 = vadd.f32 %v3363_v40, %v2306_v42  ;;  %v2398_v45 = vadd.f32 %v3364_v41, %v2394_v43  ;;  %v5157_v24 = vpop.eup %5156  ;;  %v6771_v40 = vld [vmem:[#allocation2 + $0x158] sm:$0xff]  ;;  %v6777_v41 = vld [vmem:[#allocation2 + $0x130] sm:$0xff] }
 0x65c   :  { %v4743_v46 = vpop.f32.mrf.mxu0  ;;  %v4778_v53 = vpop.f32.mrf.mxu1  ;;  %v2405_v61 = vmul.f32 %v5157_v24, %v6504_v32  ;;  %v6736_v32 = vld [vmem:[#allocation2 + $0x1d0] sm:$0xff]  ;;  %v6779_v42 = vld [vmem:[#allocation2 + $0x138] sm:$0xff] }
 0x65d   :  { %5160 = vtanh.f32 %v2310_v44  ;;  %v3367_v54 = vmul.f32 -1.442695, %v2398_v45  ;;  %v5159_v23 = vpop.eup %5158  ;;  %v6785_v43 = vld [vmem:[#allocation2 + $0x110] sm:$0xff]  ;;  %v6787_v44 = vld [vmem:[#allocation2 + $0x118] sm:$0xff] }
 0x65e   :  { %v6793_v45 = vld [vmem:[#allocation2 + $0xf0] sm:$0xff]  ;;  %v6795_v46 = vld [vmem:[#allocation2 + $0xf8] sm:$0xff] }
 0x65f   :  { %5162 = vpow2.f32 %v3367_v54  ;;  %v6801_v53 = vld [vmem:[#allocation2 + $0xd0] sm:$0xff]  ;;  %v6803_v54 = vld [vmem:[#allocation2 + $0xd8] sm:$0xff] }
 0x660   :  { %v6809_v24 = vld [vmem:[#allocation2 + $0xb0] sm:$0xff] }
 0x66a   :  { %v5161_v62 = vpop.eup %5160 }
 0x66b   :  { %v2406_v59 = vmul.f32 %v5161_v62, %v5159_v23  ;;  %v6811_v23 = vld [vmem:[#allocation2 + $0xb8] sm:$0xff]  ;;  %v6817_v62 = vld [vmem:[#allocation2 + $0x90] sm:$0xff] }
 0x66c   :  { %v5163_v58 = vpop.eup %5162  ;;  %7179 = vst [vmem:[#allocation46_spill] sm:$0xff] %v6817_v62 }
 0x66d   :  { %v6722_v57 = vadd.f32 %v2406_v59, %v2405_v61  ;;  %v2402_v52 = vadd.f32 1.0, %v5163_v58  ;;  %v6819_v61 = vld [vmem:[#allocation2 + $0x98] sm:$0xff]  ;;  %v6825_v59 = vld [vmem:[#allocation2 + $0x70] sm:$0xff] }
 0x66e   :  { %7180 = vst [vmem:[#allocation49_spill] sm:$0xff] %v6819_v61  ;;  %v6827_v58 = vld [vmem:[#allocation2 + $0x78] sm:$0xff] }
 0x66f   :  { %5164 = vtanh.f32 %v6722_v57  ;;  %7181 = vst [vmem:[#allocation50_spill] sm:$0xff] %v6827_v58 }
 0x670   :  { %5166 = vrcp.f32 %v2402_v52  ;;  %v6833_v52 = vld [vmem:[#allocation2 + $0x50] sm:$0xff] }
 0x67c   :  { %v5165_v60 = vpop.eup %5164 }
 0x67d   :  { %v5167_v56 = vpop.eup %5166 }
 0x67e   :  { %v6728_v55 = vmul.f32 %v5167_v56, %v5165_v60  ;;  %v6835_v60 = vld [vmem:[#allocation2 + $0x58] sm:$0xff]  ;;  %v6841_v56 = vld [vmem:[#allocation2 + $0x30] sm:$0xff] }
 0x680   :  { %4812 = vmatmul.mubr.f32.vlgmr.msra.gmra.mxu0 %v6728_v55  ;;  %4847 = vmatmul.mubr.f32.vlgmr.msra.gmra.mxu1 %v6728_v55  ;;  %3369 = vst [vmem:[%s3298_s18 + $0x28] sm:$0xff] %v6728_v55 }
 0x681   :  { %4850 = vmatpush3.msra.mxu0 %v6730_v18  ;;  %4885 = vmatpush3.msra.mxu1 %v6732_v47 }
 0x682   :  { %4851 = vmatprep.subr.mxu0 %v7114_v17  ;;  %4886 = vmatprep.subr.mxu1 %v7114_v17 }
 0x683   :  { %4852 = vmatpush3.msra.mxu0 %v6736_v32  ;;  %4887 = vmatpush3.msra.mxu1 %v6738_v48 }
 0x684   :  { %4853 = vmatprep.subr.mxu0 %v7114_v17  ;;  %4888 = vmatprep.subr.mxu1 %v7114_v17 }
 0x685   :  { %4854 = vmatpush3.msra.mxu0 %v6745_v49  ;;  %4889 = vmatpush3.msra.mxu1 %v6747_v34 }
 0x686   :  { %4855 = vmatprep.subr.mxu0 %v7114_v17  ;;  %4890 = vmatprep.subr.mxu1 %v7114_v17 }
 0x687   :  { %4856 = vmatpush3.msra.mxu0 %v6753_v35  ;;  %4891 = vmatpush3.msra.mxu1 %v6755_v36 }
 0x688   :  { %4857 = vmatprep.subr.mxu0 %v7114_v17  ;;  %4892 = vmatprep.subr.mxu1 %v7114_v17 }
 0x689   :  { %4858 = vmatpush3.msra.mxu0 %v6761_v37  ;;  %4893 = vmatpush3.msra.mxu1 %v6763_v38 }
 0x68a   :  { %4859 = vmatprep.subr.mxu0 %v7114_v17  ;;  %4894 = vmatprep.subr.mxu1 %v7114_v17 }
 0x68b   :  { %4860 = vmatpush3.msra.mxu0 %v6769_v39  ;;  %4895 = vmatpush3.msra.mxu1 %v6771_v40 }
 0x68c   :  { %4861 = vmatprep.subr.mxu0 %v7114_v17  ;;  %4896 = vmatprep.subr.mxu1 %v7114_v17 }
 0x68d   :  { %4862 = vmatpush3.msra.mxu0 %v6777_v41  ;;  %4897 = vmatpush3.msra.mxu1 %v6779_v42 }
 0x68e   :  { %4863 = vmatprep.subr.mxu0 %v7114_v17  ;;  %4898 = vmatprep.subr.mxu1 %v7114_v17 }
 0x68f   :  { %4864 = vmatpush3.msra.mxu0 %v6785_v43  ;;  %4899 = vmatpush3.msra.mxu1 %v6787_v44 }
 0x690   :  { %4865 = vmatprep.subr.mxu0 %v7114_v17  ;;  %4900 = vmatprep.subr.mxu1 %v7114_v17 }
 0x691   :  { %4866 = vmatpush3.msra.mxu0 %v6793_v45  ;;  %4901 = vmatpush3.msra.mxu1 %v6795_v46 }
 0x692   :  { %4867 = vmatprep.subr.mxu0 %v7114_v17  ;;  %4902 = vmatprep.subr.mxu1 %v7114_v17 }
 0x693   :  { %4868 = vmatpush3.msra.mxu0 %v6801_v53  ;;  %4903 = vmatpush3.msra.mxu1 %v6803_v54 }
 0x694   :  { %4869 = vmatprep.subr.mxu0 %v7114_v17  ;;  %4904 = vmatprep.subr.mxu1 %v7114_v17 }
 0x695   :  { %4870 = vmatpush3.msra.mxu0 %v6809_v24  ;;  %4905 = vmatpush3.msra.mxu1 %v6811_v23 }
 0x696   :  { %4871 = vmatprep.subr.mxu0 %v7114_v17  ;;  %4906 = vmatprep.subr.mxu1 %v7114_v17 }
 0x697   :  { %4872 = vmatpush3.msra.mxu0 %v6817_v62  ;;  %4907 = vmatpush3.msra.mxu1 %v6819_v61  ;;  %v6843_v62 = vld [vmem:[#allocation2 + $0x38] sm:$0xff]  ;;  %v6849_v61 = vld [vmem:[#allocation2 + $0x10] sm:$0xff] }
 0x698   :  { %4873 = vmatprep.subr.mxu0 %v7114_v17  ;;  %4908 = vmatprep.subr.mxu1 %v7114_v17 }
 0x699   :  { %4874 = vmatpush3.msra.mxu0 %v6825_v59  ;;  %4909 = vmatpush3.msra.mxu1 %v6827_v58  ;;  %v6853_v58 = vld [vmem:[#allocation2 + $0x18] sm:$0xff] }
 0x69a   :  { %4875 = vmatprep.subr.mxu0 %v7114_v17  ;;  %4910 = vmatprep.subr.mxu1 %v7114_v17 }
 0x69b   :  { %4876 = vmatpush3.msra.mxu0 %v6833_v52  ;;  %4911 = vmatpush3.msra.mxu1 %v6835_v60 }
 0x69c   :  { %4877 = vmatprep.subr.mxu0 %v7114_v17  ;;  %4912 = vmatprep.subr.mxu1 %v7114_v17 }
 0x69d   :  { %4878 = vmatpush3.msra.mxu0 %v6841_v56  ;;  %4913 = vmatpush3.msra.mxu1 %v6843_v62 }
 0x69e   :  { %4879 = vmatprep.subr.mxu0 %v7114_v17  ;;  %4914 = vmatprep.subr.mxu1 %v7114_v17 }
 0x69f   :  { %4880 = vmatpush3.msra.mxu0 %v6849_v61  ;;  %4881 = vmatprep.mubr.msk.f32.mxu0 %vm5359_vm0, %v7114_v17 }
 0x6a0   :  { %4915 = vmatpush3.msra.mxu1 %v6853_v58  ;;  %4916 = vmatprep.mubr.msk.f32.mxu1 %vm5359_vm0, %v7114_v17 }
 0x6a1   :  { %4882 = vmatmul.mubr.f32.vlgmr.msra.gmra.mxu0 %v6728_v55  ;;  %4917 = vmatmul.mubr.f32.vlgmr.msra.gmra.mxu1 %v6728_v55 }
 0x6a2   :  { %4919 = vmatprep.subr.mxu0 %v7114_v17  ;;  %4954 = vmatprep.subr.mxu1 %v7114_v17 }
 0x6a3   :  { %4920 = vmatpush3.msra.mxu0 %v6590_v22  ;;  %4955 = vmatpush3.msra.mxu1 %v6592_v33 }
 0x6a4   :  { %4921 = vmatprep.subr.mxu0 %v7114_v17  ;;  %4956 = vmatprep.subr.mxu1 %v7114_v17 }
 0x6a5   :  { %4922 = vmatpush3.msra.mxu0 %v6598_v31  ;;  %4957 = vmatpush3.msra.mxu1 %v6600_v0 }
 0x6a6   :  { %4923 = vmatprep.subr.mxu0 %v7114_v17  ;;  %4958 = vmatprep.subr.mxu1 %v7114_v17 }
 0x6a7   :  { %4924 = vmatpush3.msra.mxu0 %v6606_v15  ;;  %4959 = vmatpush3.msra.mxu1 %v6608_v16  ;;  %v3372_v15 = vld [vmem:[%s3302_s3 + $0xc8] sm:$0xff]  ;;  %v3371_v16 = vld [vmem:[%s3302_s3 + $0xc0] sm:$0xff] }
 0x6a8   :  { %4925 = vmatprep.subr.mxu0 %v7114_v17  ;;  %4960 = vmatprep.subr.mxu1 %v7114_v17 }
 0x6a9   :  { %4926 = vmatpush3.msra.mxu0 %v6614_v1  ;;  %4961 = vmatpush3.msra.mxu1 %v6616_v2 }
 0x6aa   :  { %4927 = vmatprep.subr.mxu0 %v7114_v17  ;;  %4962 = vmatprep.subr.mxu1 %v7114_v17 }
 0x6ab   :  { %4928 = vmatpush3.msra.mxu0 %v6622_v3  ;;  %4963 = vmatpush3.msra.mxu1 %v6624_v4 }
 0x6ac   :  { %4929 = vmatprep.subr.mxu0 %v7114_v17  ;;  %4964 = vmatprep.subr.mxu1 %v7114_v17 }
 0x6ad   :  { %4930 = vmatpush3.msra.mxu0 %v6630_v5  ;;  %4965 = vmatpush3.msra.mxu1 %v6632_v6 }
 0x6ae   :  { %4931 = vmatprep.subr.mxu0 %v7114_v17  ;;  %4966 = vmatprep.subr.mxu1 %v7114_v17 }
 0x6af   :  { %4932 = vmatpush3.msra.mxu0 %v6638_v7  ;;  %4967 = vmatpush3.msra.mxu1 %v6640_v8 }
 0x6b0   :  { %4933 = vmatprep.subr.mxu0 %v7114_v17  ;;  %4968 = vmatprep.subr.mxu1 %v7114_v17 }
 0x6b1   :  { %4934 = vmatpush3.msra.mxu0 %v6646_v9  ;;  %4969 = vmatpush3.msra.mxu1 %v6648_v10  ;;  %v3373_v9 = vld [vmem:[%s3302_s3 + $0xd0] sm:$0xff]  ;;  %v3374_v10 = vld [vmem:[%s3302_s3 + $0xd8] sm:$0xff] }
 0x6b2   :  { %4935 = vmatprep.subr.mxu0 %v7114_v17  ;;  %4970 = vmatprep.subr.mxu1 %v7114_v17 }
 0x6b3   :  { %4936 = vmatpush3.msra.mxu0 %v6654_v11  ;;  %4971 = vmatpush3.msra.mxu1 %v6656_v12 }
 0x6b4   :  { %4937 = vmatprep.subr.mxu0 %v7114_v17  ;;  %4972 = vmatprep.subr.mxu1 %v7114_v17 }
 0x6b5   :  { %4938 = vmatpush3.msra.mxu0 %v6660_v13  ;;  %4973 = vmatpush3.msra.mxu1 %v6662_v14 }
 0x6b6   :  { %4939 = vmatprep.subr.mxu0 %v7114_v17  ;;  %4974 = vmatprep.subr.mxu1 %v7114_v17 }
 0x6b7   :  { %4940 = vmatpush3.msra.mxu0 %v6666_v20  ;;  %4975 = vmatpush3.msra.mxu1 %v6668_v21 }
 0x6b8   :  { %4941 = vmatprep.subr.mxu0 %v7114_v17  ;;  %4976 = vmatprep.subr.mxu1 %v7114_v17 }
 0x6b9   :  { %4942 = vmatpush3.msra.mxu0 %v6674_v29  ;;  %4977 = vmatpush3.msra.mxu1 %v6676_v28 }
 0x6ba   :  { %4943 = vmatprep.subr.mxu0 %v7114_v17  ;;  %4978 = vmatprep.subr.mxu1 %v7114_v17 }
 0x6bb   :  { %4944 = vmatpush3.msra.mxu0 %v6682_v26  ;;  %4979 = vmatpush3.msra.mxu1 %v6684_v25 }
 0x6bc   :  { %4945 = vmatprep.subr.mxu0 %v7114_v17  ;;  %4980 = vmatprep.subr.mxu1 %v7114_v17 }
 0x6bd   :  { %4946 = vmatpush3.msra.mxu0 %v6690_v19  ;;  %4981 = vmatpush3.msra.mxu1 %v6692_v27 }
 0x6be   :  { %4947 = vmatprep.subr.mxu0 %v7114_v17  ;;  %4982 = vmatprep.subr.mxu1 %v7114_v17 }
 0x6bf   :  { %4948 = vmatpush3.msra.mxu0 %v6698_v30  ;;  %4983 = vmatpush3.msra.mxu1 %v6700_v63 }
 0x6c0   :  { %4949 = vmatprep.subr.mxu0 %v7114_v17  ;;  %4984 = vmatprep.subr.mxu1 %v7114_v17 }
 0x6c1   :  { %4950 = vmatpush3.msra.mxu0 %v6706_v50  ;;  %4985 = vmatpush3.msra.mxu1 %v6708_v51 }
 0x6c2   :  { %4951 = vmatprep.mubr.msk.f32.mxu0 %vm5359_vm0, %v7114_v17  ;;  %4986 = vmatprep.mubr.msk.f32.mxu1 %vm5359_vm0, %v7114_v17 }
 0x6c3   :  { %4989 = vmatprep.subr.mxu0 %v7114_v17  ;;  %5024 = vmatprep.subr.mxu1 %v7114_v17 }
 0x740   :  { %v2504_v22 = vpop.f32.mrf.mxu0  ;;  %v2597_v33 = vpop.f32.mrf.mxu1 }
 0x741   :  { %v2601_v1 = vadd.f32 %v3372_v15, %v2597_v33  ;;  %v2508_v2 = vadd.f32 %v3371_v16, %v2504_v22 }
 0x742   :  { %v4813_v31 = vpop.f32.mrf.mxu0  ;;  %v4848_v0 = vpop.f32.mrf.mxu1 }
 0x743   :  { %v3376_v3 = vmul.f32 -1.442695, %v2601_v1  ;;  %v3375_v4 = vmul.f32 -1.442695, %v2508_v2 }
 0x745   :  { %5168 = vpow2.f32 %v3376_v3 }
 0x746   :  { %5170 = vpow2.f32 %v3375_v4 }
 0x752   :  { %v5169_v5 = vpop.eup %5168 }
 0x753   :  { %v5171_v6 = vpop.eup %5170  ;;  %v2605_v7 = vadd.f32 1.0, %v5169_v5 }
 0x754   :  { %v2512_v8 = vadd.f32 1.0, %v5171_v6 }
 0x755   :  { %5172 = vrcp.f32 %v2605_v7 }
 0x756   :  { %5174 = vrcp.f32 %v2512_v8 }
 0x761   :  { %v2690_v11 = vpop.f32.mrf.mxu0  ;;  %v2778_v12 = vpop.f32.mrf.mxu1 }
 0x762   :  { %v2694_v13 = vadd.f32 %v3373_v9, %v2690_v11  ;;  %v2782_v14 = vadd.f32 %v3374_v10, %v2778_v12  ;;  %v5173_v28 = vpop.eup %5172 }
 0x763   :  { %v4883_v20 = vpop.f32.mrf.mxu0  ;;  %v4918_v21 = vpop.f32.mrf.mxu1  ;;  %v2789_v19 = vmul.f32 %v5173_v28, %v6722_v57  ;;  %v7182_v57 = vld [vmem:[#allocation46_spill] sm:$0xff] }
 0x764   :  { %5176 = vtanh.f32 %v2694_v13  ;;  %v3377_v29 = vmul.f32 -1.442695, %v2782_v14  ;;  %v5175_v26 = vpop.eup %5174 }
 0x766   :  { %5178 = vpow2.f32 %v3377_v29 }
 0x771   :  { %v5177_v25 = vpop.eup %5176 }
 0x772   :  { %v2790_v27 = vmul.f32 %v5177_v25, %v5175_v26 }
 0x773   :  { %v5179_v30 = vpop.eup %5178 }
 0x774   :  { %v6939_v63 = vadd.f32 %v2790_v27, %v2789_v19  ;;  %v2786_v50 = vadd.f32 1.0, %v5179_v30 }
 0x776   :  { %5180 = vtanh.f32 %v6939_v63 }
 0x777   :  { %5182 = vrcp.f32 %v2786_v50 }
 0x783   :  { %v5181_v51 = vpop.eup %5180 }
 0x784   :  { %v5183_v55 = vpop.eup %5182 }
 0x785   :  { %v6945_v22 = vmul.f32 %v5183_v55, %v5181_v51 }
 0x787   :  { %4952 = vmatmul.mubr.f32.vlgmr.msra.gmra.mxu0 %v6945_v22  ;;  %4987 = vmatmul.mubr.f32.vlgmr.msra.gmra.mxu1 %v6945_v22  ;;  %3379 = vst [vmem:[%s3306_s23 + $0x30] sm:$0xff] %v6945_v22 }
 0x788   :  { %4990 = vmatpush3.msra.mxu0 %v6730_v18  ;;  %5025 = vmatpush3.msra.mxu1 %v6732_v47  ;;  %v7183_v18 = vld [vmem:[#allocation49_spill] sm:$0xff]  ;;  %v7184_v47 = vld [vmem:[#allocation50_spill] sm:$0xff] }
 0x789   :  { %4991 = vmatprep.subr.mxu0 %v7114_v17  ;;  %5026 = vmatprep.subr.mxu1 %v7114_v17 }
 0x78a   :  { %4992 = vmatpush3.msra.mxu0 %v6736_v32  ;;  %5027 = vmatpush3.msra.mxu1 %v6738_v48 }
 0x78b   :  { %4993 = vmatprep.subr.mxu0 %v7114_v17  ;;  %5028 = vmatprep.subr.mxu1 %v7114_v17 }
 0x78c   :  { %4994 = vmatpush3.msra.mxu0 %v6745_v49  ;;  %5029 = vmatpush3.msra.mxu1 %v6747_v34 }
 0x78d   :  { %4995 = vmatprep.subr.mxu0 %v7114_v17  ;;  %5030 = vmatprep.subr.mxu1 %v7114_v17 }
 0x78e   :  { %4996 = vmatpush3.msra.mxu0 %v6753_v35  ;;  %5031 = vmatpush3.msra.mxu1 %v6755_v36  ;;  %v3382_v35 = vld [vmem:[%s3310_s27 + $0xe8] sm:$0xff]  ;;  %v3381_v36 = vld [vmem:[%s3310_s27 + $0xe0] sm:$0xff] }
 0x78f   :  { %4997 = vmatprep.subr.mxu0 %v7114_v17  ;;  %5032 = vmatprep.subr.mxu1 %v7114_v17 }
 0x790   :  { %4998 = vmatpush3.msra.mxu0 %v6761_v37  ;;  %5033 = vmatpush3.msra.mxu1 %v6763_v38 }
 0x791   :  { %4999 = vmatprep.subr.mxu0 %v7114_v17  ;;  %5034 = vmatprep.subr.mxu1 %v7114_v17 }
 0x792   :  { %5000 = vmatpush3.msra.mxu0 %v6769_v39  ;;  %5035 = vmatpush3.msra.mxu1 %v6771_v40 }
 0x793   :  { %5001 = vmatprep.subr.mxu0 %v7114_v17  ;;  %5036 = vmatprep.subr.mxu1 %v7114_v17 }
 0x794   :  { %5002 = vmatpush3.msra.mxu0 %v6777_v41  ;;  %5037 = vmatpush3.msra.mxu1 %v6779_v42 }
 0x795   :  { %5003 = vmatprep.subr.mxu0 %v7114_v17  ;;  %5038 = vmatprep.subr.mxu1 %v7114_v17 }
 0x796   :  { %5004 = vmatpush3.msra.mxu0 %v6785_v43  ;;  %5039 = vmatpush3.msra.mxu1 %v6787_v44  ;;  %v3383_v44 = vld [vmem:[%s3310_s27 + $0xf0] sm:$0xff] }
 0x797   :  { %5005 = vmatprep.subr.mxu0 %v7114_v17  ;;  %5040 = vmatprep.subr.mxu1 %v7114_v17 }
 0x798   :  { %5006 = vmatpush3.msra.mxu0 %v6793_v45  ;;  %5041 = vmatpush3.msra.mxu1 %v6795_v46  ;;  %v3384_v45 = vld [vmem:[%s3310_s27 + $0xf8] sm:$0xff] }
 0x799   :  { %5007 = vmatprep.subr.mxu0 %v7114_v17  ;;  %5042 = vmatprep.subr.mxu1 %v7114_v17 }
 0x79a   :  { %5008 = vmatpush3.msra.mxu0 %v6801_v53  ;;  %5043 = vmatpush3.msra.mxu1 %v6803_v54 }
 0x79b   :  { %5009 = vmatprep.subr.mxu0 %v7114_v17  ;;  %5044 = vmatprep.subr.mxu1 %v7114_v17 }
 0x79c   :  { %5010 = vmatpush3.msra.mxu0 %v6809_v24  ;;  %5045 = vmatpush3.msra.mxu1 %v6811_v23 }
 0x79d   :  { %5011 = vmatprep.subr.mxu0 %v7114_v17  ;;  %5046 = vmatprep.subr.mxu1 %v7114_v17 }
 0x79e   :  { %5012 = vmatpush3.msra.mxu0 %v7182_v57  ;;  %5047 = vmatpush3.msra.mxu1 %v7183_v18 }
 0x79f   :  { %5013 = vmatprep.subr.mxu0 %v7114_v17  ;;  %5048 = vmatprep.subr.mxu1 %v7114_v17 }
 0x7a0   :  { %5014 = vmatpush3.msra.mxu0 %v6825_v59  ;;  %5049 = vmatpush3.msra.mxu1 %v7184_v47 }
 0x7a1   :  { %5015 = vmatprep.subr.mxu0 %v7114_v17  ;;  %5050 = vmatprep.subr.mxu1 %v7114_v17 }
 0x7a2   :  { %5016 = vmatpush3.msra.mxu0 %v6833_v52  ;;  %5051 = vmatpush3.msra.mxu1 %v6835_v60 }
 0x7a3   :  { %5017 = vmatprep.subr.mxu0 %v7114_v17  ;;  %5052 = vmatprep.subr.mxu1 %v7114_v17 }
 0x7a4   :  { %5018 = vmatpush3.msra.mxu0 %v6841_v56  ;;  %5053 = vmatpush3.msra.mxu1 %v6843_v62 }
 0x7a5   :  { %5019 = vmatprep.subr.mxu0 %v7114_v17  ;;  %5054 = vmatprep.subr.mxu1 %v7114_v17 }
 0x7a6   :  { %5020 = vmatpush3.msra.mxu0 %v6849_v61  ;;  %5021 = vmatprep.mubr.msk.f32.mxu0 %vm5359_vm0, %v7114_v17 }
 0x7a7   :  { %5055 = vmatpush3.msra.mxu1 %v6853_v58  ;;  %5056 = vmatprep.mubr.msk.f32.mxu1 %vm5359_vm0, %v7114_v17 }
 0x7a8   :  { %5022 = vmatmul.mubr.f32.vlgmr.msra.gmra.mxu0 %v6945_v22  ;;  %5057 = vmatmul.mubr.f32.vlgmr.msra.gmra.mxu1 %v6945_v22 }
 0x847   :  { %v2888_v32 = vpop.f32.mrf.mxu0  ;;  %v2981_v48 = vpop.f32.mrf.mxu1 }
 0x848   :  { %v2985_v37 = vadd.f32 %v3382_v35, %v2981_v48  ;;  %v2892_v38 = vadd.f32 %v3381_v36, %v2888_v32 }
 0x849   :  { %v4953_v49 = vpop.f32.mrf.mxu0  ;;  %v4988_v34 = vpop.f32.mrf.mxu1 }
 0x84a   :  { %v3386_v39 = vmul.f32 -1.442695, %v2985_v37  ;;  %v3385_v40 = vmul.f32 -1.442695, %v2892_v38 }
 0x84c   :  { %5184 = vpow2.f32 %v3386_v39 }
 0x84d   :  { %5186 = vpow2.f32 %v3385_v40 }
 0x859   :  { %v5185_v17 = vpop.eup %5184 }
 0x85a   :  { %v5187_v41 = vpop.eup %5186  ;;  %v2989_v42 = vadd.f32 1.0, %v5185_v17 }
 0x85b   :  { %v2896_v43 = vadd.f32 1.0, %v5187_v41 }
 0x85c   :  { %5188 = vrcp.f32 %v2989_v42 }
 0x85d   :  { %5190 = vrcp.f32 %v2896_v43 }
 0x868   :  { %v3074_v46 = vpop.f32.mrf.mxu0  ;;  %v3162_v53 = vpop.f32.mrf.mxu1 }
 0x869   :  { %v3078_v54 = vadd.f32 %v3383_v44, %v3074_v46  ;;  %v3166_v24 = vadd.f32 %v3384_v45, %v3162_v53  ;;  %v5189_v59 = vpop.eup %5188 }
 0x86a   :  { %v5023_v23 = vpop.f32.mrf.mxu0  ;;  %v5058_v62 = vpop.f32.mrf.mxu1  ;;  %v3173_v60 = vmul.f32 %v5189_v59, %v6939_v63 }
 0x86b   :  { %5192 = vtanh.f32 %v3078_v54  ;;  %v3387_v61 = vmul.f32 -1.442695, %v3166_v24  ;;  %v5191_v58 = vpop.eup %5190 }
 0x86d   :  { %5194 = vpow2.f32 %v3387_v61 }
 0x878   :  { %v5193_v52 = vpop.eup %5192 }
 0x879   :  { %v3174_v56 = vmul.f32 %v5193_v52, %v5191_v58 }
 0x87a   :  { %v5195_v33 = vpop.eup %5194 }
 0x87b   :  { %v3175_v31 = vadd.f32 %v3174_v56, %v3173_v60  ;;  %v3170_v0 = vadd.f32 1.0, %v5195_v33 }
 0x87d   :  { %3182 = vst [vmem:[#allocation4] sm:$0xff] %v3175_v31  ;;  %3187 = vst [vmem:[#allocation14] sm:$0xff] %v3175_v31  ;;  %5196 = vrcp.f32 %v3170_v0 }
 0x87e   :  { %5198 = vtanh.f32 %v3175_v31 }
 0x88a   :  { %v5197_v15 = vpop.eup %5196 }
 0x88b   :  { %v5199_v16 = vpop.eup %5198 }
 0x88c   :  { %v3177_v1 = vmul.f32 %v5199_v16, %v5197_v15 }
 0x88e   :  { %3181 = vst [vmem:[#allocation3] sm:$0xff] %v3177_v1  ;;  %3186 = vst [vmem:[#allocation12] sm:$0xff] %v3177_v1 }
 0x88f   :  { %3389 = vst [vmem:[%s3314_s14 + $0x38] sm:$0xff] %v3177_v1 }
 0x890   :  { %5291 = shalt.err (!%p5288_p10)
}
 0x891   :  { %3217 = dma.vmem_to_hbm [thread:$0]  %s3215_s9, 128, %s7040_s6, [#allocation13]  }
 0x892   :  { %s5300_s16 = scalar_lea.vmem %s3202_s11, 1024  ;;  %p5305_p12 = scmp.lt.s32.totalorder %s3202_s11, %s3202_s11 }
 0x893   :  { %p5301_p11 = scmp.ne.s32.totalorder %s3202_s11, %s5300_s16  ;;  %p5306_p13 = scmp.lt.s32.totalorder %s5300_s16, %s5300_s16 }
 0x895   :  { %p5307_p0 = por %p5306_p13, %p5305_p12 }
 0x897   :  { %p5308_p1 = pnand %p5307_p0, %p5301_p11 }
 0x899   :  { %5311 = shalt.err (!%p5308_p1)
}
 0x89a   :  { %s5363_s17 = smov 128   ;;  %s5364_s18 = smov 8  }
 0x89b   :  { %3207 = dma.vmem_to_hbm [thread:$0]  %s3202_s11, 1024, %s7039_s5, [#allocation10], %s5363_s17, %s5363_s17, %s5364_s18  }
 0x89c   :  { %s5320_s20 = scalar_lea.vmem %s3225_s13, 128  ;;  %p5325_p3 = scmp.lt.s32.totalorder %s3225_s13, %s3225_s13 }
 0x89d   :  { %p5321_p2 = scmp.ne.s32.totalorder %s3225_s13, %s5320_s20  ;;  %p5326_p4 = scmp.lt.s32.totalorder %s5320_s20, %s5320_s20 }
 0x89f   :  { %p5327_p5 = por %p5326_p4, %p5325_p3 }
 0x8a1   :  { %p5328_p6 = pnand %p5327_p5, %p5321_p2 }
 0x8a3   :  { %5331 = shalt.err (!%p5328_p6)
}
 0x8a4   :  { %3227 = dma.vmem_to_hbm [thread:$0]  %s3225_s13, 128, %s7041_s7, [#allocation13]  }
 0x8a5   :  { %5348 = dma.done.wait [#allocation10], 1024  }
 0x8a6   :  { %5349 = vsyncadd [#allocation10], 4294966272 }
 0x8a7   :  { %5350 = dma.done.wait [#allocation13], 256  }
 0x8a8   :  { %5351 = vsyncadd [#allocation13], 4294967040 }
 0x8a9   :  { %3237 = vsyncpa [#allocation9], 1 }
 0x8aa   :  { %3238 = vsyncpa [#allocation10], 1 }
 0x8ab   :  { %3239 = vsyncpa [#allocation13], 1 }
 0x8ac   :  { %3240 = vsyncmov [#allocation5] }
 0x8af   :  { %s3241_s5 = vpop.sfrf %3240 }
 0x8b0   :  { %p3390_p7 = scmp.ne.s32.totalorder %s3241_s5, 0 }
 0x8b2   :  { %3245 = shalt.err (%p3390_p7)  }
 0x8b3   :  { %3247 = vsyncmov [#allocation5 + $0x1] }
 0x8b6   :  { %s3248_s4 = vpop.sfrf %3247 }
 0x8b7   :  { %p3391_p8 = scmp.ne.s32.totalorder %s3248_s4, 0 }
 0x8b9   :  { %3252 = shalt.err (%p3391_p8)  }
 0x8ba   :  { %3254 = vsyncmov [#allocation5 + $0x2] }
 0x8bd   :  { %s3255_s21 = vpop.sfrf %3254 }
 0x8be   :  { %p3392_p9 = scmp.ne.s32.totalorder %s3255_s21, 0 }
 0x8c0   :  { %3259 = shalt.err (%p3392_p9)  }

</bundles_post_ra>
